<compile_context>
chip_gen: v5e
topology: v5e:2x2
jax: 0.10.0
libtpu: 0.0.40
codegen_flags: <defaults>
</compile_context>

<pallas_src>
import math
import functools

import jax
import jax.numpy as jnp
from jax.experimental import pallas as pl
from jax.experimental.pallas import tpu as pltpu


# ----------------------------- tiling helpers --------------------------------

def _largest_divisor_leq(n, cap):
    cap = int(max(1, min(n, cap)))
    for d in range(cap, 0, -1):
        if n % d == 0:
            return d
    return 1
# TODO(synk): replace divisor-only row tiling with cdiv + a masked last tile so
# the tile does not collapse for awkward (e.g. prime) spatial sizes.


@functools.lru_cache(maxsize=None)
def _budgets():
    """(vmem_limit_bytes, per-block working-set budget) per TPU generation."""
    try:
        cap = int(pltpu.get_tpu_info().vmem_capacity_bytes)
    except Exception:                              # CPU / interpret / unknown part
        cap = 64 * 1024 * 1024
    if cap >= 96 * 1024 * 1024:                    # v5e / v6e class (128 MiB VMEM)
        return 80 * 1024 * 1024, 12 * 1024 * 1024
    return 48 * 1024 * 1024, 6 * 1024 * 1024       # v7x class (64 MiB VMEM)


def _pick_row_tile(n_rows, per_row_bytes, budget, batch):
    cap = max(1, budget // max(int(per_row_bytes), 1))
    if batch == 1 and n_rows >= 2:
        # v7x megacore: keep at least two row tiles so both TensorCores get work.
        cap = min(cap, n_rows // 2)
    return _largest_divisor_leq(n_rows, max(cap, 1))


def _pick_channel_tile(c):
    """Lane-dense output-channel tile: full when small, else a 128-multiple."""
    if c <= 256:
        return c
    if c % 256 == 0:
        return 256
    if c % 128 == 0:
        return 128
    return c


# --------------------- fused nearest-upsample-x2 + 3x3 conv ------------------

def _fused_up_conv_kernel(x_ref, top_ref, bot_ref, w_ref, b_ref, o_ref, col_ref,
                          *, TH, W, Cin, TC2, mxu_dtype, guard_build):
    """One (n, row-tile, cout-tile) block of Upsample(x2 nearest) + Conv2d(3x3, pad=1).

    x_ref  : (1, TH, W, Cin)     original-resolution body rows (pipelined)
    top_ref: (1, 1, W, Cin)      row r*TH-1 (clamped index; zeroed here at r==0)
    bot_ref: (1, 1, W, Cin)      row r*TH+TH (clamped; zeroed at the last tile)
    w_ref  : (2, 6*Cin, TC2)     folded per-dy-phase weights (zero taps dropped)
    b_ref  : (1, TC2)            bias, (dx, co) packed
    o_ref  : (1, TH, 2, W, TC2)  output block, packs dy / (dx, co)
    col_ref: (TH, W, 9*Cin)      shared 3x3 im2col scratch (MXU dtype)
    """
    r = pl.program_id(1)
    nr = pl.num_programs(1)

    def build_im2col():
        body = x_ref[0]                                          # (TH, W, Cin)
        zrow = jnp.zeros((1, W, Cin), body.dtype)
        top = jnp.where(r > 0, top_ref[0], zrow)                 # zero pad above row 0
        bot = jnp.where(r < nr - 1, bot_ref[0], zrow)            # zero pad below row H-1
        if TH > 1:
            row_src = (jnp.concatenate([top, body[:TH - 1]], axis=0),   # input row y-1
                       body,                                             # input row y
                       jnp.concatenate([body[1:], bot], axis=0))         # input row y+1
        else:
            row_src = (top, body, bot)
        zcol = jnp.zeros((TH, 1, Cin), body.dtype)
        for p in range(3):
            z = row_src[p]
            for q in range(3):
                if q == 0:        # col x-1 (zero at x == 0)
                    tap = jnp.concatenate([zcol, z[:, :W - 1, :]], axis=1) if W > 1 else zcol
                elif q == 1:      # col x
                    tap = z
                else:             # col x+1 (zero at x == W-1)
                    tap = jnp.concatenate([z[:, 1:, :], zcol], axis=1) if W > 1 else zcol
                t = p * 3 + q
                col_ref[:, :, t * Cin:(t + 1) * Cin] = tap.astype(mxu_dtype)

    if guard_build:
        # Cout is tiled: only (re)build the shared im2col on the first Cout tile.
        pl.when(pl.program_id(2) == 0)(build_im2col)
    else:
        build_im2col()

    bias = b_ref[...].astype(jnp.float32)                        # (1, TC2)
    for dy in range(2):
        # The dy-phase only touches window rows {dy, dy+1} -> K = 6*Cin.
        # NOTE: the 3*Cin lane offset is a masked load when Cin % 128 != 0; build
        # two 6-tap buffers instead of slicing if that ever dominates.
        a = col_ref[:, :, 3 * dy * Cin: 3 * dy * Cin + 6 * Cin]
        a = a.reshape(TH * W, 6 * Cin)
        acc = jnp.dot(a, w_ref[dy], preferred_element_type=jnp.float32) + bias
        o_ref[0, :, dy, :, :] = acc.reshape(TH, W, TC2).astype(o_ref.dtype)


def upsample2x_conv3x3_fused_pallas(x, w_fused, b_fused):
    """Upsample(x2, nearest) -> Conv2d(Cin, Cout, 3, padding=1), fused.

    x: (N, H, W, Cin) NHWC.  w_fused: (2, 6*Cin, 2*Cout).  Returns (N, 2H, 2W, Cout).
    """
    N, H, W, Cin = x.shape
    Cout2 = w_fused.shape[-1]
    Cout = Cout2 // 2
    mxu_dtype = w_fused.dtype
    vmem_limit, tile_budget = _budgets()

    TC2 = _pick_channel_tile(Cout2)
    nc = Cout2 // TC2
    isz = jnp.dtype(x.dtype).itemsize
    msz = jnp.dtype(mxu_dtype).itemsize
    per_row = (2 * W * Cin * isz            # body block (double-buffered)
               + 9 * W * Cin * msz          # shared im2col scratch
               + 3 * W * Cin * isz          # row-source temporaries
               + 4 * W * TC2 * isz          # output block (2 phases, double-buffered)
               + 2 * W * TC2 * 4)           # f32 accumulators
    weight_bytes = 2 * (2 * 6 * Cin * TC2 * msz + TC2 * 4)
    TH = _pick_row_tile(H, per_row, max(tile_budget - weight_bytes, tile_budget // 4), N)

    kern = functools.partial(_fused_up_conv_kernel, TH=TH, W=W, Cin=Cin, TC2=TC2,
                             mxu_dtype=mxu_dtype, guard_build=nc > 1)
    # TODO(synk): single-buffer the constant weight/bias blocks
    # (pipeline_mode=pl.Buffered(1)) if the double-buffered copy ever matters.
    out = pl.pallas_call(
        kern,
        out_shape=jax.ShapeDtypeStruct((N, H, 2, W, Cout2), x.dtype),
        grid_spec=pltpu.PrefetchScalarGridSpec(
            num_scalar_prefetch=0,
            grid=(N, H // TH, nc),
            in_specs=[
                pl.BlockSpec((1, TH, W, Cin), lambda n, r, c: (n, r, 0, 0)),
                pl.BlockSpec((1, 1, W, Cin),
                             lambda n, r, c: (n, jnp.maximum(r * TH - 1, 0), 0, 0)),
                pl.BlockSpec((1, 1, W, Cin),
                             lambda n, r, c: (n, jnp.minimum(r * TH + TH, H - 1), 0, 0)),
                pl.BlockSpec((2, 6 * Cin, TC2), lambda n, r, c: (0, 0, c)),
                pl.BlockSpec((1, TC2), lambda n, r, c: (0, c)),
            ],
            out_specs=pl.BlockSpec((1, TH, 2, W, TC2),
                                   lambda n, r, c: (n, r, 0, 0, c)),
            scratch_shapes=[pltpu.VMEM((TH, W, 9 * Cin), mxu_dtype)],
        ),
        compiler_params=pltpu.CompilerParams(
            dimension_semantics=("parallel", "parallel", "arbitrary"),
            vmem_limit_bytes=vmem_limit),
    )(x, x, x, w_fused, b_fused)
    # (N, H, 2, W, 2*Cout) -> (N, 2H, 2W, Cout) is a layout-preserving reshape.
    return out.reshape(N, 2 * H, 2 * W, Cout)


# ------------------------ 3x3 conv, stride 2, pad 1 --------------------------

def _conv3x3_s2_kernel(x_ref, top_ref, w_ref, b_ref, o_ref, col_ref,
                       *, TH, Wo, Cin, TC, mxu_dtype, guard_build):
    """One (n, row-tile, cout-tile) block of Conv2d(3x3, stride=2, padding=1).

    x_ref  : (1, TH, 2, Wo, 2*Cin)  input viewed as (row, row-parity, col, col-parity*C)
    top_ref: (1, 1, 1, Wo, 2*Cin)   odd plane of row r*TH-1 (zeroed at r == 0)
    w_ref  : (9*Cin, TC); b_ref: (1, TC); o_ref: (1, TH, Wo, TC)
    col_ref: (TH, Wo, 9*Cin)        im2col scratch (MXU dtype)
    """
    r = pl.program_id(1)

    def build_im2col():
        even = x_ref[0, :, 0, :, :]                  # input rows 2*y    (TH, Wo, 2*Cin)
        odd = x_ref[0, :, 1, :, :]                   # input rows 2*y + 1
        zrow = jnp.zeros((1, Wo, 2 * Cin), even.dtype)
        top = jnp.where(r > 0, top_ref[0, :, 0, :, :], zrow)   # input row 2*r*TH - 1
        if TH > 1:
            rs0 = jnp.concatenate([top, odd[:TH - 1]], axis=0)  # input rows 2*y - 1
        else:
            rs0 = top
        row_src = (rs0, even, odd)
        zcol = jnp.zeros((TH, 1, Cin), even.dtype)
        for p in range(3):
            z = row_src[p]
            for q in range(3):
                if q == 0:        # col 2*x - 1: odd lane-half, shifted (zero at x == 0)
                    tap = (jnp.concatenate([zcol, z[:, :Wo - 1, Cin:]], axis=1)
                           if Wo > 1 else zcol)
                elif q == 1:      # col 2*x: even lane-half
                    tap = z[:, :, :Cin]
                else:             # col 2*x + 1: odd lane-half
                    tap = z[:, :, Cin:]
                t = p * 3 + q
                col_ref[:, :, t * Cin:(t + 1) * Cin] = tap.astype(mxu_dtype)

    if guard_build:
        pl.when(pl.program_id(2) == 0)(build_im2col)
    else:
        build_im2col()

    a = col_ref[...].reshape(TH * Wo, 9 * Cin)
    acc = jnp.dot(a, w_ref[...], preferred_element_type=jnp.float32)
    acc = acc + b_ref[...].astype(jnp.float32)
    o_ref[0] = acc.reshape(TH, Wo, TC).astype(o_ref.dtype)


def conv2d_3x3_s2_pallas(x, w_flat, b):
    """Conv2d(Cin, Cout, 3, stride=2, padding=1).  x: (N, H, W, Cin) NHWC."""
    N, H, W, Cin = x.shape
    Cout = w_flat.shape[-1]
    # TODO(synk): odd H/W (supported by PyTorch Conv2d(stride=2, pad=1)) would
    # need a masked last row/col; this even-tiling scheme asserts even dims.
    assert H % 2 == 0 and W % 2 == 0, "stride-2 path assumes even spatial dims"
    Ho, Wo = H // 2, W // 2
    mxu_dtype = w_flat.dtype
    vmem_limit, tile_budget = _budgets()
    xr = x.reshape(N, Ho, 2, Wo, 2 * Cin)     # free row-major regroup, no HBM pad pass

    TC = _pick_channel_tile(Cout)
    nc = Cout // TC
    isz = jnp.dtype(x.dtype).itemsize
    msz = jnp.dtype(mxu_dtype).itemsize
    per_row = (2 * (2 * Wo * 2 * Cin) * isz   # body block rows (double-buffered)
               + 9 * Wo * Cin * msz           # im2col scratch
               + 3 * Wo * 2 * Cin * isz       # temporaries
               + 2 * Wo * TC * isz            # output block (double-buffered)
               + Wo * TC * 4)                 # f32 accumulator
    weight_bytes = 2 * (9 * Cin * TC * msz + TC * 4)
    TH = _pick_row_tile(Ho, per_row, max(tile_budget - weight_bytes, tile_budget // 4), N)

    kern = functools.partial(_conv3x3_s2_kernel, TH=TH, Wo=Wo, Cin=Cin, TC=TC,
                             mxu_dtype=mxu_dtype, guard_build=nc > 1)
    return pl.pallas_call(
        kern,
        out_shape=jax.ShapeDtypeStruct((N, Ho, Wo, Cout), x.dtype),
        grid_spec=pltpu.PrefetchScalarGridSpec(
            num_scalar_prefetch=0,
            grid=(N, Ho // TH, nc),
            in_specs=[
                pl.BlockSpec((1, TH, 2, Wo, 2 * Cin),
                             lambda n, r, c: (n, r, 0, 0, 0)),
                pl.BlockSpec((1, 1, 1, Wo, 2 * Cin),
                             lambda n, r, c: (n, jnp.maximum(r * TH - 1, 0), 1, 0, 0)),
                pl.BlockSpec((9 * Cin, TC), lambda n, r, c: (0, c)),
                pl.BlockSpec((1, TC), lambda n, r, c: (0, c)),
            ],
            out_specs=pl.BlockSpec((1, TH, Wo, TC), lambda n, r, c: (n, r, 0, c)),
            scratch_shapes=[pltpu.VMEM((TH, Wo, 9 * Cin), mxu_dtype)],
        ),
        compiler_params=pltpu.CompilerParams(
            dimension_semantics=("parallel", "parallel", "arbitrary"),
            vmem_limit_bytes=vmem_limit),
    )(xr, xr, w_flat, b.reshape(1, Cout))


# ------------------------------ avg-pool 2x2 ---------------------------------

def _avgpool_kernel(x_ref, o_ref, *, C):
    # x_ref: (1, THo, 2, Wo, 2C); row/col parity via int index + lane halves
    # (no strided reads).  Accumulate in float32.
    top = x_ref[0, :, 0, :, :].astype(jnp.float32)     # rows 2*y     (THo, Wo, 2C)
    bot = x_ref[0, :, 1, :, :].astype(jnp.float32)     # rows 2*y + 1
    s = top + bot
    o_ref[0] = ((s[:, :, :C] + s[:, :, C:]) * 0.25).astype(o_ref.dtype)


def avgpool_2x2_pallas(x):
    """AvgPool2d(kernel=2, stride=2).  x: (N, H, W, C) NHWC."""
    N, H, W, C = x.shape
    # TODO(synk): odd spatial dims (PyTorch floors the output size) are not handled.
    assert H % 2 == 0 and W % 2 == 0
    Ho, Wo = H // 2, W // 2
    vmem_limit, tile_budget = _budgets()
    xr = x.reshape(N, Ho, 2, Wo, 2 * C)       # free row-major regroup
    isz = jnp.dtype(x.dtype).itemsize
    per_row = 2 * (2 * Wo * 2 * C) * isz + 2 * Wo * C * isz + 3 * Wo * 2 * C * 4
    THo = _pick_row_tile(Ho, per_row, tile_budget, N)
    kern = functools.partial(_avgpool_kernel, C=C)
    return pl.pallas_call(
        kern,
        out_shape=jax.ShapeDtypeStruct((N, Ho, Wo, C), x.dtype),
        grid_spec=pltpu.PrefetchScalarGridSpec(
            num_scalar_prefetch=0,
            grid=(N, Ho // THo),
            in_specs=[pl.BlockSpec((1, THo, 2, Wo, 2 * C),
                                   lambda n, r: (n, r, 0, 0, 0))],
            out_specs=pl.BlockSpec((1, THo, Wo, C), lambda n, r: (n, r, 0, 0)),
        ),
        compiler_params=pltpu.CompilerParams(
            dimension_semantics=("parallel", "parallel"),
            vmem_limit_bytes=vmem_limit),
    )(xr)


# -------------------------- nearest upsample x2 ------------------------------

def _upsample_kernel(x_ref, o_ref):
    x = x_ref[0]                                   # (TH, W, C)
    xx = jnp.concatenate([x, x], axis=-1)          # (TH, W, 2C): packs the dx pair
    o_ref[0, :, 0, :, :] = xx
    o_ref[0, :, 1, :, :] = xx


def nearest_upsample_2x_pallas(x):
    """nn.Upsample(scale_factor=2, mode='nearest').  x: (N, H, W, C) NHWC."""
    N, H, W, C = x.shape
    vmem_limit, tile_budget = _budgets()
    isz = jnp.dtype(x.dtype).itemsize
    per_row = 2 * W * C * isz + 4 * W * 2 * C * isz + W * 2 * C * isz
    TH = _pick_row_tile(H, per_row, tile_budget, N)
    out = pl.pallas_call(
        _upsample_kernel,
        out_shape=jax.ShapeDtypeStruct((N, H, 2, W, 2 * C), x.dtype),
        grid_spec=pltpu.PrefetchScalarGridSpec(
            num_scalar_prefetch=0,
            grid=(N, H // TH),
            in_specs=[pl.BlockSpec((1, TH, W, C), lambda n, r: (n, r, 0, 0))],
            out_specs=pl.BlockSpec((1, TH, 2, W, 2 * C),
                                   lambda n, r: (n, r, 0, 0, 0)),
        ),
        compiler_params=pltpu.CompilerParams(
            dimension_semantics=("parallel", "parallel"),
            vmem_limit_bytes=vmem_limit),
    )(x)
    # (N, H, 2, W, 2C) -> (N, 2H, 2W, C) is a layout-preserving reshape (free).
    return out.reshape(N, 2 * H, 2 * W, C)


# --------------------------------- module ------------------------------------

class ResamplePallas:
    """JAX/Pallas port of the PyTorch Resample module (forward pass).

    Public API matches PyTorch (NCHW in / NCHW out); use `forward_nhwc` inside
    an NHWC pipeline to avoid the layout transposes.  `mxu_dtype` controls the
    matmul operand precision (bf16 by default; accumulation is always f32).
    """

    def __init__(self, in_dim, out_dim, scale_factor, use_conv=False, *,
                 key=None, mxu_dtype=jnp.bfloat16):
        assert scale_factor in (0.5, 1.0, 2.0)
        self.in_dim = in_dim
        self.out_dim = out_dim
        self.scale_factor = scale_factor
        self.use_conv = use_conv
        self.mxu_dtype = jnp.dtype(mxu_dtype)
        self.weight = None
        self.bias = None
        if use_conv and scale_factor in (0.5, 2.0):
            assert key is not None
            kw, kb = jax.random.split(key)
            fan_in = in_dim * 9
            bound = 1.0 / math.sqrt(fan_in)
            # PyTorch Conv2d weight is OIHW; keep an HWIO f32 master copy.
            w_oihw = jax.random.uniform(kw, (out_dim, in_dim, 3, 3),
                                        jnp.float32, -bound, bound)
            self.weight = jnp.transpose(w_oihw, (2, 3, 1, 0))              # HWIO
            self.bias = jax.random.uniform(kb, (out_dim,), jnp.float32, -bound, bound)
            if scale_factor == 2.0:
                # Fold nearest-upsample x2 into the conv: per output phase (dy, dx)
                # the 3 taps collapse onto 2 distinct input rows/cols.  One window
                # row is structurally zero per dy phase, so only rows {dy, dy+1}
                # are kept: K = 6*Cin (1.5x fewer MACs than the naive fold).
                A = jnp.array([[[1, 0, 0], [0, 1, 1], [0, 0, 0]],
                               [[0, 0, 0], [1, 1, 0], [0, 0, 1]]], jnp.float32)
                wph = jnp.einsum('apk,bql,klio->abpqio', A, A, self.weight)
                w_r = jnp.transpose(wph, (0, 2, 3, 4, 1, 5))    # (dy, P, Q, ci, dx, co)
                self._w_fused = jnp.stack(
                    [w_r[0, 0:2].reshape(6 * in_dim, 2 * out_dim),
                     w_r[1, 1:3].reshape(6 * in_dim, 2 * out_dim)],
                    axis=0).astype(self.mxu_dtype)
                self._b_fused = jnp.concatenate(
                    [self.bias, self.bias]).reshape(1, 2 * out_dim)
            else:
                self._w_flat = self.weight.reshape(
                    9 * in_dim, out_dim).astype(self.mxu_dtype)

    def forward_nhwc(self, x):
        if self.scale_factor == 2.0:
            if self.use_conv:
                return upsample2x_conv3x3_fused_pallas(x, self._w_fused, self._b_fused)
            return nearest_upsample_2x_pallas(x)
        if self.scale_factor == 0.5:
            if self.use_conv:
                return conv2d_3x3_s2_pallas(x, self._w_flat, self.bias)
            return avgpool_2x2_pallas(x)
        return x                                                    # Identity

    def __call__(self, x_nchw):
        if self.scale_factor == 1.0:
            return x_nchw
        x = jnp.transpose(x_nchw, (0, 2, 3, 1))                     # NCHW -> NHWC
        y = self.forward_nhwc(x)
        return jnp.transpose(y, (0, 3, 1, 2))                       # NHWC -> NCHW


# ---------------------------------- demo --------------------------------------

if __name__ == "__main__":
    key = jax.random.PRNGKey(0)
    kx, k1, k2 = jax.random.split(key, 3)
    x = jax.random.normal(kx, (2, 4, 16, 16), jnp.float32)          # NCHW
    x_nhwc = jnp.transpose(x, (0, 2, 3, 1))

    def ref_conv(xh, w_hwio, b, stride):
        y = jax.lax.conv_general_dilated(
            xh, w_hwio, window_strides=(stride, stride),
            padding=((1, 1), (1, 1)),
            dimension_numbers=("NHWC", "HWIO", "NHWC"))
        return y + b

    up_ref_nhwc = jnp.repeat(jnp.repeat(x_nhwc, 2, axis=1), 2, axis=2)

    # scale=2.0, use_conv=True  -> fused Upsample(nearest x2) + Conv2d(4,8,3,pad=1)
    m_up = ResamplePallas(4, 8, 2.0, use_conv=True, key=k1)          # bf16 MXU operands
    y_up = jax.block_until_ready(m_up(x))
    r_up = jnp.transpose(ref_conv(up_ref_nhwc, m_up.weight, m_up.bias, 1), (0, 3, 1, 2))
    assert y_up.shape == (2, 8, 32, 32)
    assert float(jnp.max(jnp.abs(y_up - r_up))) < 1e-1               # bf16 tolerance

    # same weights with f32 MXU operands -> tight check against the f32 reference
    m_up32 = ResamplePallas(4, 8, 2.0, use_conv=True, key=k1, mxu_dtype=jnp.float32)
    y_up32 = jax.block_until_ready(m_up32(x))
    assert float(jnp.max(jnp.abs(y_up32 - r_up))) < 1e-3

    # scale=0.5, use_conv=True  -> Conv2d(4, 8, 3, stride=2, pad=1)
    m_dn = ResamplePallas(4, 8, 0.5, use_conv=True, key=k2)
    y_dn = jax.block_until_ready(m_dn(x))
    r_dn = jnp.transpose(ref_conv(x_nhwc, m_dn.weight, m_dn.bias, 2), (0, 3, 1, 2))
    assert y_dn.shape == (2, 8, 8, 8)
    assert float(jnp.max(jnp.abs(y_dn - r_dn))) < 1e-1               # bf16 tolerance

    m_dn32 = ResamplePallas(4, 8, 0.5, use_conv=True, key=k2, mxu_dtype=jnp.float32)
    y_dn32 = jax.block_until_ready(m_dn32(x))
    assert float(jnp.max(jnp.abs(y_dn32 - r_dn))) < 1e-3

    # scale=0.5, use_conv=False -> AvgPool2d(2, 2)
    m_pool = ResamplePallas(4, 4, 0.5, use_conv=False)
    y_pool = jax.block_until_ready(m_pool(x))
    r_pool = jnp.transpose(jnp.mean(x_nhwc.reshape(2, 8, 2, 8, 2, 4), axis=(2, 4)),
                           (0, 3, 1, 2))
    assert y_pool.shape == (2, 4, 8, 8)
    assert float(jnp.max(jnp.abs(y_pool - r_pool))) < 1e-5

    # scale=2.0, use_conv=False -> nearest upsample only
    m_upn = ResamplePallas(4, 4, 2.0, use_conv=False)
    y_upn = jax.block_until_ready(m_upn(x))
    r_upn = jnp.transpose(up_ref_nhwc, (0, 3, 1, 2))
    assert y_upn.shape == (2, 4, 32, 32)
    assert float(jnp.max(jnp.abs(y_upn - r_upn))) < 1e-6

    # scale=1.0 -> Identity
    m_id = ResamplePallas(4, 4, 1.0, use_conv=False)
    y_id = jax.block_until_ready(m_id(x))
    assert float(jnp.max(jnp.abs(y_id - x))) < 1e-6

    print("KERNEL_OK")
</pallas_src>

<mosaic_0001>
module attributes {stable_mosaic.version = 11 : i64} {
  func.func @_fused_up_conv_kernel(%arg0: i32, %arg1: i32, %arg2: i32, %arg3: memref<1x16x16x4xf32, #tpu.memory_space<vmem>>, %arg4: memref<1x1x16x4xf32, #tpu.memory_space<vmem>>, %arg5: memref<1x1x16x4xf32, #tpu.memory_space<vmem>>, %arg6: memref<2x24x16xbf16, #tpu.memory_space<vmem>>, %arg7: memref<1x16xf32, #tpu.memory_space<vmem>>, %arg8: memref<1x16x2x16x16xf32, #tpu.memory_space<vmem>>, %arg9: memref<16x16x36xbf16, #tpu.memory_space<vmem>>) attributes {dimension_semantics = [#tpu.dimension_semantics<parallel>, #tpu.dimension_semantics<parallel>, #tpu.dimension_semantics<arbitrary>], iteration_bounds = array<i64: 2, 1, 1>, scalar_prefetch = 0 : i64, scratch_operands = 1 : i64, tpu.core_type = #tpu.core_type<tc>, window_params = [{transform_indices = @transform_0, window_bounds = array<i64: 1, 16, 16, 4>}, {transform_indices = @transform_1, window_bounds = array<i64: 1, 1, 16, 4>}, {transform_indices = @transform_2, window_bounds = array<i64: 1, 1, 16, 4>}, {transform_indices = @transform_3, window_bounds = array<i64: 2, 24, 16>}, {transform_indices = @transform_4, window_bounds = array<i64: 1, 16>}, {transform_indices = @transform_5, window_bounds = array<i64: 1, 16, 2, 16, 16>}]} {
    %c0 = arith.constant 0 : index
    %c0_0 = arith.constant 0 : index
    %c0_1 = arith.constant 0 : index
    %c0_2 = arith.constant 0 : index
    %0 = vector.load %arg3[%c0, %c0_0, %c0_1, %c0_2] : memref<1x16x16x4xf32, #tpu.memory_space<vmem>>, vector<1x16x16x4xf32>
    %1 = vector.shape_cast %0 : vector<1x16x16x4xf32> to vector<16x16x4xf32>
    %cst = arith.constant 0.000000e+00 : f32
    %2 = vector.broadcast %cst : f32 to vector<1x16x4xf32>
    %c0_i32 = arith.constant 0 : i32
    %3 = arith.cmpi sgt, %arg1, %c0_i32 : i32
    %c0_3 = arith.constant 0 : index
    %c0_4 = arith.constant 0 : index
    %c0_5 = arith.constant 0 : index
    %c0_6 = arith.constant 0 : index
    %4 = vector.load %arg4[%c0_3, %c0_4, %c0_5, %c0_6] : memref<1x1x16x4xf32, #tpu.memory_space<vmem>>, vector<1x1x16x4xf32>
    %5 = vector.shape_cast %4 : vector<1x1x16x4xf32> to vector<1x16x4xf32>
    %6 = arith.select %3, %5, %2 : vector<1x16x4xf32>
    %c0_i32_7 = arith.constant 0 : i32
    %7 = arith.cmpi slt, %arg1, %c0_i32_7 : i32
    %c0_8 = arith.constant 0 : index
    %c0_9 = arith.constant 0 : index
    %c0_10 = arith.constant 0 : index
    %c0_11 = arith.constant 0 : index
    %8 = vector.load %arg5[%c0_8, %c0_9, %c0_10, %c0_11] : memref<1x1x16x4xf32, #tpu.memory_space<vmem>>, vector<1x1x16x4xf32>
    %9 = vector.shape_cast %8 : vector<1x1x16x4xf32> to vector<1x16x4xf32>
    %10 = arith.select %7, %9, %2 : vector<1x16x4xf32>
    %11 = vector.extract_strided_slice %1 {offsets = [0, 0, 0], sizes = [15, 16, 4], strides = [1, 1, 1]} : vector<16x16x4xf32> to vector<15x16x4xf32>
    %12 = tpu.concatenate %6, %11 in 0 : vector<1x16x4xf32>, vector<15x16x4xf32> -> vector<16x16x4xf32>
    %13 = vector.extract_strided_slice %1 {offsets = [1, 0, 0], sizes = [15, 16, 4], strides = [1, 1, 1]} : vector<16x16x4xf32> to vector<15x16x4xf32>
    %14 = tpu.concatenate %13, %10 in 0 : vector<15x16x4xf32>, vector<1x16x4xf32> -> vector<16x16x4xf32>
    %cst_12 = arith.constant 0.000000e+00 : f32
    %15 = vector.broadcast %cst_12 : f32 to vector<16x1x4xf32>
    %16 = vector.extract_strided_slice %12 {offsets = [0, 0, 0], sizes = [16, 15, 4], strides = [1, 1, 1]} : vector<16x16x4xf32> to vector<16x15x4xf32>
    %17 = tpu.concatenate %15, %16 in 1 : vector<16x1x4xf32>, vector<16x15x4xf32> -> vector<16x16x4xf32>
    %18 = arith.truncf %17 : vector<16x16x4xf32> to vector<16x16x4xbf16>
    %c0_13 = arith.constant 0 : index
    %c0_14 = arith.constant 0 : index
    %c0_15 = arith.constant 0 : index
    %19 = vector.load %arg9[%c0_13, %c0_14, %c0_15] : memref<16x16x36xbf16, #tpu.memory_space<vmem>>, vector<16x16x4xbf16>
    tpu.vector_store %arg9[%c0_13, %c0_14, %c0_15], %18 {strides = array<i32>} : memref<16x16x36xbf16, #tpu.memory_space<vmem>>, vector<16x16x4xbf16>,
    %20 = arith.truncf %12 : vector<16x16x4xf32> to vector<16x16x4xbf16>
    %c0_16 = arith.constant 0 : index
    %c0_17 = arith.constant 0 : index
    %c4 = arith.constant 4 : index
    %21 = vector.load %arg9[%c0_16, %c0_17, %c4] : memref<16x16x36xbf16, #tpu.memory_space<vmem>>, vector<16x16x4xbf16>
    tpu.vector_store %arg9[%c0_16, %c0_17, %c4], %20 {strides = array<i32>} : memref<16x16x36xbf16, #tpu.memory_space<vmem>>, vector<16x16x4xbf16>,
    %22 = vector.extract_strided_slice %12 {offsets = [0, 1, 0], sizes = [16, 15, 4], strides = [1, 1, 1]} : vector<16x16x4xf32> to vector<16x15x4xf32>
    %23 = tpu.concatenate %22, %15 in 1 : vector<16x15x4xf32>, vector<16x1x4xf32> -> vector<16x16x4xf32>
    %24 = arith.truncf %23 : vector<16x16x4xf32> to vector<16x16x4xbf16>
    %c0_18 = arith.constant 0 : index
    %c0_19 = arith.constant 0 : index
    %c8 = arith.constant 8 : index
    %25 = vector.load %arg9[%c0_18, %c0_19, %c8] : memref<16x16x36xbf16, #tpu.memory_space<vmem>>, vector<16x16x4xbf16>
    tpu.vector_store %arg9[%c0_18, %c0_19, %c8], %24 {strides = array<i32>} : memref<16x16x36xbf16, #tpu.memory_space<vmem>>, vector<16x16x4xbf16>,
    %26 = vector.extract_strided_slice %1 {offsets = [0, 0, 0], sizes = [16, 15, 4], strides = [1, 1, 1]} : vector<16x16x4xf32> to vector<16x15x4xf32>
    %27 = tpu.concatenate %15, %26 in 1 : vector<16x1x4xf32>, vector<16x15x4xf32> -> vector<16x16x4xf32>
    %28 = arith.truncf %27 : vector<16x16x4xf32> to vector<16x16x4xbf16>
    %c0_20 = arith.constant 0 : index
    %c0_21 = arith.constant 0 : index
    %c12 = arith.constant 12 : index
    %29 = vector.load %arg9[%c0_20, %c0_21, %c12] : memref<16x16x36xbf16, #tpu.memory_space<vmem>>, vector<16x16x4xbf16>
    tpu.vector_store %arg9[%c0_20, %c0_21, %c12], %28 {strides = array<i32>} : memref<16x16x36xbf16, #tpu.memory_space<vmem>>, vector<16x16x4xbf16>,
    %30 = arith.truncf %1 : vector<16x16x4xf32> to vector<16x16x4xbf16>
    %c0_22 = arith.constant 0 : index
    %c0_23 = arith.constant 0 : index
    %c16 = arith.constant 16 : index
    %31 = vector.load %arg9[%c0_22, %c0_23, %c16] : memref<16x16x36xbf16, #tpu.memory_space<vmem>>, vector<16x16x4xbf16>
    tpu.vector_store %arg9[%c0_22, %c0_23, %c16], %30 {strides = array<i32>} : memref<16x16x36xbf16, #tpu.memory_space<vmem>>, vector<16x16x4xbf16>,
    %32 = vector.extract_strided_slice %1 {offsets = [0, 1, 0], sizes = [16, 15, 4], strides = [1, 1, 1]} : vector<16x16x4xf32> to vector<16x15x4xf32>
    %33 = tpu.concatenate %32, %15 in 1 : vector<16x15x4xf32>, vector<16x1x4xf32> -> vector<16x16x4xf32>
    %34 = arith.truncf %33 : vector<16x16x4xf32> to vector<16x16x4xbf16>
    %c0_24 = arith.constant 0 : index
    %c0_25 = arith.constant 0 : index
    %c20 = arith.constant 20 : index
    %35 = vector.load %arg9[%c0_24, %c0_25, %c20] : memref<16x16x36xbf16, #tpu.memory_space<vmem>>, vector<16x16x4xbf16>
    tpu.vector_store %arg9[%c0_24, %c0_25, %c20], %34 {strides = array<i32>} : memref<16x16x36xbf16, #tpu.memory_space<vmem>>, vector<16x16x4xbf16>,
    %36 = vector.extract_strided_slice %14 {offsets = [0, 0, 0], sizes = [16, 15, 4], strides = [1, 1, 1]} : vector<16x16x4xf32> to vector<16x15x4xf32>
    %37 = tpu.concatenate %15, %36 in 1 : vector<16x1x4xf32>, vector<16x15x4xf32> -> vector<16x16x4xf32>
    %38 = arith.truncf %37 : vector<16x16x4xf32> to vector<16x16x4xbf16>
    %c0_26 = arith.constant 0 : index
    %c0_27 = arith.constant 0 : index
    %c24 = arith.constant 24 : index
    %39 = vector.load %arg9[%c0_26, %c0_27, %c24] : memref<16x16x36xbf16, #tpu.memory_space<vmem>>, vector<16x16x4xbf16>
    tpu.vector_store %arg9[%c0_26, %c0_27, %c24], %38 {strides = array<i32>} : memref<16x16x36xbf16, #tpu.memory_space<vmem>>, vector<16x16x4xbf16>,
    %40 = arith.truncf %14 : vector<16x16x4xf32> to vector<16x16x4xbf16>
    %c0_28 = arith.constant 0 : index
    %c0_29 = arith.constant 0 : index
    %c28 = arith.constant 28 : index
    %41 = vector.load %arg9[%c0_28, %c0_29, %c28] : memref<16x16x36xbf16, #tpu.memory_space<vmem>>, vector<16x16x4xbf16>
    tpu.vector_store %arg9[%c0_28, %c0_29, %c28], %40 {strides = array<i32>} : memref<16x16x36xbf16, #tpu.memory_space<vmem>>, vector<16x16x4xbf16>,
    %42 = vector.extract_strided_slice %14 {offsets = [0, 1, 0], sizes = [16, 15, 4], strides = [1, 1, 1]} : vector<16x16x4xf32> to vector<16x15x4xf32>
    %43 = tpu.concatenate %42, %15 in 1 : vector<16x15x4xf32>, vector<16x1x4xf32> -> vector<16x16x4xf32>
    %44 = arith.truncf %43 : vector<16x16x4xf32> to vector<16x16x4xbf16>
    %c0_30 = arith.constant 0 : index
    %c0_31 = arith.constant 0 : index
    %c32 = arith.constant 32 : index
    %45 = vector.load %arg9[%c0_30, %c0_31, %c32] : memref<16x16x36xbf16, #tpu.memory_space<vmem>>, vector<16x16x4xbf16>
    tpu.vector_store %arg9[%c0_30, %c0_31, %c32], %44 {strides = array<i32>} : memref<16x16x36xbf16, #tpu.memory_space<vmem>>, vector<16x16x4xbf16>,
    %c0_32 = arith.constant 0 : index
    %c0_33 = arith.constant 0 : index
    %46 = vector.load %arg7[%c0_32, %c0_33] : memref<1x16xf32, #tpu.memory_space<vmem>>, vector<1x16xf32>
    %c0_34 = arith.constant 0 : index
    %c0_35 = arith.constant 0 : index
    %c0_36 = arith.constant 0 : index
    %47 = vector.load %arg9[%c0_34, %c0_35, %c0_36] : memref<16x16x36xbf16, #tpu.memory_space<vmem>>, vector<16x16x24xbf16>
    %48 = vector.shape_cast %47 : vector<16x16x24xbf16> to vector<256x24xbf16>
    %c0_37 = arith.constant 0 : index
    %c0_38 = arith.constant 0 : index
    %c0_39 = arith.constant 0 : index
    %49 = vector.load %arg6[%c0_37, %c0_38, %c0_39] : memref<2x24x16xbf16, #tpu.memory_space<vmem>>, vector<1x24x16xbf16>
    %50 = vector.shape_cast %49 : vector<1x24x16xbf16> to vector<24x16xbf16>
    %cst_40 = arith.constant dense<0.000000e+00> : vector<256x16xf32>
    %51 = tpu.matmul %48, %50, %cst_40 {dimension_numbers = #tpu.dot_dimension_numbers<[1], [0], [0], [1], [0, 0, 1, 1], [], []>} : vector<256x24xbf16>, vector<24x16xbf16>, vector<256x16xf32> -> vector<256x16xf32>
    %52 = vector.broadcast %46 : vector<1x16xf32> to vector<256x16xf32>
    %53 = arith.addf %51, %52 : vector<256x16xf32>
    %54 = vector.shape_cast %53 : vector<256x16xf32> to vector<16x16x16xf32>
    %c0_41 = arith.constant 0 : index
    %c0_42 = arith.constant 0 : index
    %c0_43 = arith.constant 0 : index
    %c0_44 = arith.constant 0 : index
    %c0_45 = arith.constant 0 : index
    %55 = vector.load %arg8[%c0_41, %c0_42, %c0_43, %c0_44, %c0_45] : memref<1x16x2x16x16xf32, #tpu.memory_space<vmem>>, vector<1x16x1x16x16xf32>
    %56 = vector.shape_cast %55 : vector<1x16x1x16x16xf32> to vector<16x16x16xf32>
    %57 = vector.shape_cast %54 : vector<16x16x16xf32> to vector<1x16x1x16x16xf32>
    tpu.vector_store %arg8[%c0_41, %c0_42, %c0_43, %c0_44, %c0_45], %57 {strides = array<i32>} : memref<1x16x2x16x16xf32, #tpu.memory_space<vmem>>, vector<1x16x1x16x16xf32>,
    %c0_46 = arith.constant 0 : index
    %c0_47 = arith.constant 0 : index
    %c12_48 = arith.constant 12 : index
    %58 = vector.load %arg9[%c0_46, %c0_47, %c12_48] : memref<16x16x36xbf16, #tpu.memory_space<vmem>>, vector<16x16x24xbf16>
    %59 = vector.shape_cast %58 : vector<16x16x24xbf16> to vector<256x24xbf16>
    %c1 = arith.constant 1 : index
    %c0_49 = arith.constant 0 : index
    %c0_50 = arith.constant 0 : index
    %60 = vector.load %arg6[%c1, %c0_49, %c0_50] : memref<2x24x16xbf16, #tpu.memory_space<vmem>>, vector<1x24x16xbf16>
    %61 = vector.shape_cast %60 : vector<1x24x16xbf16> to vector<24x16xbf16>
    %cst_51 = arith.constant dense<0.000000e+00> : vector<256x16xf32>
    %62 = tpu.matmul %59, %61, %cst_51 {dimension_numbers = #tpu.dot_dimension_numbers<[1], [0], [0], [1], [0, 0, 1, 1], [], []>} : vector<256x24xbf16>, vector<24x16xbf16>, vector<256x16xf32> -> vector<256x16xf32>
    %63 = vector.broadcast %46 : vector<1x16xf32> to vector<256x16xf32>
    %64 = arith.addf %62, %63 : vector<256x16xf32>
    %65 = vector.shape_cast %64 : vector<256x16xf32> to vector<16x16x16xf32>
    %c0_52 = arith.constant 0 : index
    %c0_53 = arith.constant 0 : index
    %c1_54 = arith.constant 1 : index
    %c0_55 = arith.constant 0 : index
    %c0_56 = arith.constant 0 : index
    %66 = vector.load %arg8[%c0_52, %c0_53, %c1_54, %c0_55, %c0_56] : memref<1x16x2x16x16xf32, #tpu.memory_space<vmem>>, vector<1x16x1x16x16xf32>
    %67 = vector.shape_cast %66 : vector<1x16x1x16x16xf32> to vector<16x16x16xf32>
    %68 = vector.shape_cast %65 : vector<16x16x16xf32> to vector<1x16x1x16x16xf32>
    tpu.vector_store %arg8[%c0_52, %c0_53, %c1_54, %c0_55, %c0_56], %68 {strides = array<i32>} : memref<1x16x2x16x16xf32, #tpu.memory_space<vmem>>, vector<1x16x1x16x16xf32>,
    return
  }
  func.func @transform_0(%arg0: i32, %arg1: i32, %arg2: i32) -> (i32, i32, i32, i32) {
    %c0_i32 = arith.constant 0 : i32
    %c0_i32_0 = arith.constant 0 : i32
    %c0_i32_1 = arith.constant 0 : i32
    return %arg0, %arg1, %c0_i32, %c0_i32_0 : i32, i32, i32, i32
  }
  func.func @transform_1(%arg0: i32, %arg1: i32, %arg2: i32) -> (i32, i32, i32, i32) {
    %c16_i32 = arith.constant 16 : i32
    %0 = arith.muli %arg1, %c16_i32 : i32
    %c1_i32 = arith.constant 1 : i32
    %1 = arith.subi %0, %c1_i32 : i32
    %c0_i32 = arith.constant 0 : i32
    %2 = arith.maxsi %1, %c0_i32 : i32
    %c0_i32_0 = arith.constant 0 : i32
    %c0_i32_1 = arith.constant 0 : i32
    %c0_i32_2 = arith.constant 0 : i32
    return %arg0, %2, %c0_i32_0, %c0_i32_1 : i32, i32, i32, i32
  }
  func.func @transform_2(%arg0: i32, %arg1: i32, %arg2: i32) -> (i32, i32, i32, i32) {
    %c16_i32 = arith.constant 16 : i32
    %0 = arith.muli %arg1, %c16_i32 : i32
    %c16_i32_0 = arith.constant 16 : i32
    %1 = arith.addi %0, %c16_i32_0 : i32
    %c15_i32 = arith.constant 15 : i32
    %2 = arith.minsi %1, %c15_i32 : i32
    %c0_i32 = arith.constant 0 : i32
    %c0_i32_1 = arith.constant 0 : i32
    %c0_i32_2 = arith.constant 0 : i32
    return %arg0, %2, %c0_i32, %c0_i32_1 : i32, i32, i32, i32
  }
  func.func @transform_3(%arg0: i32, %arg1: i32, %arg2: i32) -> (i32, i32, i32) {
    %c0_i32 = arith.constant 0 : i32
    %c0_i32_0 = arith.constant 0 : i32
    %c0_i32_1 = arith.constant 0 : i32
    return %c0_i32, %c0_i32_0, %arg2 : i32, i32, i32
  }
  func.func @transform_4(%arg0: i32, %arg1: i32, %arg2: i32) -> (i32, i32) {
    %c0_i32 = arith.constant 0 : i32
    %c0_i32_0 = arith.constant 0 : i32
    return %c0_i32, %arg2 : i32, i32
  }
  func.func @transform_5(%arg0: i32, %arg1: i32, %arg2: i32) -> (i32, i32, i32, i32, i32) {
    %c0_i32 = arith.constant 0 : i32
    %c0_i32_0 = arith.constant 0 : i32
    %c0_i32_1 = arith.constant 0 : i32
    return %arg0, %arg1, %c0_i32, %c0_i32_0, %arg2 : i32, i32, i32, i32, i32
  }
}

</mosaic_0001>

<bundles_post_ra>
// kernel: tpu_custom_call.1
= control target key start
LH: loop header
LB: loop body
LE: loop exit
PB: predicated region body
PF: predicated region fallthrough
CT: control target
= control target key end

     0   :  { %10 = vsyncpa [#allocation4], 0  ;;  %s4950_s0 = inlined_call_operand.vmem [shape: f32[2,16,16,4], index: 0, kind: input, shape index: {}]   ;;  %s4951_s1 = inlined_call_operand.vmem [shape: f32[2,16,16,4], index: 1, kind: input, shape index: {}]   ;;  %s4952_s2 = inlined_call_operand.vmem [shape: f32[2,16,16,4], index: 2, kind: input, shape index: {}]   ;;  %s4953_s3 = inlined_call_operand.vmem [shape: bf16[2,24,16], index: 3, kind: input, shape index: {}]   ;;  %s4954_s4 = inlined_call_operand.vmem [shape: f32[1,16], index: 4, kind: input, shape index: {}]   ;;  %s4955_s5 = inlined_call_operand.hbm [shape: f32[2,16,2,16,16], index: 5, kind: output, shape index: {}]  }
   0x1   :  { %12 = vsyncpa [#allocation4 + $0x1], 0  ;;  %s3266_s18 = smov 0   ;;  %s3268_s19 = smov 0  }
   0x2   :  { %s3270_s20 = smov 0   ;;  %s3272_s1 = smov 0  }
   0x3   :  { %s3274_s2 = smov 0   ;;  %s3276_s21 = smov 0  }
   0x4 LB: > { %s2811_s22 = sadd.s32 4294967295, %s3222_s21   ;;  %s2812_s23 = sadd.s32 4294967294, %s3222_s21   ;;  %s3222_s21 = sphi %s3276_s21, %s18_s21   ;;  %s3218_s2 = sphi %s3274_s2, %s5197_s2   ;;  %s3214_s1 = sphi %s3272_s1, %s5196_s1   ;;  %s3210_s20 = sphi %s3270_s20, %s5195_s20   ;;  %s3206_s19 = sphi %s3268_s19, %s5194_s19   ;;  %s3202_s18 = sphi %s3266_s18, %s5193_s18  }
   0x5   : > { %s37_s24 = sadd.s32 1, %s3218_s2  ;;  %s200_s25 = sadd.s32 1, %s3210_s20 }
   0x6   : > { %p39_p0 = scmp.ge.s32.totalorder %s37_s24, 2  ;;  %p210_p1 = scmp.ne.s32.totalorder %s3210_s20, %s3206_s19 }
   0x7   : > { %p211_p2 = scmp.eq.s32.totalorder %s2811_s22, 1  ;;  %p216_p3 = scmp.ne.s32.totalorder %s3206_s19, %s3202_s18 }
   0x8   : > { %s5199_s24 = smov (%p39_p0, %s37_s24), 0  ;;  %p217_p5 = scmp.eq.s32.totalorder %s2812_s23, 1 }
   0x9   : > { %p3306_p4 = por %p211_p2, %p210_p1  ;;  %s193_s27 = ssub.s32 %s3218_s2, %s5199_s24 }
   0xa   : > { %p2817_p6 = scmp.ge.s32.totalorder %s3222_s21, 1  ;;  %p198_p7 = scmp.eq.s32.totalorder %s193_s27, 0 }
   0xb   : > { %p3313_p8 = por %p217_p5, %p216_p3  ;;  %p302_p9 = scmp.lt.s32.totalorder %s3222_s21, 3 }
   0xc   : > { %s3319_s29 = scalar_select %p198_p7, %s3210_s20, %s200_s25  }
   0xd   : > { %p303_p10 = pnand %p2817_p6, %p302_p9 }
   0xf   : > { %306 = sbr.rel (%p303_p10) target bundleno = 1134 (0x46e), region = 40 }
  0x14   : > { %p369_p11 = scmp.lt.s32.totalorder %s3214_s1, 1  ;;  %v4956_v0 = vmov 0.0|0.0   ;;  %s3225_s30 = smov 4   ;;  %vm857_vm0 = vcmask 1046528   ;;  %v3226_v60 = vmov 0.0   ;;  %vm502_vm1 = vcmask 1040384  }
  0x15   : > { %728 = vrot.lane.b32.xlu0 %v4956_v0, %s3225_s30  ;;  %v858_v61 = vrot.slane %v3226_v60, 1  ;;  %v503_v63 = vrot.slane %v3226_v60, 7  ;;  %vm631_vm2 = vcmask 27648   ;;  %s3227_s11 = smov 8   ;;  %vm824_vm3 = vcmask 60448   ;;  %s3228_s12 = smov 12  }
  0x16   : > { %s370_s6 = scalar_select %p369_p11, %s3214_s1, 1  ;;  %vm1114_vm4 = vcmask 93248   ;;  %vm1285_vm5 = vcmask 126048   ;;  %vm1418_vm6 = vcmask 158848   ;;  %vm1557_vm7 = vcmask 191648  }
  0x17   : > { %s3229_s13 = smov 16   ;;  %s3230_s14 = smov 20   ;;  %vm1698_vm8 = vcmask 224448   ;;  %vm2180_vm9 = vcmask 1043456   ;;  %vm1831_vm10 = vcmask 257248   ;;  %vm1970_vm11 = vcmask 290048  }
  0x18   : > { %s3033_s7 = sshll.u32 %s370_s6, 8  ;;  %s3231_s15 = smov 24   ;;  %vm2131_vm12 = vcmask 195584   ;;  %vm2273_vm13 = vcmask 130048  }
  0x19   : > { %s3328_s10 = scalar_lea.vmem %s4950_s0, %s3033_s7  ;;  %s3232_s16 = smov 28  }
  0x1a   : > { %v3331_v1 = vld [vmem:[%s3328_s10] sm:$0xff]  ;;  %v3338_v3 = vld [vmem:[%s3328_s10 + $0x10] sm:$0xff]  ;;  %v3345_v4 = vld [vmem:[%s3328_s10 + $0x8] sm:$0xff]  ;;  %s3233_s17 = smov 32   ;;  %s3164_s9 = scalar_lea.hbm %s4955_s5, 1024 }
  0x1b   : > { %v3335_v2 = vpack.c.bf16 %v3331_v1, %v3331_v1  ;;  %v3348_v5 = vld [vmem:[%s3328_s10 + $0x20] sm:$0xff]  ;;  %v3352_v6 = vpack.c.bf16 %v3338_v3, %v3338_v3  ;;  %v3356_v7 = vpack.c.bf16 %v3345_v4, %v3345_v4  ;;  %v3365_v9 = vld [vmem:[%s3328_s10 + $0x18] sm:$0xff]  ;;  %v3376_v11 = vld [vmem:[%s3328_s10 + $0x28] sm:$0xff]  ;;  %v861_v37 = vrot.slane %v3331_v1, 1 }
  0x1c   : > { %v3360_v8 = vpack.c.bf16 %v3348_v5, %v3348_v5  ;;  %v3373_v10 = vpack.c.bf16 %v3365_v9, %v3365_v9  ;;  %v3379_v12 = vld [vmem:[%s3328_s10 + $0x38] sm:$0xff]  ;;  %v3383_v13 = vpack.c.bf16 %v3376_v11, %v3376_v11  ;;  %v3392_v15 = vld [vmem:[%s3328_s10 + $0x30] sm:$0xff]  ;;  %v3403_v17 = vld [vmem:[%s3328_s10 + $0x40] sm:$0xff]  ;;  %v4958_v38 = vrot.slane %v3345_v4, 1 }
  0x1d   : > { %732 = vrot.lane.b32.xlu1 %v3335_v2, %s3225_s30  ;;  %730 = vrot.lane.b32.xlu0 %v4956_v0, %s3225_s30  ;;  %v3387_v14 = vpack.c.bf16 %v3379_v12, %v3379_v12  ;;  %v3400_v16 = vpack.c.bf16 %v3392_v15, %v3392_v15  ;;  %v3406_v18 = vld [vmem:[%s3328_s10 + $0x50] sm:$0xff]  ;;  %v3410_v19 = vpack.c.bf16 %v3403_v17, %v3403_v17  ;;  %v3419_v21 = vld [vmem:[%s3328_s10 + $0x48] sm:$0xff]  ;;  %v583_v0 = vsel %vm502_vm1, 0.0, %v503_v63 }
  0x1e   : > { %736 = vrot.lane.b32.xlu2 %v3352_v6, %s3225_s30  ;;  %v3414_v20 = vpack.c.bf16 %v3406_v18, %v3406_v18  ;;  %v3427_v22 = vpack.c.bf16 %v3419_v21, %v3419_v21  ;;  %v3430_v23 = vld [vmem:[%s3328_s10 + $0x58] sm:$0xff]  ;;  %v3433_v24 = vld [vmem:[%s3328_s10 + $0x68] sm:$0xff]  ;;  %v3446_v27 = vld [vmem:[%s3328_s10 + $0x60] sm:$0xff]  ;;  %v863_v43 = vsel %vm857_vm0, %v861_v37, %v4958_v38  ;;  %v506_v60 = vrot.slane %v3331_v1, 7 }
  0x1f   : > { %v3437_v25 = vpack.c.bf16 %v3430_v23, %v3430_v23  ;;  %v3441_v26 = vpack.c.bf16 %v3433_v24, %v3433_v24  ;;  %v3454_v28 = vpack.c.bf16 %v3446_v27, %v3446_v27  ;;  %v3457_v29 = vld [vmem:[%s3328_s10 + $0x70] sm:$0xff]  ;;  %v3460_v30 = vld [vmem:[%s3328_s10 + $0x80] sm:$0xff]  ;;  %v3473_v33 = vld [vmem:[%s3328_s10 + $0x78] sm:$0xff] }
  0x20   : > { %v3464_v31 = vpack.c.bf16 %v3457_v29, %v3457_v29  ;;  %v3468_v32 = vpack.c.bf16 %v3460_v30, %v3460_v30  ;;  %v3481_v34 = vpack.c.bf16 %v3473_v33, %v3473_v33  ;;  %v3484_v35 = vld [vmem:[%s3328_s10 + $0x88] sm:$0xff]  ;;  %v3487_v36 = vld [vmem:[%s3328_s10 + $0x98] sm:$0xff]  ;;  %v3502_v41 = vld [vmem:[%s3328_s10 + $0x90] sm:$0xff]  ;;  %v584_v1 = vsel %vm502_vm1, 0.0, %v506_v60 }
  0x21   : > { %5058 = vst [vmem:[#allocation6_spill] sm:$0xff] %v3441_v26  ;;  %v3493_v39 = vpack.c.bf16 %v3484_v35, %v3484_v35  ;;  %v3497_v40 = vpack.c.bf16 %v3487_v36, %v3487_v36  ;;  %v3510_v42 = vpack.c.bf16 %v3502_v41, %v3502_v41  ;;  %v3516_v44 = vld [vmem:[%s3328_s10 + $0xa0] sm:$0xff]  ;;  %v3519_v45 = vld [vmem:[%s3328_s10 + $0xb0] sm:$0xff]  ;;  %v3532_v48 = vld [vmem:[%s3328_s10 + $0xa8] sm:$0xff] }
  0x22   : > { %5059 = vst [vmem:[#allocation7_spill] sm:$0xff] %v3454_v28  ;;  %v3523_v46 = vpack.c.bf16 %v3516_v44, %v3516_v44  ;;  %v3527_v47 = vpack.c.bf16 %v3519_v45, %v3519_v45  ;;  %v3540_v49 = vpack.c.bf16 %v3532_v48, %v3532_v48  ;;  %v3543_v50 = vld [vmem:[%s3328_s10 + $0xb8] sm:$0xff]  ;;  %v3546_v51 = vld [vmem:[%s3328_s10 + $0xc8] sm:$0xff]  ;;  %v3559_v54 = vld [vmem:[%s3328_s10 + $0xc0] sm:$0xff] }
  0x23   : > { %5060 = vst [vmem:[#allocation8_spill] sm:$0xff] %v3464_v31  ;;  %v3550_v52 = vpack.c.bf16 %v3543_v50, %v3543_v50  ;;  %v3554_v53 = vpack.c.bf16 %v3546_v51, %v3546_v51  ;;  %v3567_v55 = vpack.c.bf16 %v3559_v54, %v3559_v54  ;;  %v3570_v56 = vld [vmem:[%s3328_s10 + $0xd0] sm:$0xff]  ;;  %v3573_v57 = vld [vmem:[%s3328_s10 + $0xe0] sm:$0xff]  ;;  %v3586_v62 = vld [vmem:[%s3328_s10 + $0xd8] sm:$0xff] }
  0x24   : > { %5061 = vst [vmem:[#allocation9_spill] sm:$0xff] %v3468_v32  ;;  %v3577_v58 = vpack.c.bf16 %v3570_v56, %v3570_v56  ;;  %v3581_v59 = vpack.c.bf16 %v3573_v57, %v3573_v57  ;;  %v3594_v37 = vpack.c.bf16 %v3586_v62, %v3586_v62  ;;  %v3598_v38 = vld [vmem:[%s3328_s10 + $0xe8] sm:$0xff] }
  0x25   : > { %734 = vrot.lane.b32.xlu1 %v3356_v7, %s3225_s30  ;;  %740 = vrot.lane.b32.xlu0 %v3360_v8, %s3225_s30  ;;  %5062 = vst [vmem:[#allocation10_spill] sm:$0xff] %v3481_v34 }
  0x26   : > { %738 = vrot.lane.b32.xlu2 %v3373_v10, %s3225_s30  ;;  %5063 = vst [vmem:[#allocation11_spill] sm:$0xff] %v3493_v39 }
  0x27   : > { %5064 = vst [vmem:[#allocation12_spill] sm:$0xff] %v3497_v40 }
  0x28   : > { %5065 = vst [vmem:[#allocation13_spill] sm:$0xff] %v3523_v46 }
  0x29   : > { %5066 = vst [vmem:[#allocation14_spill] sm:$0xff] %v3527_v47 }
  0x2a   : > { %5067 = vst [vmem:[#allocation15_spill] sm:$0xff] %v3540_v49 }
  0x2b   : > { %5068 = vst [vmem:[#allocation16_spill] sm:$0xff] %v3550_v52 }
  0x2c   : > { %5069 = vst [vmem:[#allocation17_spill] sm:$0xff] %v3554_v53 }
  0x2d   : > { %742 = vrot.lane.b32.xlu1 %v3383_v13, %s3225_s30  ;;  %746 = vrot.lane.b32.xlu0 %v3387_v14, %s3225_s30  ;;  %5070 = vst [vmem:[#allocation18_spill] sm:$0xff] %v3567_v55 }
  0x2e   : > { %744 = vrot.lane.b32.xlu2 %v3400_v16, %s3225_s30  ;;  %5071 = vst [vmem:[#allocation19_spill] sm:$0xff] %v3577_v58 }
  0x2f   : > { %5072 = vst [vmem:[#allocation20_spill] sm:$0xff] %v3581_v59 }
  0x30   : > { %5073 = vst [vmem:[#allocation21_spill] sm:$0xff] %v3594_v37 }
  0x35   : > { %748 = vrot.lane.b32.xlu1 %v3410_v19, %s3225_s30  ;;  %752 = vrot.lane.b32.xlu0 %v3414_v20, %s3225_s30 }
  0x36   : > { %750 = vrot.lane.b32.xlu2 %v3427_v22, %s3225_s30 }
  0x3d   : > { %754 = vrot.lane.b32.xlu1 %v3437_v25, %s3225_s30  ;;  %758 = vrot.lane.b32.xlu0 %v3441_v26, %s3225_s30 }
  0x3e   : > { %756 = vrot.lane.b32.xlu2 %v3454_v28, %s3225_s30 }
  0x45   : > { %760 = vrot.lane.b32.xlu1 %v3464_v31, %s3225_s30  ;;  %764 = vrot.lane.b32.xlu0 %v3468_v32, %s3225_s30 }
  0x46   : > { %762 = vrot.lane.b32.xlu2 %v3481_v34, %s3225_s30 }
  0x4d   : > { %766 = vrot.lane.b32.xlu1 %v3493_v39, %s3225_s30  ;;  %770 = vrot.lane.b32.xlu0 %v3497_v40, %s3225_s30  ;;  %v3641_v39 = vpack.c.bf16 %v863_v43, %v863_v43 }
  0x4e   : > { %768 = vrot.lane.b32.xlu2 %v3510_v42, %s3225_s30 }
  0x4f   : > { %5079 = vst [vmem:[#allocation27_spill] sm:$0xff] %v3641_v39 }
  0x55   : > { %772 = vrot.lane.b32.xlu1 %v3523_v46, %s3225_s30  ;;  %776 = vrot.lane.b32.xlu0 %v3527_v47, %s3225_s30  ;;  %v509_v47 = vrot.slane %v3338_v3, 7  ;;  %v867_v46 = vrot.slane %v3348_v5, 1 }
  0x56   : > { %774 = vrot.lane.b32.xlu2 %v3540_v49, %s3225_s30 }
  0x5d   : > { %778 = vrot.lane.b32.xlu1 %v3550_v52, %s3225_s30  ;;  %782 = vrot.lane.b32.xlu0 %v3554_v53, %s3225_s30  ;;  %v938_v53 = vsel %vm857_vm0, %v858_v61, 0.0  ;;  %v3601_v52 = vpack.c.bf16 %v583_v0, %v583_v0  ;;  %v865_v0 = vrot.slane %v3365_v9, 1 }
  0x5e   : > { %780 = vrot.lane.b32.xlu2 %v3567_v55, %s3225_s30  ;;  %v864_v55 = vrot.slane %v3338_v3, 1  ;;  %v3629_v3 = vpack.c.bf16 %v503_v63, %v503_v63  ;;  %v5081_v63 = vrot.slane %v3345_v4, 1 }
  0x5f   : > { %5074 = vst [vmem:[#allocation22_spill] sm:$0xff] %v3601_v52 }
  0x60   : > { %632 = vst.msk [vmem:[#allocation2] sm:$0xf] %vm631_vm2, %v3601_v52  ;;  %v3624_v52 = vpack.c.bf16 %v584_v1, %v584_v1  ;;  %v866_v49 = vsel %vm857_vm0, %v864_v55, %v865_v0  ;;  %v512_v1 = vrot.slane %v3348_v5, 7 }
  0x61   : > { %5078 = vst [vmem:[#allocation26_spill] sm:$0xff] %v3629_v3  ;;  %v3643_v55 = vpack.c.bf16 %v866_v49, %v866_v49 }
  0x62   : > { %634 = vst.msk [vmem:[#allocation2 + $0x8] sm:$0xf] %vm631_vm2, %v3624_v52  ;;  %v586_v49 = vsel %vm502_vm1, 0.0, %v512_v1 }
  0x63   : > { %633 = vst.msk [vmem:[#allocation2 + $0x4] sm:$0xf] %vm631_vm2, %v3629_v3 }
  0x64   : > { %5080 = vst [vmem:[#allocation28_spill] sm:$0xff] %v3643_v55 }
  0x65   : > { %784 = vrot.lane.b32.xlu1 %v3577_v58, %s3225_s30  ;;  %788 = vrot.lane.b32.xlu0 %v3581_v59, %s3225_s30  ;;  %v3608_v59 = vpack.c.bf16 %v3598_v38, %v3598_v38  ;;  %v3610_v58 = vpack.c.bf16 %v938_v53, %v938_v53  ;;  %v3622_v53 = vpack.c.bf16 %v858_v61, %v858_v61  ;;  %v868_v61 = vrot.slane %v3376_v11, 1 }
  0x66   : > { %786 = vrot.lane.b32.xlu2 %v3594_v37, %s3225_s30  ;;  %v585_v37 = vsel %vm502_vm1, 0.0, %v509_v47 }
  0x67   : > { %5075 = vst [vmem:[#allocation23_spill] sm:$0xff] %v3608_v59  ;;  %v3631_v40 = vpack.c.bf16 %v585_v37, %v585_v37  ;;  %v939_v37 = vsel %vm857_vm0, %v5081_v63, 0.0  ;;  %v869_v3 = vsel %vm857_vm0, %v867_v46, %v868_v61  ;;  %v940_v63 = vsel %vm857_vm0, %v865_v0, 0.0 }
  0x68   : > { %5076 = vst [vmem:[#allocation24_spill] sm:$0xff] %v3610_v58  ;;  %v941_v46 = vsel %vm857_vm0, %v868_v61, 0.0  ;;  %v873_v0 = vrot.slane %v3403_v17, 1  ;;  %v874_v61 = vrot.slane %v3419_v21, 1 }
  0x69   : > { %5077 = vst [vmem:[#allocation25_spill] sm:$0xff] %v3622_v53 }
  0x6a   : > { %636 = vst.msk [vmem:[#allocation2 + $0x10] sm:$0xf] %vm631_vm2, %v3631_v40 }
  0x6d   : > { %790 = vrot.lane.b32.xlu1 %v3608_v59, %s3225_s30  ;;  %1020 = vrot.lane.b32.xlu0 %v3610_v58, %s3227_s11  ;;  %v507_v59 = vrot.slane %v3345_v4, 7  ;;  %v510_v58 = vrot.slane %v3365_v9, 7  ;;  %v3658_v9 = vpack.c.bf16 %v939_v37, %v939_v37  ;;  %v516_v37 = vrot.slane %v3379_v12, 7  ;;  %s3234_s30 = smov 116  }
  0x6e   : > { %1018 = vrot.lane.b32.xlu2 %v3622_v53, %s3227_s11  ;;  %v3666_v53 = vpack.c.bf16 %v586_v49, %v586_v49 }
  0x6f   : > { %v508_v5 = vsel %vm502_vm1, %v506_v60, %v507_v59  ;;  %5082 = vst [vmem:[#allocation29_spill] sm:$0xff] %v3658_v9  ;;  %v511_v4 = vsel %vm502_vm1, %v509_v47, %v510_v58  ;;  %v513_v60 = vrot.slane %v3376_v11, 7  ;;  %v3678_v47 = vpack.c.bf16 %v941_v46, %v941_v46 }
  0x70   : > { %v3660_v43 = vpack.c.bf16 %v508_v5, %v508_v5  ;;  %v3668_v59 = vpack.c.bf16 %v511_v4, %v511_v4  ;;  %638 = vst.msk [vmem:[#allocation2 + $0x18] sm:$0xf] %vm631_vm2, %v3666_v53  ;;  %v3676_v5 = vpack.c.bf16 %v940_v63, %v940_v63  ;;  %v871_v58 = vrot.slane %v3379_v12, 1 }
  0x71   : > { %5084 = vst [vmem:[#allocation31_spill] sm:$0xff] %v3678_v47  ;;  %v870_v11 = vrot.slane %v3392_v15, 1  ;;  %v515_v4 = vrot.slane %v3392_v15, 7  ;;  %v514_v63 = vsel %vm502_vm1, %v512_v1, %v513_v60  ;;  %v3695_v12 = vpack.c.bf16 %v869_v3, %v869_v3 }
  0x72   : > { %635 = vst.msk [vmem:[#allocation2 + $0xc] sm:$0xf] %vm631_vm2, %v3660_v43  ;;  %v3697_v46 = vpack.c.bf16 %v514_v63, %v514_v63  ;;  %v521_v3 = vrot.slane %v3406_v18, 7  ;;  %v519_v60 = vrot.slane %v3419_v21, 7  ;;  %v876_v63 = vrot.slane %v3406_v18, 1 }
  0x73   : > { %5083 = vst [vmem:[#allocation30_spill] sm:$0xff] %v3676_v5  ;;  %v872_v15 = vsel %vm857_vm0, %v870_v11, %v871_v58  ;;  %v943_v18 = vsel %vm857_vm0, %v874_v61, 0.0 }
  0x74   : > { %637 = vst.msk [vmem:[#allocation2 + $0x14] sm:$0xf] %vm631_vm2, %v3668_v59 }
  0x75   : > { %1022 = vrot.lane.b32.xlu1 %v3641_v39, %s3227_s11  ;;  %1026 = vrot.lane.b32.xlu0 %v3643_v55, %s3227_s11  ;;  %5085 = vst [vmem:[#allocation32_spill] sm:$0xff] %v3695_v12  ;;  %v517_v55 = vsel %vm502_vm1, %v515_v4, %v516_v37  ;;  %v587_v39 = vsel %vm502_vm1, 0.0, %v515_v4  ;;  %v3713_v37 = vpack.c.bf16 %v872_v15, %v872_v15 }
  0x76   : > { %1024 = vrot.lane.b32.xlu2 %v3658_v9, %s3227_s11  ;;  %v3703_v9 = vpack.c.bf16 %v517_v55, %v517_v55  ;;  %v3705_v1 = vpack.c.bf16 %v587_v39, %v587_v39  ;;  %639 = vst.msk [vmem:[#allocation2 + $0x1c] sm:$0xf] %vm631_vm2, %v3697_v46  ;;  %v877_v39 = vrot.slane %v3430_v23, 1  ;;  %v942_v55 = vsel %vm857_vm0, %v871_v58, 0.0 }
  0x77   : > { %5086 = vst [vmem:[#allocation33_spill] sm:$0xff] %v3713_v37  ;;  %v3731_v15 = vpack.c.bf16 %v942_v55, %v942_v55  ;;  %v589_v58 = vsel %vm502_vm1, 0.0, %v521_v3  ;;  %v522_v55 = vrot.slane %v3430_v23, 7  ;;  %v879_v23 = vrot.slane %v3446_v27, 1 }
  0x78   : > { %v737_v49 = vpop.permute.xlu2 %736  ;;  %641 = vst.msk [vmem:[#allocation2 + $0x24] sm:$0xf] %vm631_vm2, %v3703_v9 }
  0x79   : > { %829 = vst.msk [vmem:[#allocation2 + $0x10] sm:$0xf] %vm824_vm3, %v737_v49  ;;  %v875_v49 = vsel %vm857_vm0, %v873_v0, %v874_v61  ;;  %v518_v0 = vrot.slane %v3403_v17, 7 }
  0x7a   : > { %v3715_v4 = vpack.c.bf16 %v875_v49, %v875_v49  ;;  %640 = vst.msk [vmem:[#allocation2 + $0x20] sm:$0xf] %vm631_vm2, %v3705_v1 }
  0x7b   : > { %v588_v21 = vsel %vm502_vm1, 0.0, %v518_v0  ;;  %5088 = vst [vmem:[#allocation35_spill] sm:$0xff] %v3731_v15  ;;  %v520_v17 = vsel %vm502_vm1, %v518_v0, %v519_v60  ;;  %v880_v60 = vrot.slane %v3433_v24, 1  ;;  %v3749_v0 = vpack.c.bf16 %v943_v18, %v943_v18 }
  0x7c   : > { %5087 = vst [vmem:[#allocation34_spill] sm:$0xff] %v3715_v4  ;;  %v3733_v49 = vpack.c.bf16 %v588_v21, %v588_v21  ;;  %v525_v21 = vrot.slane %v3433_v24, 7  ;;  %v524_v18 = vrot.slane %v3446_v27, 7 }
  0x7d   : > { %1028 = vrot.lane.b32.xlu1 %v3676_v5, %s3227_s11  ;;  %1032 = vrot.lane.b32.xlu0 %v3678_v47, %s3227_s11  ;;  %v3739_v47 = vpack.c.bf16 %v589_v58, %v589_v58  ;;  %v3741_v5 = vpack.c.bf16 %v520_v17, %v520_v17  ;;  %5089 = vst [vmem:[#allocation36_spill] sm:$0xff] %v3749_v0  ;;  %v882_v58 = vrot.slane %v3457_v29, 1 }
  0x7e   : > { %1030 = vrot.lane.b32.xlu2 %v3695_v12, %s3227_s11  ;;  %642 = vst.msk [vmem:[#allocation2 + $0x28] sm:$0xf] %vm631_vm2, %v3733_v49  ;;  %v878_v17 = vsel %vm857_vm0, %v876_v63, %v877_v39  ;;  %v590_v63 = vsel %vm502_vm1, 0.0, %v524_v18  ;;  %v881_v27 = vsel %vm857_vm0, %v879_v23, %v880_v60 }
  0x7f   : > { %644 = vst.msk [vmem:[#allocation2 + $0x30] sm:$0xf] %vm631_vm2, %v3739_v47  ;;  %v3788_v23 = vpack.c.bf16 %v881_v27, %v881_v27 }
  0x80   : > { %v739_v11 = vpop.permute.xlu2 %738  ;;  %643 = vst.msk [vmem:[#allocation2 + $0x2c] sm:$0xf] %vm631_vm2, %v3741_v5 }
  0x81   : > { %830 = vst.msk [vmem:[#allocation2 + $0x14] sm:$0xf] %vm824_vm3, %v739_v11  ;;  %v944_v11 = vsel %vm857_vm0, %v877_v39, 0.0  ;;  %v526_v39 = vsel %vm502_vm1, %v524_v18, %v525_v21  ;;  %v528_v21 = vrot.slane %v3473_v33, 7  ;;  %v886_v18 = vrot.slane %v3484_v35, 1 }
  0x82   : > { %v3751_v61 = vpack.c.bf16 %v944_v11, %v944_v11  ;;  %v523_v11 = vsel %vm502_vm1, %v521_v3, %v522_v55  ;;  %v3778_v12 = vpack.c.bf16 %v526_v39, %v526_v39  ;;  %5094 = vst [vmem:[#allocation41_spill] sm:$0xff] %v3788_v23  ;;  %v527_v39 = vrot.slane %v3457_v29, 7 }
  0x84   : > { %5090 = vst [vmem:[#allocation37_spill] sm:$0xff] %v3751_v61 }
  0x85   : > { %1034 = vrot.lane.b32.xlu1 %v3713_v37, %s3227_s11  ;;  %1038 = vrot.lane.b32.xlu0 %v3715_v4, %s3227_s11  ;;  %v3770_v4 = vpack.c.bf16 %v878_v17, %v878_v17  ;;  %5092 = vst [vmem:[#allocation39_spill] sm:$0xff] %v3778_v12  ;;  %v530_v17 = vrot.slane %v3460_v30, 7 }
  0x86   : > { %1036 = vrot.lane.b32.xlu2 %v3731_v15, %s3227_s11  ;;  %v3772_v15 = vpack.c.bf16 %v523_v11, %v523_v11  ;;  %v945_v11 = vsel %vm857_vm0, %v880_v60, 0.0  ;;  %647 = vst.msk [vmem:[#allocation2 + $0x3c] sm:$0xf] %vm631_vm2, %v3778_v12 }
  0x87   : > { %v729_v37 = vpop.permute.xlu0 %728  ;;  %5091 = vst [vmem:[#allocation38_spill] sm:$0xff] %v3770_v4  ;;  %v3807_v60 = vpack.c.bf16 %v945_v11, %v945_v11  ;;  %v592_v29 = vsel %vm502_vm1, 0.0, %v530_v17 }
  0x88   : > { %825 = vst.msk [vmem:[#allocation2] sm:$0xf] %vm824_vm3, %v729_v37  ;;  %v883_v37 = vrot.slane %v3473_v33, 1  ;;  %v745_v24 = vpop.permute.xlu2 %744  ;;  %v591_v33 = vsel %vm502_vm1, 0.0, %v527_v39 }
  0x89   : > { %833 = vst.msk [vmem:[#allocation2 + $0x20] sm:$0xf] %vm824_vm3, %v745_v24  ;;  %v3809_v27 = vpack.c.bf16 %v591_v33, %v591_v33  ;;  %v531_v33 = vrot.slane %v3484_v35, 7  ;;  %v892_v35 = vrot.slane %v3532_v48, 1 }
  0x8a   : > { %v884_v24 = vsel %vm857_vm0, %v882_v58, %v883_v37  ;;  %645 = vst.msk [vmem:[#allocation2 + $0x34] sm:$0xf] %vm631_vm2, %v3772_v15 }
  0x8b   : > { %v3790_v58 = vpack.c.bf16 %v884_v24, %v884_v24  ;;  %5096 = vst [vmem:[#allocation43_spill] sm:$0xff] %v3807_v60  ;;  %v529_v24 = vsel %vm502_vm1, %v527_v39, %v528_v21  ;;  %v534_v21 = vrot.slane %v3487_v36, 7 }
  0x8c   : > { %5097 = vst [vmem:[#allocation44_spill] sm:$0xff] %v3809_v27  ;;  %v3820_v11 = vpack.c.bf16 %v529_v24, %v529_v24  ;;  %v888_v24 = vrot.slane %v3502_v41, 1 }
  0x8d   : > { %1040 = vrot.lane.b32.xlu1 %v3749_v0, %s3227_s11  ;;  %1044 = vrot.lane.b32.xlu0 %v3751_v61, %s3227_s11  ;;  %v3782_v61 = vpack.c.bf16 %v590_v63, %v590_v63  ;;  %5095 = vst [vmem:[#allocation42_spill] sm:$0xff] %v3790_v58  ;;  %v3816_v0 = vpack.c.bf16 %v592_v29, %v592_v29  ;;  %v891_v29 = vrot.slane %v3516_v44, 1 }
  0x8e   : > { %1042 = vrot.lane.b32.xlu2 %v3770_v4, %s3227_s11  ;;  %648 = vst.msk [vmem:[#allocation2 + $0x40] sm:$0xf] %vm631_vm2, %v3809_v27 }
  0x8f   : > { %v733_v3 = vpop.permute.xlu1 %732  ;;  %v731_v55 = vpop.permute.xlu0 %730  ;;  %5093 = vst [vmem:[#allocation40_spill] sm:$0xff] %v3782_v61 }
  0x90   : > { %827 = vst.msk [vmem:[#allocation2 + $0x8] sm:$0xf] %vm824_vm3, %v733_v3  ;;  %v751_v63 = vpop.permute.xlu2 %750  ;;  %v885_v3 = vrot.slane %v3460_v30, 1  ;;  %v889_v30 = vrot.slane %v3487_v36, 1 }
  0x91   : > { %826 = vst.msk [vmem:[#allocation2 + $0x4] sm:$0xf] %vm824_vm3, %v731_v55  ;;  %v946_v55 = vsel %vm857_vm0, %v883_v37, 0.0 }
  0x92   : > { %646 = vst.msk [vmem:[#allocation2 + $0x38] sm:$0xf] %vm631_vm2, %v3782_v61  ;;  %v3827_v37 = vpack.c.bf16 %v946_v55, %v946_v55  ;;  %v532_v55 = vsel %vm502_vm1, %v530_v17, %v531_v33 }
  0x93   : > { %836 = vst.msk [vmem:[#allocation2 + $0x2c] sm:$0xf] %vm824_vm3, %v751_v63  ;;  %v947_v63 = vsel %vm857_vm0, %v886_v18, 0.0 }
  0x94   : > { %5098 = vst [vmem:[#allocation45_spill] sm:$0xff] %v3816_v0  ;;  %v3829_v39 = vpack.c.bf16 %v947_v63, %v947_v63 }
  0x95   : > { %1046 = vrot.lane.b32.xlu1 %v3788_v23, %s3227_s11  ;;  %1050 = vrot.lane.b32.xlu0 %v3790_v58, %s3227_s11  ;;  %5099 = vst [vmem:[#allocation46_spill] sm:$0xff] %v3820_v11 }
  0x96   : > { %5100 = vst [vmem:[#allocation47_spill] sm:$0xff] %v3827_v37  ;;  %1048 = vrot.lane.b32.xlu2 %v3807_v60, %s3227_s11 }
  0x97   : > { %v735_v23 = vpop.permute.xlu1 %734  ;;  %v741_v4 = vpop.permute.xlu0 %740  ;;  %5101 = vst [vmem:[#allocation48_spill] sm:$0xff] %v3829_v39 }
  0x98   : > { %828 = vst.msk [vmem:[#allocation2 + $0xc] sm:$0xf] %vm824_vm3, %v735_v23  ;;  %v887_v23 = vsel %vm857_vm0, %v885_v3, %v886_v18  ;;  %v757_v36 = vpop.permute.xlu2 %756  ;;  %v3850_v3 = vpack.c.bf16 %v532_v55, %v532_v55  ;;  %v536_v55 = vrot.slane %v3516_v44, 7 }
  0x99   : > { %831 = vst.msk [vmem:[#allocation2 + $0x18] sm:$0xf] %vm824_vm3, %v741_v4  ;;  %v533_v4 = vrot.slane %v3502_v41, 7  ;;  %v3848_v18 = vpack.c.bf16 %v887_v23, %v887_v23  ;;  %v890_v41 = vsel %vm857_vm0, %v888_v24, %v889_v30  ;;  %v539_v23 = vrot.slane %v3519_v45, 7 }
  0x9a   : > { %650 = vst.msk [vmem:[#allocation2 + $0x48] sm:$0xf] %vm631_vm2, %v3816_v0  ;;  %v3866_v24 = vpack.c.bf16 %v890_v41, %v890_v41 }
  0x9b   : > { %649 = vst.msk [vmem:[#allocation2 + $0x44] sm:$0xf] %vm631_vm2, %v3820_v11  ;;  %v535_v63 = vsel %vm502_vm1, %v533_v4, %v534_v21  ;;  %v593_v58 = vsel %vm502_vm1, 0.0, %v533_v4  ;;  %v537_v21 = vrot.slane %v3532_v48, 7  ;;  %v895_v4 = vrot.slane %v3543_v50, 1 }
  0x9c   : > { %839 = vst.msk [vmem:[#allocation2 + $0x38] sm:$0xf] %vm824_vm3, %v757_v36  ;;  %v893_v36 = vsel %vm857_vm0, %v891_v29, %v892_v35  ;;  %v3856_v60 = vpack.c.bf16 %v535_v63, %v535_v63  ;;  %v594_v48 = vsel %vm502_vm1, 0.0, %v536_v55  ;;  %v595_v44 = vsel %vm502_vm1, 0.0, %v539_v23 }
  0x9d   : > { %1052 = vrot.lane.b32.xlu1 %v3827_v37, %s3227_s11  ;;  %1056 = vrot.lane.b32.xlu0 %v3829_v39, %s3227_s11  ;;  %5102 = vst [vmem:[#allocation49_spill] sm:$0xff] %v3848_v18  ;;  %v3860_v39 = vpack.c.bf16 %v593_v58, %v593_v58  ;;  %v3868_v29 = vpack.c.bf16 %v893_v36, %v893_v36  ;;  %v948_v58 = vsel %vm857_vm0, %v889_v30, 0.0 }
  0x9e   : > { %5103 = vst [vmem:[#allocation50_spill] sm:$0xff] %v3850_v3  ;;  %1054 = vrot.lane.b32.xlu2 %v3848_v18, %s3227_s11  ;;  %v3885_v30 = vpack.c.bf16 %v948_v58, %v948_v58  ;;  %v3887_v41 = vpack.c.bf16 %v594_v48, %v594_v48  ;;  %v538_v36 = vsel %vm502_vm1, %v536_v55, %v537_v21  ;;  %v540_v48 = vrot.slane %v3543_v50, 7 }
  0x9f   : > { %v743_v17 = vpop.permute.xlu1 %742  ;;  %v747_v33 = vpop.permute.xlu0 %746  ;;  %651 = vst.msk [vmem:[#allocation2 + $0x4c] sm:$0xf] %vm631_vm2, %v3850_v3  ;;  %v3894_v37 = vpack.c.bf16 %v595_v44, %v595_v44  ;;  %v3898_v58 = vpack.c.bf16 %v538_v36, %v538_v36  ;;  %v543_v21 = vrot.slane %v3546_v51, 7  ;;  %v900_v44 = vrot.slane %v3570_v56, 1 }
  0xa0   : > { %832 = vst.msk [vmem:[#allocation2 + $0x1c] sm:$0xf] %vm824_vm3, %v743_v17  ;;  %v763_v63 = vpop.permute.xlu2 %762  ;;  %v894_v17 = vrot.slane %v3519_v45, 1  ;;  %v898_v45 = vrot.slane %v3546_v51, 1  ;;  %v897_v36 = vrot.slane %v3559_v54, 1  ;;  %v901_v50 = vrot.slane %v3586_v62, 1 }
  0xa1   : > { %834 = vst.msk [vmem:[#allocation2 + $0x24] sm:$0xf] %vm824_vm3, %v747_v33  ;;  %v949_v33 = vsel %vm857_vm0, %v892_v35, 0.0 }
  0xa2   : > { %5104 = vst [vmem:[#allocation51_spill] sm:$0xff] %v3866_v24  ;;  %v3905_v35 = vpack.c.bf16 %v949_v33, %v949_v33  ;;  %v541_v33 = vsel %vm502_vm1, %v539_v23, %v540_v48 }
  0xa3   : > { %5105 = vst [vmem:[#allocation52_spill] sm:$0xff] %v3868_v29 }
  0xa4   : > { %653 = vst.msk [vmem:[#allocation2 + $0x54] sm:$0xf] %vm631_vm2, %v3856_v60 }
  0xa5   : > { %652 = vst.msk [vmem:[#allocation2 + $0x50] sm:$0xf] %vm631_vm2, %v3860_v39  ;;  %1058 = vrot.lane.b32.xlu1 %v3866_v24, %s3227_s11  ;;  %1062 = vrot.lane.b32.xlu0 %v3868_v29, %s3227_s11 }
  0xa6   : > { %842 = vst.msk [vmem:[#allocation2 + $0x44] sm:$0xf] %vm824_vm3, %v763_v63  ;;  %v950_v63 = vsel %vm857_vm0, %v895_v4, 0.0  ;;  %1060 = vrot.lane.b32.xlu2 %v3885_v30, %s3227_s11 }
  0xa7   : > { %5106 = vst [vmem:[#allocation53_spill] sm:$0xff] %v3885_v30  ;;  %v749_v24 = vpop.permute.xlu1 %748  ;;  %v753_v18 = vpop.permute.xlu0 %752  ;;  %v3907_v55 = vpack.c.bf16 %v950_v63, %v950_v63 }
  0xa8   : > { %654 = vst.msk [vmem:[#allocation2 + $0x58] sm:$0xf] %vm631_vm2, %v3887_v41  ;;  %v769_v51 = vpop.permute.xlu2 %768 }
  0xa9   : > { %835 = vst.msk [vmem:[#allocation2 + $0x28] sm:$0xf] %vm824_vm3, %v749_v24  ;;  %v896_v24 = vsel %vm857_vm0, %v894_v17, %v895_v4  ;;  %v3928_v17 = vpack.c.bf16 %v541_v33, %v541_v33  ;;  %v545_v33 = vrot.slane %v3570_v56, 7 }
  0xaa   : > { %837 = vst.msk [vmem:[#allocation2 + $0x30] sm:$0xf] %vm824_vm3, %v753_v18  ;;  %v542_v18 = vrot.slane %v3559_v54, 7  ;;  %v3926_v4 = vpack.c.bf16 %v896_v24, %v896_v24  ;;  %v899_v54 = vsel %vm857_vm0, %v897_v36, %v898_v45  ;;  %v548_v24 = vrot.slane %v3573_v57, 7 }
  0xab   : > { %5107 = vst [vmem:[#allocation54_spill] sm:$0xff] %v3905_v35  ;;  %v3944_v36 = vpack.c.bf16 %v899_v54, %v899_v54 }
  0xac   : > { %5108 = vst [vmem:[#allocation55_spill] sm:$0xff] %v3907_v55  ;;  %v544_v63 = vsel %vm502_vm1, %v542_v18, %v543_v21  ;;  %v596_v29 = vsel %vm502_vm1, 0.0, %v542_v18  ;;  %v546_v21 = vrot.slane %v3586_v62, 7  ;;  %v904_v18 = vrot.slane %v3598_v38, 1 }
  0xad   : > { %656 = vst.msk [vmem:[#allocation2 + $0x60] sm:$0xf] %vm631_vm2, %v3894_v37  ;;  %1064 = vrot.lane.b32.xlu1 %v3905_v35, %s3227_s11  ;;  %1068 = vrot.lane.b32.xlu0 %v3907_v55, %s3227_s11  ;;  %v3934_v30 = vpack.c.bf16 %v544_v63, %v544_v63  ;;  %v3938_v55 = vpack.c.bf16 %v596_v29, %v596_v29  ;;  %v951_v29 = vsel %vm857_vm0, %v898_v45, 0.0  ;;  %v597_v62 = vsel %vm502_vm1, 0.0, %v545_v33 }
  0xae   : > { %655 = vst.msk [vmem:[#allocation2 + $0x5c] sm:$0xf] %vm631_vm2, %v3898_v58  ;;  %1066 = vrot.lane.b32.xlu2 %v3926_v4, %s3227_s11  ;;  %v3963_v45 = vpack.c.bf16 %v951_v29, %v951_v29  ;;  %v3965_v54 = vpack.c.bf16 %v597_v62, %v597_v62  ;;  %v598_v56 = vsel %vm502_vm1, 0.0, %v548_v24  ;;  %v549_v62 = vrot.slane %v3598_v38, 7 }
  0xaf   : > { %845 = vst.msk [vmem:[#allocation2 + $0x50] sm:$0xf] %vm824_vm3, %v769_v51  ;;  %v902_v51 = vsel %vm857_vm0, %v900_v44, %v901_v50  ;;  %v755_v23 = vpop.permute.xlu1 %754  ;;  %v759_v48 = vpop.permute.xlu0 %758  ;;  %v3972_v35 = vpack.c.bf16 %v598_v56, %v598_v56 }
  0xb0   : > { %5109 = vst [vmem:[#allocation56_spill] sm:$0xff] %v3926_v4  ;;  %v3946_v44 = vpack.c.bf16 %v902_v51, %v902_v51  ;;  %v775_v63 = vpop.permute.xlu2 %774  ;;  %v547_v51 = vsel %vm502_vm1, %v545_v33, %v546_v21  ;;  %v550_v38 = vsel %vm502_vm1, %v548_v24, %v549_v62 }
  0xb1   : > { %657 = vst.msk [vmem:[#allocation2 + $0x64] sm:$0xf] %vm631_vm2, %v3928_v17  ;;  %v3976_v29 = vpack.c.bf16 %v547_v51, %v547_v51 }
  0xb2   : > { %838 = vst.msk [vmem:[#allocation2 + $0x34] sm:$0xf] %vm824_vm3, %v755_v23  ;;  %v903_v23 = vrot.slane %v3573_v57, 1 }
  0xb3   : > { %840 = vst.msk [vmem:[#allocation2 + $0x3c] sm:$0xf] %vm824_vm3, %v759_v48  ;;  %v952_v48 = vsel %vm857_vm0, %v901_v50, 0.0 }
  0xb4   : > { %5110 = vst [vmem:[#allocation57_spill] sm:$0xff] %v3944_v36  ;;  %v3981_v57 = vpack.c.bf16 %v952_v48, %v952_v48  ;;  %v905_v21 = vsel %vm857_vm0, %v903_v23, %v904_v18 }
  0xb5   : > { %659 = vst.msk [vmem:[#allocation2 + $0x6c] sm:$0xf] %vm631_vm2, %v3934_v30  ;;  %1070 = vrot.lane.b32.xlu1 %v3944_v36, %s3227_s11  ;;  %1074 = vrot.lane.b32.xlu0 %v3946_v44, %s3227_s11 }
  0xb6   : > { %658 = vst.msk [vmem:[#allocation2 + $0x68] sm:$0xf] %vm631_vm2, %v3938_v55  ;;  %1072 = vrot.lane.b32.xlu2 %v3963_v45, %s3227_s11 }
  0xb7   : > { %848 = vst.msk [vmem:[#allocation2 + $0x5c] sm:$0xf] %vm824_vm3, %v775_v63  ;;  %v953_v63 = vsel %vm857_vm0, %v904_v18, 0.0  ;;  %v761_v36 = vpop.permute.xlu1 %760  ;;  %v765_v4 = vpop.permute.xlu0 %764 }
  0xb8   : > { %5111 = vst [vmem:[#allocation58_spill] sm:$0xff] %v3972_v35  ;;  %v3983_v50 = vpack.c.bf16 %v953_v63, %v953_v63  ;;  %v781_v33 = vpop.permute.xlu2 %780 }
  0xb9   : > { %660 = vst.msk [vmem:[#allocation2 + $0x70] sm:$0xf] %vm631_vm2, %v3965_v54 }
  0xba   : > { %841 = vst.msk [vmem:[#allocation2 + $0x40] sm:$0xf] %vm824_vm3, %v761_v36  ;;  %v4000_v36 = vpack.c.bf16 %v550_v38, %v550_v38 }
  0xbb   : > { %843 = vst.msk [vmem:[#allocation2 + $0x48] sm:$0xf] %vm824_vm3, %v765_v4  ;;  %v3998_v4 = vpack.c.bf16 %v905_v21, %v905_v21 }
  0xbc   : > { %5112 = vst [vmem:[#allocation59_spill] sm:$0xff] %v3983_v50 }
  0xbd   : > { %662 = vst.msk [vmem:[#allocation2 + $0x78] sm:$0xf] %vm631_vm2, %v3972_v35  ;;  %1076 = vrot.lane.b32.xlu1 %v3981_v57, %s3227_s11  ;;  %1080 = vrot.lane.b32.xlu0 %v3983_v50, %s3227_s11 }
  0xbe   : > { %661 = vst.msk [vmem:[#allocation2 + $0x74] sm:$0xf] %vm631_vm2, %v3976_v29  ;;  %1078 = vrot.lane.b32.xlu2 %v3998_v4, %s3227_s11 }
  0xbf   : > { %851 = vst.msk [vmem:[#allocation2 + $0x68] sm:$0xf] %vm824_vm3, %v781_v33  ;;  %v767_v18 = vpop.permute.xlu1 %766  ;;  %v771_v56 = vpop.permute.xlu0 %770 }
  0xc0   : > { %5113 = vst [vmem:[#allocation60_spill] sm:$0xff] %v4000_v36  ;;  %v787_v24 = vpop.permute.xlu2 %786 }
  0xc1   : > { %663 = vst.msk [vmem:[#allocation2 + $0x7c] sm:$0xf] %vm631_vm2, %v4000_v36 }
  0xc2   : > { %844 = vst.msk [vmem:[#allocation2 + $0x4c] sm:$0xf] %vm824_vm3, %v767_v18 }
  0xc3   : > { %846 = vst.msk [vmem:[#allocation2 + $0x54] sm:$0xf] %vm824_vm3, %v771_v56 }
  0xc4   : > { %854 = vst.msk [vmem:[#allocation2 + $0x74] sm:$0xf] %vm824_vm3, %v787_v24 }
  0xc5   : > { %1189 = vrot.lane.b32.xlu1 %v3624_v52, %s3228_s12  ;;  %1193 = vrot.lane.b32.xlu0 %v3631_v40, %s3228_s12 }
  0xc6   : > { %1191 = vrot.lane.b32.xlu2 %v3660_v43, %s3228_s12 }
  0xc7   : > { %v773_v51 = vpop.permute.xlu1 %772  ;;  %v777_v23 = vpop.permute.xlu0 %776 }
  0xc8   : > { %847 = vst.msk [vmem:[#allocation2 + $0x58] sm:$0xf] %vm824_vm3, %v773_v51  ;;  %v1019_v48 = vpop.permute.xlu2 %1018 }
  0xc9   : > { %849 = vst.msk [vmem:[#allocation2 + $0x60] sm:$0xf] %vm824_vm3, %v777_v23 }
  0xca   : > { %1115 = vst.msk [vmem:[#allocation2] sm:$0xf] %vm1114_vm4, %v1019_v48 }
  0xcd   : > { %1195 = vrot.lane.b32.xlu1 %v3668_v59, %s3228_s12  ;;  %1199 = vrot.lane.b32.xlu0 %v3697_v46, %s3228_s12 }
  0xce   : > { %1197 = vrot.lane.b32.xlu2 %v3666_v53, %s3228_s12 }
  0xcf   : > { %v779_v52 = vpop.permute.xlu1 %778  ;;  %v783_v63 = vpop.permute.xlu0 %782 }
  0xd0   : > { %850 = vst.msk [vmem:[#allocation2 + $0x64] sm:$0xf] %vm824_vm3, %v779_v52  ;;  %v1025_v43 = vpop.permute.xlu2 %1024 }
  0xd1   : > { %852 = vst.msk [vmem:[#allocation2 + $0x6c] sm:$0xf] %vm824_vm3, %v783_v63 }
  0xd2   : > { %1118 = vst.msk [vmem:[#allocation2 + $0xc] sm:$0xf] %vm1114_vm4, %v1025_v43 }
  0xd5   : > { %1201 = vrot.lane.b32.xlu1 %v3705_v1, %s3228_s12  ;;  %1205 = vrot.lane.b32.xlu0 %v3733_v49, %s3228_s12 }
  0xd6   : > { %1203 = vrot.lane.b32.xlu2 %v3703_v9, %s3228_s12 }
  0xd7   : > { %v785_v62 = vpop.permute.xlu1 %784  ;;  %v789_v21 = vpop.permute.xlu0 %788 }
  0xd8   : > { %853 = vst.msk [vmem:[#allocation2 + $0x70] sm:$0xf] %vm824_vm3, %v785_v62  ;;  %v1031_v33 = vpop.permute.xlu2 %1030 }
  0xd9   : > { %855 = vst.msk [vmem:[#allocation2 + $0x78] sm:$0xf] %vm824_vm3, %v789_v21 }
  0xda   : > { %1121 = vst.msk [vmem:[#allocation2 + $0x18] sm:$0xf] %vm1114_vm4, %v1031_v33 }
  0xdd   : > { %1207 = vrot.lane.b32.xlu1 %v3741_v5, %s3228_s12  ;;  %1211 = vrot.lane.b32.xlu0 %v3772_v15, %s3228_s12 }
  0xde   : > { %1209 = vrot.lane.b32.xlu2 %v3739_v47, %s3228_s12 }
  0xdf   : > { %v791_v38 = vpop.permute.xlu1 %790  ;;  %v1021_v18 = vpop.permute.xlu0 %1020 }
  0xe0   : > { %856 = vst.msk [vmem:[#allocation2 + $0x7c] sm:$0xf] %vm824_vm3, %v791_v38  ;;  %v1037_v56 = vpop.permute.xlu2 %1036 }
  0xe1   : > { %1116 = vst.msk [vmem:[#allocation2 + $0x4] sm:$0xf] %vm1114_vm4, %v1021_v18 }
  0xe2   : > { %1124 = vst.msk [vmem:[#allocation2 + $0x24] sm:$0xf] %vm1114_vm4, %v1037_v56 }
  0xe5   : > { %1213 = vrot.lane.b32.xlu1 %v3782_v61, %s3228_s12  ;;  %1217 = vrot.lane.b32.xlu0 %v3809_v27, %s3228_s12 }
  0xe6   : > { %1215 = vrot.lane.b32.xlu2 %v3778_v12, %s3228_s12  ;;  %v5144_v12 = vld [vmem:[#allocation43_spill] sm:$0xff] }
  0xe7   : > { %v1023_v24 = vpop.permute.xlu1 %1022  ;;  %v1027_v51 = vpop.permute.xlu0 %1026 }
  0xe8   : > { %1117 = vst.msk [vmem:[#allocation2 + $0x8] sm:$0xf] %vm1114_vm4, %v1023_v24  ;;  %v1043_v23 = vpop.permute.xlu2 %1042 }
  0xe9   : > { %1119 = vst.msk [vmem:[#allocation2 + $0x10] sm:$0xf] %vm1114_vm4, %v1027_v51  ;;  %v4086_v51 = vld [vmem:[%s3328_s10 + $0xf0] sm:$0xff] }
  0xea   : > { %1127 = vst.msk [vmem:[#allocation2 + $0x30] sm:$0xf] %vm1114_vm4, %v1043_v23  ;;  %v1149_v23 = vrot.slane %v4086_v51, 7 }
  0xeb   : > { %5114 = vst [vmem:[#allocation61_spill] sm:$0xff] %v4086_v51 }
  0xed   : > { %1219 = vrot.lane.b32.xlu1 %v3820_v11, %s3228_s12  ;;  %1223 = vrot.lane.b32.xlu0 %v3850_v3, %s3228_s12  ;;  %v5132_v11 = vld [vmem:[#allocation29_spill] sm:$0xff] }
  0xee   : > { %1221 = vrot.lane.b32.xlu2 %v3816_v0, %s3228_s12  ;;  %v5129_v0 = vld [vmem:[#allocation20_spill] sm:$0xff] }
  0xef   : > { %v1029_v48 = vpop.permute.xlu1 %1028  ;;  %v1033_v52 = vpop.permute.xlu0 %1032 }
  0xf0   : > { %1120 = vst.msk [vmem:[#allocation2 + $0x14] sm:$0xf] %vm1114_vm4, %v1029_v48  ;;  %v1049_v63 = vpop.permute.xlu2 %1048 }
  0xf1   : > { %1122 = vst.msk [vmem:[#allocation2 + $0x1c] sm:$0xf] %vm1114_vm4, %v1033_v52  ;;  %v4094_v52 = vld [vmem:[%s3328_s10 + $0xf8] sm:$0xff]  ;;  %s365_s10 = sand.u32 1, %s3206_s19  }
  0xf2   : > { %1130 = vst.msk [vmem:[#allocation2 + $0x3c] sm:$0xf] %vm1114_vm4, %v1049_v63  ;;  %v1154_v63 = vsel %vm502_vm1, 0.0, %v1149_v23 }
  0xf3   : > { %5115 = vst [vmem:[#allocation62_spill] sm:$0xff] %v4094_v52 }
  0xf5   : > { %1225 = vrot.lane.b32.xlu1 %v3860_v39, %s3228_s12  ;;  %1229 = vrot.lane.b32.xlu0 %v3887_v41, %s3228_s12 }
  0xf6   : > { %1227 = vrot.lane.b32.xlu2 %v3856_v60, %s3228_s12 }
  0xf7   : > { %v1035_v43 = vpop.permute.xlu1 %1034  ;;  %v1039_v62 = vpop.permute.xlu0 %1038 }
  0xf8   : > { %1123 = vst.msk [vmem:[#allocation2 + $0x20] sm:$0xf] %vm1114_vm4, %v1035_v43  ;;  %v1055_v21 = vpop.permute.xlu2 %1054  ;;  %v1150_v43 = vrot.slane %v4094_v52, 7 }
  0xf9   : > { %1125 = vst.msk [vmem:[#allocation2 + $0x28] sm:$0xf] %vm1114_vm4, %v1039_v62 }
  0xfa   : > { %1133 = vst.msk [vmem:[#allocation2 + $0x48] sm:$0xf] %vm1114_vm4, %v1055_v21 }
  0xfd   : > { %1231 = vrot.lane.b32.xlu1 %v3898_v58, %s3228_s12  ;;  %1235 = vrot.lane.b32.xlu0 %v3928_v17, %s3228_s12 }
  0xfe   : > { %1233 = vrot.lane.b32.xlu2 %v3894_v37, %s3228_s12 }
  0xff   : > { %v1041_v33 = vpop.permute.xlu1 %1040  ;;  %v1045_v38 = vpop.permute.xlu0 %1044 }
 0x100   : > { %1126 = vst.msk [vmem:[#allocation2 + $0x2c] sm:$0xf] %vm1114_vm4, %v1041_v33  ;;  %v1061_v18 = vpop.permute.xlu2 %1060  ;;  %v4105_v33 = vpack.c.bf16 %v1154_v63, %v1154_v63 }
 0x101   : > { %1128 = vst.msk [vmem:[#allocation2 + $0x34] sm:$0xf] %vm1114_vm4, %v1045_v38  ;;  %v1151_v38 = vsel %vm502_vm1, %v1149_v23, %v1150_v43 }
 0x102   : > { %1136 = vst.msk [vmem:[#allocation2 + $0x54] sm:$0xf] %vm1114_vm4, %v1061_v18 }
 0x103   : > { %5116 = vst [vmem:[#allocation63_spill] sm:$0xff] %v4105_v33 }
 0x105   : > { %1237 = vrot.lane.b32.xlu1 %v3938_v55, %s3228_s12  ;;  %1241 = vrot.lane.b32.xlu0 %v3965_v54, %s3228_s12 }
 0x106   : > { %1239 = vrot.lane.b32.xlu2 %v3934_v30, %s3228_s12 }
 0x107   : > { %v1047_v56 = vpop.permute.xlu1 %1046  ;;  %v1051_v24 = vpop.permute.xlu0 %1050 }
 0x108   : > { %1129 = vst.msk [vmem:[#allocation2 + $0x38] sm:$0xf] %vm1114_vm4, %v1047_v56  ;;  %v1067_v48 = vpop.permute.xlu2 %1066  ;;  %v4115_v56 = vpack.c.bf16 %v1151_v38, %v1151_v38 }
 0x109   : > { %1131 = vst.msk [vmem:[#allocation2 + $0x40] sm:$0xf] %vm1114_vm4, %v1051_v24 }
 0x10a   : > { %1139 = vst.msk [vmem:[#allocation2 + $0x60] sm:$0xf] %vm1114_vm4, %v1067_v48 }
 0x10b   : > { %5117 = vst [vmem:[#allocation64_spill] sm:$0xff] %v4115_v56 }
 0x10d   : > { %1243 = vrot.lane.b32.xlu1 %v3976_v29, %s3228_s12  ;;  %1247 = vrot.lane.b32.xlu0 %v4000_v36, %s3228_s12 }
 0x10e   : > { %1245 = vrot.lane.b32.xlu2 %v3972_v35, %s3228_s12 }
 0x10f   : > { %v1053_v62 = vpop.permute.xlu1 %1052  ;;  %v1057_v21 = vpop.permute.xlu0 %1056 }
 0x110   : > { %1132 = vst.msk [vmem:[#allocation2 + $0x44] sm:$0xf] %vm1114_vm4, %v1053_v62  ;;  %v1073_v18 = vpop.permute.xlu2 %1072 }
 0x111   : > { %1134 = vst.msk [vmem:[#allocation2 + $0x4c] sm:$0xf] %vm1114_vm4, %v1057_v21 }
 0x112   : > { %1142 = vst.msk [vmem:[#allocation2 + $0x6c] sm:$0xf] %vm1114_vm4, %v1073_v18 }
 0x115   : > { %1249 = vrot.lane.b32.xlu1 %v4105_v33, %s3228_s12  ;;  %1322 = vrot.lane.b32.xlu0 %v3335_v2, %s3229_s13 }
 0x116   : > { %1251 = vrot.lane.b32.xlu2 %v4115_v56, %s3228_s12  ;;  %s2818_s12 = sshll.u32 %s365_s10, 9 }
 0x117   : > { %v1059_v24 = vpop.permute.xlu1 %1058  ;;  %v1063_v48 = vpop.permute.xlu0 %1062  ;;  %s4611_s23 = scalar_lea.vmem [#allocation3], %s2818_s12 }
 0x118   : > { %1135 = vst.msk [vmem:[#allocation2 + $0x50] sm:$0xf] %vm1114_vm4, %v1059_v24  ;;  %v1079_v23 = vpop.permute.xlu2 %1078  ;;  %s2653_s25 = sshll.u32 %s4611_s23, 4  ;;  %s2654_s25 = int_to_ptr.vmem [resolvable:$true] %s2653_s25 }
 0x119   : > { %1137 = vst.msk [vmem:[#allocation2 + $0x58] sm:$0xf] %vm1114_vm4, %v1063_v48 }
 0x11a   : > { %1145 = vst.msk [vmem:[#allocation2 + $0x78] sm:$0xf] %vm1114_vm4, %v1079_v23 }
 0x11d   : > { %1324 = vrot.lane.b32.xlu1 %v3356_v7, %s3229_s13  ;;  %1328 = vrot.lane.b32.xlu0 %v3373_v10, %s3229_s13 }
 0x11e   : > { %1326 = vrot.lane.b32.xlu2 %v3352_v6, %s3229_s13 }
 0x11f   : > { %v1065_v2 = vpop.permute.xlu1 %1064  ;;  %v1069_v63 = vpop.permute.xlu0 %1068 }
 0x120   : > { %1138 = vst.msk [vmem:[#allocation2 + $0x5c] sm:$0xf] %vm1114_vm4, %v1065_v2  ;;  %v1192_v43 = vpop.permute.xlu2 %1191 }
 0x121   : > { %1140 = vst.msk [vmem:[#allocation2 + $0x64] sm:$0xf] %vm1114_vm4, %v1069_v63 }
 0x122   : > { %1287 = vst.msk [vmem:[#allocation2 + $0x4] sm:$0xf] %vm1285_vm5, %v1192_v43 }
 0x125   : > { %1330 = vrot.lane.b32.xlu1 %v3360_v8, %s3229_s13  ;;  %1334 = vrot.lane.b32.xlu0 %v3400_v16, %s3229_s13 }
 0x126   : > { %1332 = vrot.lane.b32.xlu2 %v3383_v13, %s3229_s13 }
 0x127   : > { %v1071_v7 = vpop.permute.xlu1 %1070  ;;  %v1075_v62 = vpop.permute.xlu0 %1074 }
 0x128   : > { %1141 = vst.msk [vmem:[#allocation2 + $0x68] sm:$0xf] %vm1114_vm4, %v1071_v7  ;;  %v1198_v21 = vpop.permute.xlu2 %1197 }
 0x129   : > { %1143 = vst.msk [vmem:[#allocation2 + $0x70] sm:$0xf] %vm1114_vm4, %v1075_v62 }
 0x12a   : > { %1290 = vst.msk [vmem:[#allocation2 + $0x10] sm:$0xf] %vm1285_vm5, %v1198_v21 }
 0x12d   : > { %1336 = vrot.lane.b32.xlu1 %v3387_v14, %s3229_s13  ;;  %1340 = vrot.lane.b32.xlu0 %v3427_v22, %s3229_s13 }
 0x12e   : > { %1338 = vrot.lane.b32.xlu2 %v3410_v19, %s3229_s13 }
 0x12f   : > { %v1077_v38 = vpop.permute.xlu1 %1076  ;;  %v1081_v18 = vpop.permute.xlu0 %1080 }
 0x130   : > { %1144 = vst.msk [vmem:[#allocation2 + $0x74] sm:$0xf] %vm1114_vm4, %v1077_v38  ;;  %v1204_v24 = vpop.permute.xlu2 %1203  ;;  %v5118_v38 = vld [vmem:[#allocation11_spill] sm:$0xff] }
 0x131   : > { %1146 = vst.msk [vmem:[#allocation2 + $0x7c] sm:$0xf] %vm1114_vm4, %v1081_v18 }
 0x132   : > { %1293 = vst.msk [vmem:[#allocation2 + $0x1c] sm:$0xf] %vm1285_vm5, %v1204_v24  ;;  %v5119_v24 = vld [vmem:[#allocation12_spill] sm:$0xff] }
 0x135   : > { %1342 = vrot.lane.b32.xlu1 %v3414_v20, %s3229_s13  ;;  %1346 = vrot.lane.b32.xlu0 %v3454_v28, %s3229_s13 }
 0x136   : > { %1344 = vrot.lane.b32.xlu2 %v3437_v25, %s3229_s13 }
 0x137   : > { %v1190_v48 = vpop.permute.xlu1 %1189  ;;  %v1194_v23 = vpop.permute.xlu0 %1193 }
 0x138   : > { %1286 = vst.msk [vmem:[#allocation2] sm:$0xf] %vm1285_vm5, %v1190_v48  ;;  %v1210_v2 = vpop.permute.xlu2 %1209  ;;  %v5120_v48 = vld [vmem:[#allocation15_spill] sm:$0xff] }
 0x139   : > { %1288 = vst.msk [vmem:[#allocation2 + $0x8] sm:$0xf] %vm1285_vm5, %v1194_v23 }
 0x13a   : > { %1296 = vst.msk [vmem:[#allocation2 + $0x28] sm:$0xf] %vm1285_vm5, %v1210_v2 }
 0x13d   : > { %1348 = vrot.lane.b32.xlu1 %v3441_v26, %s3229_s13  ;;  %1352 = vrot.lane.b32.xlu0 %v3481_v34, %s3229_s13 }
 0x13e   : > { %1350 = vrot.lane.b32.xlu2 %v3464_v31, %s3229_s13  ;;  %v5131_v31 = vld [vmem:[#allocation23_spill] sm:$0xff] }
 0x13f   : > { %v1196_v63 = vpop.permute.xlu1 %1195  ;;  %v1200_v43 = vpop.permute.xlu0 %1199 }
 0x140   : > { %1289 = vst.msk [vmem:[#allocation2 + $0xc] sm:$0xf] %vm1285_vm5, %v1196_v63  ;;  %v1216_v7 = vpop.permute.xlu2 %1215  ;;  %v5121_v63 = vld [vmem:[#allocation13_spill] sm:$0xff] }
 0x141   : > { %1291 = vst.msk [vmem:[#allocation2 + $0x14] sm:$0xf] %vm1285_vm5, %v1200_v43 }
 0x142   : > { %1299 = vst.msk [vmem:[#allocation2 + $0x34] sm:$0xf] %vm1285_vm5, %v1216_v7  ;;  %v5122_v7 = vld [vmem:[#allocation14_spill] sm:$0xff] }
 0x145   : > { %1354 = vrot.lane.b32.xlu1 %v3468_v32, %s3229_s13  ;;  %1358 = vrot.lane.b32.xlu0 %v3510_v42, %s3229_s13  ;;  %v5126_v32 = vld [vmem:[#allocation21_spill] sm:$0xff] }
 0x146   : > { %1356 = vrot.lane.b32.xlu2 %v5118_v38, %s3229_s13 }
 0x147   : > { %v1202_v62 = vpop.permute.xlu1 %1201  ;;  %v1206_v21 = vpop.permute.xlu0 %1205 }
 0x148   : > { %1292 = vst.msk [vmem:[#allocation2 + $0x18] sm:$0xf] %vm1285_vm5, %v1202_v62  ;;  %v1222_v18 = vpop.permute.xlu2 %1221  ;;  %v5123_v62 = vld [vmem:[#allocation18_spill] sm:$0xff] }
 0x149   : > { %1294 = vst.msk [vmem:[#allocation2 + $0x20] sm:$0xf] %vm1285_vm5, %v1206_v21 }
 0x14a   : > { %1302 = vst.msk [vmem:[#allocation2 + $0x40] sm:$0xf] %vm1285_vm5, %v1222_v18 }
 0x14d   : > { %1360 = vrot.lane.b32.xlu1 %v5119_v24, %s3229_s13  ;;  %1364 = vrot.lane.b32.xlu0 %v5120_v48, %s3229_s13 }
 0x14e   : > { %1362 = vrot.lane.b32.xlu2 %v5121_v63, %s3229_s13 }
 0x14f   : > { %v1208_v23 = vpop.permute.xlu1 %1207  ;;  %v1212_v2 = vpop.permute.xlu0 %1211 }
 0x150   : > { %1295 = vst.msk [vmem:[#allocation2 + $0x24] sm:$0xf] %vm1285_vm5, %v1208_v23  ;;  %v1228_v43 = vpop.permute.xlu2 %1227  ;;  %v5124_v23 = vld [vmem:[#allocation16_spill] sm:$0xff] }
 0x151   : > { %1297 = vst.msk [vmem:[#allocation2 + $0x2c] sm:$0xf] %vm1285_vm5, %v1212_v2 }
 0x152   : > { %1305 = vst.msk [vmem:[#allocation2 + $0x4c] sm:$0xf] %vm1285_vm5, %v1228_v43  ;;  %v5125_v43 = vld [vmem:[#allocation17_spill] sm:$0xff] }
 0x155   : > { %1366 = vrot.lane.b32.xlu1 %v5122_v7, %s3229_s13  ;;  %1370 = vrot.lane.b32.xlu0 %v5123_v62, %s3229_s13 }
 0x156   : > { %1368 = vrot.lane.b32.xlu2 %v5124_v23, %s3229_s13 }
 0x157   : > { %v1214_v21 = vpop.permute.xlu1 %1213  ;;  %v1218_v18 = vpop.permute.xlu0 %1217 }
 0x158   : > { %1298 = vst.msk [vmem:[#allocation2 + $0x30] sm:$0xf] %vm1285_vm5, %v1214_v21  ;;  %v1234_v2 = vpop.permute.xlu2 %1233  ;;  %v4202_v21 = vpack.c.bf16 %v4086_v51, %v4086_v51  ;;  %v5141_v51 = vld [vmem:[#allocation38_spill] sm:$0xff] }
 0x159   : > { %1300 = vst.msk [vmem:[#allocation2 + $0x38] sm:$0xf] %vm1285_vm5, %v1218_v18  ;;  %v5128_v18 = vld [vmem:[#allocation19_spill] sm:$0xff] }
 0x15a   : > { %1308 = vst.msk [vmem:[#allocation2 + $0x58] sm:$0xf] %vm1285_vm5, %v1234_v2 }
 0x15b   : > { %5127 = vst [vmem:[#allocation12_spill] sm:$0xff] %v4202_v21 }
 0x15d   : > { %1372 = vrot.lane.b32.xlu1 %v5125_v43, %s3229_s13  ;;  %1376 = vrot.lane.b32.xlu0 %v5126_v32, %s3229_s13 }
 0x15e   : > { %1374 = vrot.lane.b32.xlu2 %v5128_v18, %s3229_s13 }
 0x15f   : > { %v1220_v38 = vpop.permute.xlu1 %1219  ;;  %v1224_v3 = vpop.permute.xlu0 %1223 }
 0x160   : > { %1301 = vst.msk [vmem:[#allocation2 + $0x3c] sm:$0xf] %vm1285_vm5, %v1220_v38  ;;  %v1240_v2 = vpop.permute.xlu2 %1239 }
 0x161   : > { %1303 = vst.msk [vmem:[#allocation2 + $0x44] sm:$0xf] %vm1285_vm5, %v1224_v3  ;;  %v4215_v3 = vpack.c.bf16 %v4094_v52, %v4094_v52 }
 0x162   : > { %1311 = vst.msk [vmem:[#allocation2 + $0x64] sm:$0xf] %vm1285_vm5, %v1240_v2 }
 0x163   : > { %5130 = vst [vmem:[#allocation15_spill] sm:$0xff] %v4215_v3 }
 0x165   : > { %1378 = vrot.lane.b32.xlu1 %v5129_v0, %s3229_s13  ;;  %1382 = vrot.lane.b32.xlu0 %v4202_v21, %s3229_s13 }
 0x166   : > { %1380 = vrot.lane.b32.xlu2 %v5131_v31, %s3229_s13  ;;  %v5147_v31 = vld [vmem:[#allocation49_spill] sm:$0xff] }
 0x167   : > { %v1226_v34 = vpop.permute.xlu1 %1225  ;;  %v1230_v38 = vpop.permute.xlu0 %1229 }
 0x168   : > { %1304 = vst.msk [vmem:[#allocation2 + $0x48] sm:$0xf] %vm1285_vm5, %v1226_v34  ;;  %v1246_v2 = vpop.permute.xlu2 %1245 }
 0x169   : > { %1306 = vst.msk [vmem:[#allocation2 + $0x50] sm:$0xf] %vm1285_vm5, %v1230_v38  ;;  %v5133_v38 = vld [vmem:[#allocation27_spill] sm:$0xff] }
 0x16a   : > { %1314 = vst.msk [vmem:[#allocation2 + $0x70] sm:$0xf] %vm1285_vm5, %v1246_v2  ;;  %v5134_v2 = vld [vmem:[#allocation28_spill] sm:$0xff] }
 0x16d   : > { %1384 = vrot.lane.b32.xlu1 %v4215_v3, %s3229_s13  ;;  %1463 = vrot.lane.b32.xlu0 %v5132_v11, %s3230_s14  ;;  %v5135_v3 = vld [vmem:[#allocation32_spill] sm:$0xff] }
 0x16e   : > { %1461 = vrot.lane.b32.xlu2 %v5133_v38, %s3230_s14  ;;  %v5138_v38 = vld [vmem:[#allocation35_spill] sm:$0xff] }
 0x16f   : > { %v1232_v34 = vpop.permute.xlu1 %1231  ;;  %v1236_v27 = vpop.permute.xlu0 %1235 }
 0x170   : > { %1307 = vst.msk [vmem:[#allocation2 + $0x54] sm:$0xf] %vm1285_vm5, %v1232_v34  ;;  %v1252_v21 = vpop.permute.xlu2 %1251 }
 0x171   : > { %1309 = vst.msk [vmem:[#allocation2 + $0x5c] sm:$0xf] %vm1285_vm5, %v1236_v27  ;;  %v5136_v27 = vld [vmem:[#allocation30_spill] sm:$0xff] }
 0x172   : > { %1317 = vst.msk [vmem:[#allocation2 + $0x7c] sm:$0xf] %vm1285_vm5, %v1252_v21  ;;  %v5137_v21 = vld [vmem:[#allocation31_spill] sm:$0xff] }
 0x175   : > { %1465 = vrot.lane.b32.xlu1 %v5134_v2, %s3230_s14  ;;  %1469 = vrot.lane.b32.xlu0 %v5135_v3, %s3230_s14 }
 0x176   : > { %1467 = vrot.lane.b32.xlu2 %v5136_v27, %s3230_s14 }
 0x177   : > { %v1238_v56 = vpop.permute.xlu1 %1237  ;;  %v1242_v11 = vpop.permute.xlu0 %1241 }
 0x178   : > { %1310 = vst.msk [vmem:[#allocation2 + $0x60] sm:$0xf] %vm1285_vm5, %v1238_v56  ;;  %v1327_v34 = vpop.permute.xlu2 %1326  ;;  %v5139_v56 = vld [vmem:[#allocation33_spill] sm:$0xff] }
 0x179   : > { %1312 = vst.msk [vmem:[#allocation2 + $0x68] sm:$0xf] %vm1285_vm5, %v1242_v11 }
 0x17a   : > { %1421 = vst.msk [vmem:[#allocation2 + $0x8] sm:$0xf] %vm1418_vm6, %v1327_v34  ;;  %v5140_v34 = vld [vmem:[#allocation34_spill] sm:$0xff] }
 0x17d   : > { %1471 = vrot.lane.b32.xlu1 %v5137_v21, %s3230_s14  ;;  %1475 = vrot.lane.b32.xlu0 %v5138_v38, %s3230_s14 }
 0x17e   : > { %1473 = vrot.lane.b32.xlu2 %v5139_v56, %s3230_s14 }
 0x17f   : > { %v1244_v33 = vpop.permute.xlu1 %1243  ;;  %v1248_v52 = vpop.permute.xlu0 %1247 }
 0x180   : > { %1313 = vst.msk [vmem:[#allocation2 + $0x6c] sm:$0xf] %vm1285_vm5, %v1244_v33  ;;  %v1333_v11 = vpop.permute.xlu2 %1332 }
 0x181   : > { %1315 = vst.msk [vmem:[#allocation2 + $0x74] sm:$0xf] %vm1285_vm5, %v1248_v52  ;;  %v5142_v52 = vld [vmem:[#allocation36_spill] sm:$0xff] }
 0x182   : > { %1424 = vst.msk [vmem:[#allocation2 + $0x14] sm:$0xf] %vm1418_vm6, %v1333_v11  ;;  %v5143_v11 = vld [vmem:[#allocation37_spill] sm:$0xff] }
 0x185   : > { %1477 = vrot.lane.b32.xlu1 %v5140_v34, %s3230_s14  ;;  %1481 = vrot.lane.b32.xlu0 %v5141_v51, %s3230_s14 }
 0x186   : > { %1479 = vrot.lane.b32.xlu2 %v5142_v52, %s3230_s14 }
 0x187   : > { %v1250_v26 = vpop.permute.xlu1 %1249  ;;  %v1323_v28 = vpop.permute.xlu0 %1322 }
 0x188   : > { %1316 = vst.msk [vmem:[#allocation2 + $0x78] sm:$0xf] %vm1285_vm5, %v1250_v26  ;;  %v1339_v33 = vpop.permute.xlu2 %1338  ;;  %v5145_v26 = vld [vmem:[#allocation41_spill] sm:$0xff] }
 0x189   : > { %1419 = vst.msk [vmem:[#allocation2] sm:$0xf] %vm1418_vm6, %v1323_v28 }
 0x18a   : > { %1427 = vst.msk [vmem:[#allocation2 + $0x20] sm:$0xf] %vm1418_vm6, %v1339_v33  ;;  %v5146_v33 = vld [vmem:[#allocation42_spill] sm:$0xff] }
 0x18d   : > { %1483 = vrot.lane.b32.xlu1 %v5143_v11, %s3230_s14  ;;  %1487 = vrot.lane.b32.xlu0 %v5144_v12, %s3230_s14 }
 0x18e   : > { %1485 = vrot.lane.b32.xlu2 %v5145_v26, %s3230_s14 }
 0x18f   : > { %v1325_v61 = vpop.permute.xlu1 %1324  ;;  %v1329_v50 = vpop.permute.xlu0 %1328 }
 0x190   : > { %1420 = vst.msk [vmem:[#allocation2 + $0x4] sm:$0xf] %vm1418_vm6, %v1325_v61  ;;  %v1345_v28 = vpop.permute.xlu2 %1344  ;;  %v5148_v61 = vld [vmem:[#allocation47_spill] sm:$0xff] }
 0x191   : > { %1422 = vst.msk [vmem:[#allocation2 + $0xc] sm:$0xf] %vm1418_vm6, %v1329_v50 }
 0x192   : > { %1430 = vst.msk [vmem:[#allocation2 + $0x2c] sm:$0xf] %vm1418_vm6, %v1345_v28  ;;  %v5149_v28 = vld [vmem:[#allocation48_spill] sm:$0xff] }
 0x195   : > { %1489 = vrot.lane.b32.xlu1 %v5146_v33, %s3230_s14  ;;  %1493 = vrot.lane.b32.xlu0 %v5147_v31, %s3230_s14  ;;  %v5150_v33 = vld [vmem:[#allocation53_spill] sm:$0xff] }
 0x196   : > { %1491 = vrot.lane.b32.xlu2 %v5148_v61, %s3230_s14 }
 0x197   : > { %v1331_v0 = vpop.permute.xlu1 %1330  ;;  %v1335_v12 = vpop.permute.xlu0 %1334 }
 0x198   : > { %1423 = vst.msk [vmem:[#allocation2 + $0x10] sm:$0xf] %vm1418_vm6, %v1331_v0  ;;  %v1351_v50 = vpop.permute.xlu2 %1350 }
 0x199   : > { %1425 = vst.msk [vmem:[#allocation2 + $0x18] sm:$0xf] %vm1418_vm6, %v1335_v12  ;;  %v5151_v12 = vld [vmem:[#allocation51_spill] sm:$0xff] }
 0x19a   : > { %1433 = vst.msk [vmem:[#allocation2 + $0x38] sm:$0xf] %vm1418_vm6, %v1351_v50  ;;  %v5152_v50 = vld [vmem:[#allocation52_spill] sm:$0xff] }
 0x19d   : > { %1495 = vrot.lane.b32.xlu1 %v5149_v28, %s3230_s14  ;;  %1499 = vrot.lane.b32.xlu0 %v5150_v33, %s3230_s14  ;;  %v5153_v28 = vld [vmem:[#allocation56_spill] sm:$0xff] }
 0x19e   : > { %1497 = vrot.lane.b32.xlu2 %v5151_v12, %s3230_s14 }
 0x19f   : > { %v1337_v26 = vpop.permute.xlu1 %1336  ;;  %v1341_v31 = vpop.permute.xlu0 %1340 }
 0x1a0   : > { %1426 = vst.msk [vmem:[#allocation2 + $0x1c] sm:$0xf] %vm1418_vm6, %v1337_v26  ;;  %v1357_v0 = vpop.permute.xlu2 %1356 }
 0x1a1   : > { %1428 = vst.msk [vmem:[#allocation2 + $0x24] sm:$0xf] %vm1418_vm6, %v1341_v31  ;;  %v5154_v31 = vld [vmem:[#allocation54_spill] sm:$0xff] }
 0x1a2   : > { %1436 = vst.msk [vmem:[#allocation2 + $0x44] sm:$0xf] %vm1418_vm6, %v1357_v0  ;;  %v5155_v0 = vld [vmem:[#allocation55_spill] sm:$0xff] }
 0x1a5   : > { %1501 = vrot.lane.b32.xlu1 %v5152_v50, %s3230_s14  ;;  %1505 = vrot.lane.b32.xlu0 %v5153_v28, %s3230_s14 }
 0x1a6   : > { %1503 = vrot.lane.b32.xlu2 %v5154_v31, %s3230_s14 }
 0x1a7   : > { %v1343_v61 = vpop.permute.xlu1 %1342  ;;  %v1347_v36 = vpop.permute.xlu0 %1346 }
 0x1a8   : > { %1429 = vst.msk [vmem:[#allocation2 + $0x28] sm:$0xf] %vm1418_vm6, %v1343_v61  ;;  %v1363_v26 = vpop.permute.xlu2 %1362 }
 0x1a9   : > { %1431 = vst.msk [vmem:[#allocation2 + $0x30] sm:$0xf] %vm1418_vm6, %v1347_v36  ;;  %v5156_v36 = vld [vmem:[#allocation57_spill] sm:$0xff] }
 0x1aa   : > { %1439 = vst.msk [vmem:[#allocation2 + $0x50] sm:$0xf] %vm1418_vm6, %v1363_v26 }
 0x1ad   : > { %1507 = vrot.lane.b32.xlu1 %v5155_v0, %s3230_s14  ;;  %1511 = vrot.lane.b32.xlu0 %v3963_v45, %s3230_s14 }
 0x1ae   : > { %1509 = vrot.lane.b32.xlu2 %v5156_v36, %s3230_s14 }
 0x1af   : > { %v1349_v35 = vpop.permute.xlu1 %1348  ;;  %v1353_v11 = vpop.permute.xlu0 %1352 }
 0x1b0   : > { %1432 = vst.msk [vmem:[#allocation2 + $0x34] sm:$0xf] %vm1418_vm6, %v1349_v35  ;;  %v1369_v61 = vpop.permute.xlu2 %1368 }
 0x1b1   : > { %1434 = vst.msk [vmem:[#allocation2 + $0x3c] sm:$0xf] %vm1418_vm6, %v1353_v11 }
 0x1b2   : > { %1442 = vst.msk [vmem:[#allocation2 + $0x5c] sm:$0xf] %vm1418_vm6, %v1369_v61 }
 0x1b5   : > { %1513 = vrot.lane.b32.xlu1 %v3946_v44, %s3230_s14  ;;  %1517 = vrot.lane.b32.xlu0 %v3998_v4, %s3230_s14 }
 0x1b6   : > { %1515 = vrot.lane.b32.xlu2 %v3981_v57, %s3230_s14 }
 0x1b7   : > { %v1355_v26 = vpop.permute.xlu1 %1354  ;;  %v1359_v51 = vpop.permute.xlu0 %1358 }
 0x1b8   : > { %1435 = vst.msk [vmem:[#allocation2 + $0x40] sm:$0xf] %vm1418_vm6, %v1355_v26  ;;  %v1375_v35 = vpop.permute.xlu2 %1374 }
 0x1b9   : > { %1437 = vst.msk [vmem:[#allocation2 + $0x48] sm:$0xf] %vm1418_vm6, %v1359_v51 }
 0x1ba   : > { %1445 = vst.msk [vmem:[#allocation2 + $0x68] sm:$0xf] %vm1418_vm6, %v1375_v35 }
 0x1bd   : > { %1634 = vrot.lane.b32.xlu1 %v3860_v39, %s3231_s15  ;;  %1767 = vrot.lane.b32.xlu0 %v3510_v42, %s3232_s16 }
 0x1be   : > { %1636 = vrot.lane.b32.xlu2 %v3856_v60, %s3231_s15 }
 0x1bf   : > { %v1361_v11 = vpop.permute.xlu1 %1360  ;;  %v1365_v61 = vpop.permute.xlu0 %1364 }
 0x1c0   : > { %1438 = vst.msk [vmem:[#allocation2 + $0x4c] sm:$0xf] %vm1418_vm6, %v1361_v11  ;;  %v1381_v51 = vpop.permute.xlu2 %1380 }
 0x1c1   : > { %1440 = vst.msk [vmem:[#allocation2 + $0x54] sm:$0xf] %vm1418_vm6, %v1365_v61 }
 0x1c2   : > { %1448 = vst.msk [vmem:[#allocation2 + $0x74] sm:$0xf] %vm1418_vm6, %v1381_v51 }
 0x1c5   : > { %1769 = vrot.lane.b32.xlu1 %v5119_v24, %s3232_s16  ;;  %1908 = vrot.lane.b32.xlu0 %v5150_v33, %s3233_s17 }
 0x1c6   : > { %1906 = vrot.lane.b32.xlu2 %v5151_v12, %s3233_s17 }
 0x1c7   : > { %v1367_v42 = vpop.permute.xlu1 %1366  ;;  %v1371_v39 = vpop.permute.xlu0 %1370 }
 0x1c8   : > { %1441 = vst.msk [vmem:[#allocation2 + $0x58] sm:$0xf] %vm1418_vm6, %v1367_v42  ;;  %v1462_v60 = vpop.permute.xlu2 %1461 }
 0x1c9   : > { %1443 = vst.msk [vmem:[#allocation2 + $0x60] sm:$0xf] %vm1418_vm6, %v1371_v39 }
 0x1ca   : > { %1558 = vst.msk [vmem:[#allocation2] sm:$0xf] %vm1557_vm7, %v1462_v60 }
 0x1cd   : > { %1602 = vrot.lane.b32.xlu1 %v3631_v40, %s3231_s15  ;;  %1735 = vrot.lane.b32.xlu0 %v3352_v6, %s3232_s16 }
 0x1ce   : > { %1604 = vrot.lane.b32.xlu2 %v3668_v59, %s3231_s15 }
 0x1cf   : > { %v1373_v24 = vpop.permute.xlu1 %1372  ;;  %v1377_v33 = vpop.permute.xlu0 %1376 }
 0x1d0   : > { %1444 = vst.msk [vmem:[#allocation2 + $0x64] sm:$0xf] %vm1418_vm6, %v1373_v24  ;;  %v1468_v12 = vpop.permute.xlu2 %1467 }
 0x1d1   : > { %1446 = vst.msk [vmem:[#allocation2 + $0x6c] sm:$0xf] %vm1418_vm6, %v1377_v33 }
 0x1d2   : > { %1561 = vst.msk [vmem:[#allocation2 + $0xc] sm:$0xf] %vm1557_vm7, %v1468_v12 }
 0x1d5   : > { %1737 = vrot.lane.b32.xlu1 %v3373_v10, %s3232_s16  ;;  %1876 = vrot.lane.b32.xlu0 %v5136_v27, %s3233_s17 }
 0x1d6   : > { %1874 = vrot.lane.b32.xlu2 %v5134_v2, %s3233_s17 }
 0x1d7   : > { %v1379_v40 = vpop.permute.xlu1 %1378  ;;  %v1383_v6 = vpop.permute.xlu0 %1382 }
 0x1d8   : > { %1447 = vst.msk [vmem:[#allocation2 + $0x70] sm:$0xf] %vm1418_vm6, %v1379_v40  ;;  %v1474_v26 = vpop.permute.xlu2 %1473 }
 0x1d9   : > { %1449 = vst.msk [vmem:[#allocation2 + $0x78] sm:$0xf] %vm1418_vm6, %v1383_v6 }
 0x1da   : > { %1564 = vst.msk [vmem:[#allocation2 + $0x18] sm:$0xf] %vm1557_vm7, %v1474_v26 }
 0x1dd   : > { %1638 = vrot.lane.b32.xlu1 %v3887_v41, %s3231_s15  ;;  %1771 = vrot.lane.b32.xlu0 %v5121_v63, %s3232_s16 }
 0x1de   : > { %1640 = vrot.lane.b32.xlu2 %v3898_v58, %s3231_s15 }
 0x1df   : > { %v1385_v10 = vpop.permute.xlu1 %1384  ;;  %v1464_v59 = vpop.permute.xlu0 %1463 }
 0x1e0   : > { %1450 = vst.msk [vmem:[#allocation2 + $0x7c] sm:$0xf] %vm1418_vm6, %v1385_v10  ;;  %v1480_v27 = vpop.permute.xlu2 %1479 }
 0x1e1   : > { %1559 = vst.msk [vmem:[#allocation2 + $0x4] sm:$0xf] %vm1557_vm7, %v1464_v59 }
 0x1e2   : > { %1567 = vst.msk [vmem:[#allocation2 + $0x24] sm:$0xf] %vm1557_vm7, %v1480_v27 }
 0x1e5   : > { %1773 = vrot.lane.b32.xlu1 %v5120_v48, %s3232_s16  ;;  %1912 = vrot.lane.b32.xlu0 %v5154_v31, %s3233_s17 }
 0x1e6   : > { %1910 = vrot.lane.b32.xlu2 %v5152_v50, %s3233_s17 }
 0x1e7   : > { %v1466_v41 = vpop.permute.xlu1 %1465  ;;  %v1470_v63 = vpop.permute.xlu0 %1469 }
 0x1e8   : > { %1560 = vst.msk [vmem:[#allocation2 + $0x8] sm:$0xf] %vm1557_vm7, %v1466_v41  ;;  %v1486_v2 = vpop.permute.xlu2 %1485 }
 0x1e9   : > { %1562 = vst.msk [vmem:[#allocation2 + $0x10] sm:$0xf] %vm1557_vm7, %v1470_v63 }
 0x1ea   : > { %1570 = vst.msk [vmem:[#allocation2 + $0x30] sm:$0xf] %vm1557_vm7, %v1486_v2 }
 0x1ed   : > { %1606 = vrot.lane.b32.xlu1 %v3666_v53, %s3231_s15  ;;  %1739 = vrot.lane.b32.xlu0 %v3360_v8, %s3232_s16 }
 0x1ee   : > { %1608 = vrot.lane.b32.xlu2 %v3697_v46, %s3231_s15 }
 0x1ef   : > { %v1472_v58 = vpop.permute.xlu1 %1471  ;;  %v1476_v48 = vpop.permute.xlu0 %1475 }
 0x1f0   : > { %1563 = vst.msk [vmem:[#allocation2 + $0x14] sm:$0xf] %vm1557_vm7, %v1472_v58  ;;  %v1492_v31 = vpop.permute.xlu2 %1491 }
 0x1f1   : > { %1565 = vst.msk [vmem:[#allocation2 + $0x1c] sm:$0xf] %vm1557_vm7, %v1476_v48 }
 0x1f2   : > { %1573 = vst.msk [vmem:[#allocation2 + $0x3c] sm:$0xf] %vm1557_vm7, %v1492_v31 }
 0x1f5   : > { %1741 = vrot.lane.b32.xlu1 %v3383_v13, %s3232_s16  ;;  %1880 = vrot.lane.b32.xlu0 %v5137_v21, %s3233_s17 }
 0x1f6   : > { %1878 = vrot.lane.b32.xlu2 %v5135_v3, %s3233_s17 }
 0x1f7   : > { %v1478_v53 = vpop.permute.xlu1 %1477  ;;  %v1482_v8 = vpop.permute.xlu0 %1481 }
 0x1f8   : > { %1566 = vst.msk [vmem:[#allocation2 + $0x20] sm:$0xf] %vm1557_vm7, %v1478_v53  ;;  %v1498_v50 = vpop.permute.xlu2 %1497 }
 0x1f9   : > { %1568 = vst.msk [vmem:[#allocation2 + $0x28] sm:$0xf] %vm1557_vm7, %v1482_v8 }
 0x1fa   : > { %1576 = vst.msk [vmem:[#allocation2 + $0x48] sm:$0xf] %vm1557_vm7, %v1498_v50 }
 0x1fd   : > { %1642 = vrot.lane.b32.xlu1 %v3894_v37, %s3231_s15  ;;  %1775 = vrot.lane.b32.xlu0 %v5122_v7, %s3232_s16 }
 0x1fe   : > { %1644 = vrot.lane.b32.xlu2 %v3928_v17, %s3231_s15 }
 0x1ff   : > { %v1484_v13 = vpop.permute.xlu1 %1483  ;;  %v1488_v46 = vpop.permute.xlu0 %1487 }
 0x200   : > { %1569 = vst.msk [vmem:[#allocation2 + $0x2c] sm:$0xf] %vm1557_vm7, %v1484_v13  ;;  %v1504_v21 = vpop.permute.xlu2 %1503  ;;  %v5160_v13 = vld [vmem:[#allocation60_spill] sm:$0xff] }
 0x201   : > { %1571 = vst.msk [vmem:[#allocation2 + $0x34] sm:$0xf] %vm1557_vm7, %v1488_v46 }
 0x202   : > { %1579 = vst.msk [vmem:[#allocation2 + $0x54] sm:$0xf] %vm1557_vm7, %v1504_v21 }
 0x205   : > { %1777 = vrot.lane.b32.xlu1 %v5124_v23, %s3232_s16  ;;  %1916 = vrot.lane.b32.xlu0 %v5155_v0, %s3233_s17 }
 0x206   : > { %1914 = vrot.lane.b32.xlu2 %v5153_v28, %s3233_s17 }
 0x207   : > { %v1490_v37 = vpop.permute.xlu1 %1489  ;;  %v1494_v7 = vpop.permute.xlu0 %1493 }
 0x208   : > { %1572 = vst.msk [vmem:[#allocation2 + $0x38] sm:$0xf] %vm1557_vm7, %v1490_v37  ;;  %v1510_v3 = vpop.permute.xlu2 %1509 }
 0x209   : > { %1574 = vst.msk [vmem:[#allocation2 + $0x40] sm:$0xf] %vm1557_vm7, %v1494_v7 }
 0x20a   : > { %1582 = vst.msk [vmem:[#allocation2 + $0x60] sm:$0xf] %vm1557_vm7, %v1510_v3  ;;  %v5161_v3 = vld [vmem:[#allocation20_spill] sm:$0xff] }
 0x20d   : > { %1610 = vrot.lane.b32.xlu1 %v3705_v1, %s3231_s15  ;;  %1743 = vrot.lane.b32.xlu0 %v3400_v16, %s3232_s16  ;;  %v2038_v16 = vld [vmem:[%s4953_s3 + $0x8] sm:$0xf] }
 0x20e   : > { %1612 = vrot.lane.b32.xlu2 %v3703_v9, %s3231_s15  ;;  %v2127_v1 = vunpack.c.l.b16 %v2038_v16 }
 0x20f   : > { %v1496_v17 = vpop.permute.xlu1 %1495  ;;  %v1500_v23 = vpop.permute.xlu0 %1499 }
 0x210   : > { %1575 = vst.msk [vmem:[#allocation2 + $0x44] sm:$0xf] %vm1557_vm7, %v1496_v17  ;;  %v1516_v0 = vpop.permute.xlu2 %1515  ;;  %v2129_v11 = vpack.c.b16 %v2127_v1, %v2127_v1  ;;  %v5162_v17 = vld [vmem:[#allocation23_spill] sm:$0xff] }
 0x211   : > { %1577 = vst.msk [vmem:[#allocation2 + $0x4c] sm:$0xf] %vm1557_vm7, %v1500_v23 }
 0x212   : > { %1585 = vst.msk [vmem:[#allocation2 + $0x6c] sm:$0xf] %vm1557_vm7, %v1516_v0  ;;  %v2911_v0 = vld [vmem:[%s4953_s3 + $0x14] sm:$0xf] }
 0x213   : > { %v2459_v16 = vunpack.c.l.b16 %v2911_v0 }
 0x215   : > { %1745 = vrot.lane.b32.xlu1 %v3387_v14, %s3232_s16  ;;  %1884 = vrot.lane.b32.xlu0 %v5138_v38, %s3233_s17  ;;  %v2182_v14 = vsel %vm2180_vm9, %v2129_v11, 0  ;;  %v3053_v38 = vld [vmem:[%s4953_s3] sm:$0xff]  ;;  %v2461_v11 = vpack.c.b16 %v2459_v16, %v2459_v16 }
 0x216   : > { %1882 = vrot.lane.b32.xlu2 %v5139_v56, %s3233_s17  ;;  %3072 = vmatpush.bf16.msra.mxu2 %v2182_v14  ;;  %v5182_v16 = vld [vmem:[#allocation26_spill] sm:$0xff] }
 0x217   : > { %v1502_v28 = vpop.permute.xlu1 %1501  ;;  %v1506_v35 = vpop.permute.xlu0 %1505  ;;  %2190 = vmatpush.bf16.msra.mxu0 %v2182_v14  ;;  %v2512_v14 = vsel %vm2180_vm9, %v2461_v11, 0 }
 0x218   : > { %1578 = vst.msk [vmem:[#allocation2 + $0x50] sm:$0xf] %vm1557_vm7, %v1502_v28  ;;  %v1637_v9 = vpop.permute.xlu2 %1636  ;;  %2520 = vmatpush.bf16.msra.mxu1 %v2512_v14  ;;  %3074 = vmatpush.bf16.msra.mxu3 %v2512_v14  ;;  %v5184_v14 = vld [vmem:[#allocation22_spill] sm:$0xff] }
 0x219   : > { %1580 = vst.msk [vmem:[#allocation2 + $0x58] sm:$0xf] %vm1557_vm7, %v1506_v35 }
 0x21a   : > { %1716 = vst.msk [vmem:[#allocation2 + $0x44] sm:$0xf] %vm1698_vm8, %v1637_v9  ;;  %3073 = vmatpush.bf16.msra.mxu2 %v3053_v38  ;;  %v5164_v9 = vld [vmem:[#allocation40_spill] sm:$0xff] }
 0x21b   : > { %2191 = vmatpush.bf16.msra.mxu0 %v3053_v38 }
 0x21d   : > { %1646 = vrot.lane.b32.xlu1 %v3938_v55, %s3231_s15  ;;  %1779 = vrot.lane.b32.xlu0 %v5123_v62, %s3232_s16 }
 0x21e   : > { %1648 = vrot.lane.b32.xlu2 %v3934_v30, %s3231_s15 }
 0x21f   : > { %v1508_v61 = vpop.permute.xlu1 %1507  ;;  %v1512_v56 = vpop.permute.xlu0 %1511 }
 0x220   : > { %1581 = vst.msk [vmem:[#allocation2 + $0x5c] sm:$0xf] %vm1557_vm7, %v1508_v61  ;;  %v1907_v51 = vpop.permute.xlu2 %1906  ;;  %v3070_v61 = vld [vmem:[%s4953_s3 + $0xc] sm:$0xff] }
 0x221   : > { %1583 = vst.msk [vmem:[#allocation2 + $0x64] sm:$0xf] %vm1557_vm7, %v1512_v56  ;;  %2521 = vmatpush.bf16.msra.mxu1 %v3070_v61  ;;  %3075 = vmatpush.bf16.msra.mxu3 %v3070_v61  ;;  %v5186_v61 = vld [vmem:[#allocation24_spill] sm:$0xff] }
 0x225   : > { %1781 = vrot.lane.b32.xlu1 %v5125_v43, %s3232_s16  ;;  %1920 = vrot.lane.b32.xlu0 %v3963_v45, %s3233_s17 }
 0x226   : > { %1918 = vrot.lane.b32.xlu2 %v5156_v36, %s3233_s17 }
 0x227   : > { %v1514_v55 = vpop.permute.xlu1 %1513  ;;  %v1518_v62 = vpop.permute.xlu0 %1517 }
 0x228   : > { %1584 = vst.msk [vmem:[#allocation2 + $0x68] sm:$0xf] %vm1557_vm7, %v1514_v55  ;;  %v1605_v42 = vpop.permute.xlu2 %1604 }
 0x229   : > { %1586 = vst.msk [vmem:[#allocation2 + $0x70] sm:$0xf] %vm1557_vm7, %v1518_v62  ;;  %v5165_v62 = vld [vmem:[#allocation39_spill] sm:$0xff] }
 0x22a   : > { %1700 = vst.msk [vmem:[#allocation2 + $0x4] sm:$0xf] %vm1698_vm8, %v1605_v42  ;;  %v5166_v42 = vld [vmem:[#allocation7_spill] sm:$0xff] }
 0x22d   : > { %1616 = vrot.lane.b32.xlu0 %v3741_v5, %s3231_s15 }
 0x22e   : > { %1614 = vrot.lane.b32.xlu2 %v3733_v49, %s3231_s15 }
 0x22f   : > { %v1635_v30 = vpop.permute.xlu1 %1634  ;;  %v1768_v43 = vpop.permute.xlu0 %1767 }
 0x230   : > { %1715 = vst.msk [vmem:[#allocation2 + $0x40] sm:$0xf] %vm1698_vm8, %v1635_v30  ;;  %v1875_v45 = vpop.permute.xlu2 %1874  ;;  %v5167_v30 = vld [vmem:[#allocation6_spill] sm:$0xff] }
 0x231   : > { %1848 = vst.msk [vmem:[#allocation2 + $0x40] sm:$0xf] %vm1831_vm10, %v1768_v43 }
 0x232   : > { %1987 = vst.msk [vmem:[#allocation2 + $0x40] sm:$0xf] %vm1970_vm11, %v1907_v51 }
 0x235   : > { %1886 = vrot.lane.b32.xlu0 %v5140_v34, %s3233_s17 }
 0x236   : > { %1749 = vrot.lane.b32.xlu2 %v3427_v22, %s3232_s16 }
 0x237   : > { %v1770_v36 = vpop.permute.xlu1 %1769  ;;  %v1909_v39 = vpop.permute.xlu0 %1908 }
 0x238   : > { %1849 = vst.msk [vmem:[#allocation2 + $0x44] sm:$0xf] %vm1831_vm10, %v1770_v36  ;;  %v1641_v5 = vpop.permute.xlu2 %1640 }
 0x239   : > { %1988 = vst.msk [vmem:[#allocation2 + $0x44] sm:$0xf] %vm1970_vm11, %v1909_v39  ;;  %v5168_v39 = vld [vmem:[#allocation41_spill] sm:$0xff] }
 0x23a   : > { %1718 = vst.msk [vmem:[#allocation2 + $0x4c] sm:$0xf] %vm1698_vm8, %v1641_v5  ;;  %v5169_v5 = vld [vmem:[#allocation43_spill] sm:$0xff] }
 0x23d   : > { %1650 = vrot.lane.b32.xlu0 %v3965_v54, %s3231_s15 }
 0x23f   : > { %v1603_v49 = vpop.permute.xlu1 %1602  ;;  %v1736_v60 = vpop.permute.xlu0 %1735 }
 0x240   : > { %1699 = vst.msk [vmem:[#allocation2] sm:$0xf] %vm1698_vm8, %v1603_v49  ;;  %v3062_v34 = vld [vmem:[#allocation2 + $0x40] sm:$0xff]  ;;  %v1911_v22 = vpop.permute.xlu2 %1910 }
 0x241   : > { %v3045_v24 = vld [vmem:[#allocation2 + $0x40] sm:$0xff]  ;;  %1832 = vst.msk [vmem:[#allocation2] sm:$0xf] %vm1831_vm10, %v1736_v60  ;;  %2438 = vrot.lane.b32.xlu1 %v3062_v34, %s3234_s30  ;;  %v5170_v60 = vld [vmem:[#allocation61_spill] sm:$0xff] }
 0x242   : > { %2901 = vmatmul.msk.bf16.vlgmr.msra.gmra.mxu2 %vm2131_vm12, %v3045_v24  ;;  %1971 = vst.msk [vmem:[#allocation2] sm:$0xf] %vm1970_vm11, %v1875_v45  ;;  %v1451_v34 = vrot.slane %v5170_v60, 1  ;;  %v5189_v60 = vld [vmem:[#allocation11_spill] sm:$0xff] }
 0x245   : > { %1785 = vrot.lane.b32.xlu0 %v5126_v32, %s3232_s16 }
 0x247   : > { %v1738_v54 = vpop.permute.xlu1 %1737  ;;  %v1877_v33 = vpop.permute.xlu0 %1876 }
 0x248   : > { %1833 = vst.msk [vmem:[#allocation2 + $0x4] sm:$0xf] %vm1831_vm10, %v1738_v54  ;;  %v1609_v12 = vpop.permute.xlu2 %1608 }
 0x249   : > { %1972 = vst.msk [vmem:[#allocation2 + $0x4] sm:$0xf] %vm1970_vm11, %v1877_v33  ;;  %1747 = vrot.lane.b32.xlu1 %v3410_v19, %s3232_s16 }
 0x24a   : > { %1702 = vst.msk [vmem:[#allocation2 + $0xc] sm:$0xf] %vm1698_vm8, %v1609_v12  ;;  %v5172_v12 = vld [vmem:[#allocation63_spill] sm:$0xff] }
 0x24f   : > { %v1639_v40 = vpop.permute.xlu1 %1638  ;;  %v1772_v6 = vpop.permute.xlu0 %1771 }
 0x250   : > { %1717 = vst.msk [vmem:[#allocation2 + $0x48] sm:$0xf] %vm1698_vm8, %v1639_v40  ;;  %v3054_v26 = vld [vmem:[#allocation2] sm:$0xff]  ;;  %v1879_v19 = vpop.permute.xlu2 %1878  ;;  %v5173_v40 = vld [vmem:[#allocation64_spill] sm:$0xff] }
 0x251   : > { %v3037_v10 = vld [vmem:[#allocation2] sm:$0xff]  ;;  %1850 = vst.msk [vmem:[#allocation2 + $0x48] sm:$0xf] %vm1831_vm10, %v1772_v6  ;;  %1888 = vrot.lane.b32.xlu1 %v5142_v52, %s3233_s17  ;;  %2422 = vrot.lane.b32.xlu2 %v3054_v26, %s3234_s30 }
 0x252   : > { %1989 = vst.msk [vmem:[#allocation2 + $0x48] sm:$0xf] %vm1970_vm11, %v1911_v22  ;;  %2893 = vmatmul.msk.bf16.vlgmr.msra.gmra.mxu0 %vm2131_vm12, %v3037_v10  ;;  %v5171_v22 = vld [vmem:[#allocation62_spill] sm:$0xff] }
 0x253   : > { %v1452_v54 = vrot.slane %v5171_v22, 1 }
 0x255   : > { %v1453_v6 = vsel %vm857_vm0, %v1451_v34, %v1452_v54  ;;  %v5190_v34 = vld [vmem:[#allocation49_spill] sm:$0xff] }
 0x256   : > { %v1457_v26 = vpack.c.bf16 %v1453_v6, %v1453_v6 }
 0x257   : > { %v1774_v32 = vpop.permute.xlu1 %1773  ;;  %v1913_v59 = vpop.permute.xlu0 %1912 }
 0x258   : > { %1851 = vst.msk [vmem:[#allocation2 + $0x4c] sm:$0xf] %vm1831_vm10, %v1774_v32  ;;  %v1645_v52 = vpop.permute.xlu2 %1644  ;;  %v5175_v32 = vld [vmem:[#allocation15_spill] sm:$0xff] }
 0x259   : > { %1990 = vst.msk [vmem:[#allocation2 + $0x4c] sm:$0xf] %vm1970_vm11, %v1913_v59  ;;  %1652 = vrot.lane.b32.xlu1 %v3976_v29, %s3231_s15  ;;  %1783 = vrot.lane.b32.xlu2 %v5128_v18, %s3232_s16  ;;  %v1456_v59 = vsel %vm857_vm0, %v1452_v54, 0.0 }
 0x25a   : > { %1720 = vst.msk [vmem:[#allocation2 + $0x54] sm:$0xf] %vm1698_vm8, %v1645_v52 }
 0x25f   : > { %v1607_v27 = vpop.permute.xlu1 %1606  ;;  %v1740_v41 = vpop.permute.xlu0 %1739 }
 0x260   : > { %1701 = vst.msk [vmem:[#allocation2 + $0x8] sm:$0xf] %vm1698_vm8, %v1607_v27  ;;  %v3063_v63 = vld [vmem:[#allocation2 + $0x48] sm:$0xff]  ;;  %v1915_v29 = vpop.permute.xlu2 %1914  ;;  %v1458_v27 = vpack.c.bf16 %v1456_v59, %v1456_v59 }
 0x261   : > { %v3046_v2 = vld [vmem:[#allocation2 + $0x48] sm:$0xff]  ;;  %1834 = vst.msk [vmem:[#allocation2 + $0x8] sm:$0xf] %vm1831_vm10, %v1740_v41  ;;  %1922 = vrot.lane.b32.xlu1 %v3946_v44, %s3233_s17  ;;  %1924 = vrot.lane.b32.xlu2 %v3981_v57, %s3233_s17 }
 0x262   : > { %1973 = vst.msk [vmem:[#allocation2 + $0x8] sm:$0xf] %vm1970_vm11, %v1879_v19  ;;  %2440 = vrot.lane.b32.xlu0 %v3063_v63, %s3234_s30  ;;  %2902 = vmatmul.msk.bf16.gmra.mxu2 %vm2131_vm12, %v3046_v2  ;;  %v5174_v19 = vld [vmem:[#allocation12_spill] sm:$0xff] }
 0x263   : > { %v5176_v2 = vld [vmem:[#allocation44_spill] sm:$0xff] }
 0x267   : > { %v1742_v18 = vpop.permute.xlu1 %1741  ;;  %v1881_v58 = vpop.permute.xlu0 %1880 }
 0x268   : > { %1835 = vst.msk [vmem:[#allocation2 + $0xc] sm:$0xf] %vm1831_vm10, %v1742_v18  ;;  %v1613_v44 = vpop.permute.xlu2 %1612 }
 0x269   : > { %1974 = vst.msk [vmem:[#allocation2 + $0xc] sm:$0xf] %vm1970_vm11, %v1881_v58  ;;  %1618 = vrot.lane.b32.xlu1 %v3739_v47, %s3231_s15  ;;  %1620 = vrot.lane.b32.xlu2 %v3772_v15, %s3231_s15  ;;  %v5157_v47 = vld [vmem:[#allocation38_spill] sm:$0xff] }
 0x26a   : > { %1751 = vrot.lane.b32.xlu0 %v3414_v20, %s3232_s16  ;;  %1704 = vst.msk [vmem:[#allocation2 + $0x14] sm:$0xf] %vm1698_vm8, %v1613_v44  ;;  %v5158_v20 = vld [vmem:[#allocation37_spill] sm:$0xff]  ;;  %v5177_v58 = vld [vmem:[#allocation46_spill] sm:$0xff]  ;;  %v5178_v44 = vld [vmem:[#allocation8_spill] sm:$0xff] }
 0x26f   : > { %v1643_v57 = vpop.permute.xlu1 %1642  ;;  %v1776_v48 = vpop.permute.xlu0 %1775 }
 0x270   : > { %1719 = vst.msk [vmem:[#allocation2 + $0x50] sm:$0xf] %vm1698_vm8, %v1643_v57  ;;  %v3038_v31 = vld [vmem:[#allocation2 + $0x8] sm:$0xff]  ;;  %v1883_v15 = vpop.permute.xlu2 %1882  ;;  %v5179_v57 = vld [vmem:[#allocation10_spill] sm:$0xff] }
 0x271   : > { %1852 = vst.msk [vmem:[#allocation2 + $0x50] sm:$0xf] %vm1831_vm10, %v1776_v48  ;;  %1753 = vrot.lane.b32.xlu1 %v3437_v25, %s3232_s16  ;;  %1890 = vrot.lane.b32.xlu2 %v5157_v47, %s3233_s17  ;;  %v3055_v53 = vld [vmem:[#allocation2 + $0x8] sm:$0xff]  ;;  %v5159_v25 = vld [vmem:[#allocation58_spill] sm:$0xff] }
 0x272   : > { %1991 = vst.msk [vmem:[#allocation2 + $0x50] sm:$0xf] %vm1970_vm11, %v1915_v29  ;;  %1892 = vrot.lane.b32.xlu0 %v5158_v20, %s3233_s17  ;;  %2894 = vmatmul.msk.bf16.gmra.mxu0 %vm2131_vm12, %v3038_v31  ;;  %v5180_v47 = vld [vmem:[#allocation42_spill] sm:$0xff] }
 0x273   : > { %v4604_v20 = vld [vmem:[%s4954_s4] ss:$0 sm:$0xff] }
 0x277   : > { %v1778_v8 = vpop.permute.xlu1 %1777  ;;  %v1917_v50 = vpop.permute.xlu0 %1916 }
 0x278   : > { %1853 = vst.msk [vmem:[#allocation2 + $0x54] sm:$0xf] %vm1831_vm10, %v1778_v8  ;;  %v1649_v46 = vpop.permute.xlu2 %1648 }
 0x279   : > { %1992 = vst.msk [vmem:[#allocation2 + $0x54] sm:$0xf] %vm1970_vm11, %v1917_v50  ;;  %2424 = vrot.lane.b32.xlu1 %v3055_v53, %s3234_s30  ;;  %1654 = vrot.lane.b32.xlu2 %v5159_v25, %s3231_s15 }
 0x27a   : > { %1656 = vrot.lane.b32.xlu0 %v5160_v13, %s3231_s15  ;;  %1722 = vst.msk [vmem:[#allocation2 + $0x5c] sm:$0xf] %vm1698_vm8, %v1649_v46 }
 0x27f   : > { %v1611_v21 = vpop.permute.xlu1 %1610  ;;  %v1744_v37 = vpop.permute.xlu0 %1743 }
 0x280   : > { %1703 = vst.msk [vmem:[#allocation2 + $0x10] sm:$0xf] %vm1698_vm8, %v1611_v21  ;;  %v3047_v7 = vld [vmem:[#allocation2 + $0x50] sm:$0xff]  ;;  %v1919_v23 = vpop.permute.xlu2 %1918 }
 0x281   : > { %1836 = vst.msk [vmem:[#allocation2 + $0x10] sm:$0xf] %vm1831_vm10, %v1744_v37  ;;  %1787 = vrot.lane.b32.xlu1 %v5161_v3, %s3232_s16  ;;  %1789 = vrot.lane.b32.xlu2 %v5162_v17, %s3232_s16  ;;  %v3064_v1 = vld [vmem:[#allocation2 + $0x50] sm:$0xff] }
 0x282   : > { %1975 = vst.msk [vmem:[#allocation2 + $0x10] sm:$0xf] %vm1970_vm11, %v1883_v15  ;;  %1926 = vrot.lane.b32.xlu0 %v3998_v4, %s3233_s17  ;;  %2903 = vmatmul.msk.bf16.gmra.mxu2 %vm2131_vm12, %v3047_v7  ;;  %v5163_v4 = vld [vmem:[#allocation59_spill] sm:$0xff] }
 0x283   : > { %v5181_v15 = vld [vmem:[#allocation47_spill] sm:$0xff] }
 0x287   : > { %v1746_v28 = vpop.permute.xlu1 %1745  ;;  %v1885_v35 = vpop.permute.xlu0 %1884 }
 0x288   : > { %1837 = vst.msk [vmem:[#allocation2 + $0x14] sm:$0xf] %vm1831_vm10, %v1746_v28  ;;  %v1615_v38 = vpop.permute.xlu2 %1614 }
 0x289   : > { %1976 = vst.msk [vmem:[#allocation2 + $0x14] sm:$0xf] %vm1970_vm11, %v1885_v35  ;;  %1928 = vrot.lane.b32.xlu1 %v5163_v4, %s3233_s17  ;;  %2442 = vrot.lane.b32.xlu2 %v3064_v1, %s3234_s30  ;;  %v5183_v1 = vmov 0.0|0.0  }
 0x28a   : > { %1622 = vrot.lane.b32.xlu0 %v5164_v9, %s3231_s15  ;;  %1705 = vst.msk [vmem:[#allocation2 + $0x18] sm:$0xf] %vm1698_vm8, %v1615_v38  ;;  %v5185_v38 = vld [vmem:[#allocation25_spill] sm:$0xff] }
 0x28f   : > { %v1647_v56 = vpop.permute.xlu1 %1646  ;;  %v1780_v51 = vpop.permute.xlu0 %1779 }
 0x290   : > { %v3039_v55 = vld [vmem:[#allocation2 + $0x10] sm:$0xff]  ;;  %1721 = vst.msk [vmem:[#allocation2 + $0x58] sm:$0xf] %vm1698_vm8, %v1647_v56  ;;  %v1750_v24 = vpop.permute.xlu2 %1749 }
 0x291   : > { %1854 = vst.msk [vmem:[#allocation2 + $0x58] sm:$0xf] %vm1831_vm10, %v1780_v51  ;;  %1624 = vrot.lane.b32.xlu1 %v5165_v62, %s3231_s15  ;;  %1755 = vrot.lane.b32.xlu2 %v5166_v42, %s3232_s16  ;;  %v3056_v43 = vld [vmem:[#allocation2 + $0x10] sm:$0xff]  ;;  %v5187_v42 = vld [vmem:[#allocation45_spill] sm:$0xff] }
 0x292   : > { %1993 = vst.msk [vmem:[#allocation2 + $0x58] sm:$0xf] %vm1970_vm11, %v1919_v23  ;;  %1757 = vrot.lane.b32.xlu0 %v5167_v30, %s3232_s16  ;;  %2895 = vmatmul.msk.bf16.gmra.mxu0 %vm2131_vm12, %v3039_v55 }
 0x297   : > { %v1782_v45 = vpop.permute.xlu1 %1781  ;;  %v1921_v36 = vpop.permute.xlu0 %1920 }
 0x298   : > { %1855 = vst.msk [vmem:[#allocation2 + $0x5c] sm:$0xf] %vm1831_vm10, %v1782_v45 }
 0x299   : > { %1994 = vst.msk [vmem:[#allocation2 + $0x5c] sm:$0xf] %vm1970_vm11, %v1921_v36  ;;  %1894 = vrot.lane.b32.xlu1 %v5168_v39, %s3233_s17  ;;  %1896 = vrot.lane.b32.xlu2 %v5169_v5, %s3233_s17 }
 0x29a   : > { %2426 = vrot.lane.b32.xlu0 %v3056_v43, %s3234_s30  ;;  %v5188_v43 = vld [vmem:[#allocation50_spill] sm:$0xff] }
 0x29f   : > { %v1617_v49 = vpop.permute.xlu0 %1616 }
 0x2a0   : > { %v3048_v33 = vld [vmem:[#allocation2 + $0x58] sm:$0xff]  ;;  %1706 = vst.msk [vmem:[#allocation2 + $0x1c] sm:$0xf] %vm1698_vm8, %v1617_v49 }
 0x2a1   : > { %1839 = vst.msk [vmem:[#allocation2 + $0x1c] sm:$0xf] %vm1831_vm10, %v1750_v24  ;;  %1519 = vrot.lane.b32.xlu1 %v5163_v4, %s3230_s14  ;;  %1658 = vrot.lane.b32.xlu2 %v5172_v12, %s3231_s15  ;;  %v3065_v41 = vld [vmem:[#allocation2 + $0x58] sm:$0xff] }
 0x2a2   : > { %1660 = vrot.lane.b32.xlu0 %v5173_v40, %s3231_s15  ;;  %2904 = vmatmul.msk.bf16.gmra.mxu2 %vm2131_vm12, %v3048_v33  ;;  %v5191_v12 = vld [vmem:[#allocation9_spill] sm:$0xff] }
 0x2a7   : > { %v1887_v10 = vpop.permute.xlu0 %1886 }
 0x2a9   : > { %1791 = vrot.lane.b32.xlu1 %v5174_v19, %s3232_s16  ;;  %1793 = vrot.lane.b32.xlu2 %v5175_v32, %s3232_s16 }
 0x2aa   : > { %1930 = vrot.lane.b32.xlu0 %v1457_v26, %s3233_s17 }
 0x2ab   : > { %v2423_v52 = vpop.permute.xlu2 %2422 }
 0x2ac   : > { %2980 = vmatmul.msk.bf16.vlgmr.msra.gmra.mxu1 %vm2131_vm12, %v2423_v52 }
 0x2af   : > { %v1651_v63 = vpop.permute.xlu0 %1650 }
 0x2b0   : > { %1723 = vst.msk [vmem:[#allocation2 + $0x60] sm:$0xf] %vm1698_vm8, %v1651_v63 }
 0x2b1   : > { %1932 = vrot.lane.b32.xlu1 %v1458_v27, %s3233_s17  ;;  %2444 = vrot.lane.b32.xlu2 %v3065_v41, %s3234_s30 }
 0x2b2   : > { %1626 = vrot.lane.b32.xlu0 %v5176_v2, %s3231_s15 }
 0x2b3   : > { %v2439_v29 = vpop.permute.xlu1 %2438  ;;  %v1784_v18 = vpop.permute.xlu2 %1783 }
 0x2b4   : > { %2988 = vmatmul.msk.bf16.vlgmr.msra.gmra.mxu3 %vm2131_vm12, %v2439_v29  ;;  %1856 = vst.msk [vmem:[#allocation2 + $0x60] sm:$0xf] %vm1831_vm10, %v1784_v18 }
 0x2b7   : > { %v1786_v13 = vpop.permute.xlu0 %1785 }
 0x2b9   : > { %1628 = vrot.lane.b32.xlu1 %v5177_v58, %s3231_s15  ;;  %1759 = vrot.lane.b32.xlu2 %v5178_v44, %s3232_s16 }
 0x2ba   : > { %1761 = vrot.lane.b32.xlu0 %v5179_v57, %s3232_s16 }
 0x2bb   : > { %v1748_v48 = vpop.permute.xlu1 %1747  ;;  %v1925_v31 = vpop.permute.xlu2 %1924 }
 0x2bc   : > { %1838 = vst.msk [vmem:[#allocation2 + $0x18] sm:$0xf] %vm1831_vm10, %v1748_v48 }
 0x2bd   : > { %1977 = vst.msk [vmem:[#allocation2 + $0x18] sm:$0xf] %vm1970_vm11, %v1887_v10 }
 0x2c1   : > { %1898 = vrot.lane.b32.xlu1 %v5180_v47, %s3233_s17  ;;  %1900 = vrot.lane.b32.xlu2 %v5181_v15, %s3233_s17 }
 0x2c3   : > { %v1889_v53 = vpop.permute.xlu1 %1888  ;;  %v1621_v8 = vpop.permute.xlu2 %1620 }
 0x2c4   : > { %1978 = vst.msk [vmem:[#allocation2 + $0x1c] sm:$0xf] %vm1970_vm11, %v1889_v53 }
 0x2c5   : > { %v2233_v50 = vpop.f32.mrf.mxu2  ;;  %1708 = vst.msk [vmem:[#allocation2 + $0x24] sm:$0xf] %vm1698_vm8, %v1621_v8 }
 0x2c6   : > { %v2234_v25 = vadd.f32 %v4604_v20, %v2233_v50 }
 0x2c8   : > { %2290 = vst.msk [vmem:[%s4611_s23 + $0x100] sm:$0xff] %vm2273_vm13, %v2234_v25 }
 0x2c9   : > { %1521 = vrot.lane.b32.xlu1 %v1457_v26, %s3230_s14  ;;  %1523 = vrot.lane.b32.xlu2 %v1458_v27, %s3230_s14  ;;  %v5192_v27 = vld [vmem:[#allocation48_spill] sm:$0xff]  ;;  %s3071_s14 = sshll.u32 %s3214_s1, 9  ;;  %s2637_s1 = scalar_lea.sflag [#allocation4], %s365_s10 }
 0x2cb   : > { %v1653_v46 = vpop.permute.xlu1 %1652  ;;  %v3057_v21 = vld [vmem:[#allocation2 + $0x18] sm:$0xff]  ;;  %v1891_v7 = vpop.permute.xlu2 %1890 }
 0x2cc   : > { %v3040_v37 = vld [vmem:[#allocation2 + $0x18] sm:$0xff]  ;;  %1724 = vst.msk [vmem:[#allocation2 + $0x64] sm:$0xf] %vm1698_vm8, %v1653_v46  ;;  %2428 = vrot.lane.b32.xlu0 %v3057_v21, %s3234_s30 }
 0x2cd   : > { %v2235_v3 = vpop.f32.mrf.mxu2  ;;  %2896 = vmatmul.msk.bf16.gmra.mxu0 %vm2131_vm12, %v3040_v37  ;;  %1857 = vst.msk [vmem:[#allocation2 + $0x64] sm:$0xf] %vm1831_vm10, %v1786_v13 }
 0x2ce   : > { %v2236_v17 = vadd.f32 %v4604_v20, %v2235_v3  ;;  %1996 = vst.msk [vmem:[#allocation2 + $0x64] sm:$0xf] %vm1970_vm11, %v1925_v31 }
 0x2cf   : > { %v2193_v23 = vpop.f32.mrf.mxu0 }
 0x2d0   : > { %2291 = vst.msk [vmem:[%s4611_s23 + $0x108] sm:$0xff] %vm2273_vm13, %v2236_v17  ;;  %v2194_v0 = vadd.f32 %v4604_v20, %v2193_v23 }
 0x2d1   : > { %1664 = vrot.lane.b32.xlu1 %v5182_v16, %s3231_s15  ;;  %1795 = vrot.lane.b32.xlu2 %v5183_v1, %s3232_s16 }
 0x2d2   : > { %2274 = vst.msk [vmem:[%s4611_s23] sm:$0xff] %vm2273_vm13, %v2194_v0 }
 0x2d3   : > { %v1923_v28 = vpop.permute.xlu1 %1922  ;;  %v1655_v35 = vpop.permute.xlu2 %1654 }
 0x2d4   : > { %1995 = vst.msk [vmem:[#allocation2 + $0x60] sm:$0xf] %vm1970_vm11, %v1923_v28  ;;  %v2441_v11 = vpop.permute.xlu0 %2440  ;;  %1662 = vrot.lane.b32.xlu0 %v5184_v14, %s3231_s15 }
 0x2d5   : > { %1725 = vst.msk [vmem:[#allocation2 + $0x68] sm:$0xf] %vm1698_vm8, %v1655_v35  ;;  %2989 = vmatmul.msk.bf16.gmra.mxu3 %vm2131_vm12, %v2441_v11 }
 0x2d7   : > { %v2195_v4 = vpop.f32.mrf.mxu0 }
 0x2d8   : > { %v2196_v9 = vadd.f32 %v4604_v20, %v2195_v4 }
 0x2d9   : > { %1934 = vrot.lane.b32.xlu1 %v5185_v38, %s3233_s17  ;;  %1936 = vrot.lane.b32.xlu2 %v5186_v61, %s3233_s17 }
 0x2da   : > { %2275 = vst.msk [vmem:[%s4611_s23 + $0x8] sm:$0xff] %vm2273_vm13, %v2196_v9 }
 0x2db   : > { %v1619_v56 = vpop.permute.xlu1 %1618  ;;  %v3049_v51 = vld [vmem:[#allocation2 + $0x60] sm:$0xff]  ;;  %v1790_v55 = vpop.permute.xlu2 %1789 }
 0x2dc   : > { %1707 = vst.msk [vmem:[#allocation2 + $0x20] sm:$0xf] %vm1698_vm8, %v1619_v56  ;;  %v1752_v62 = vpop.permute.xlu0 %1751  ;;  %1797 = vrot.lane.b32.xlu0 %v5183_v1, %s3232_s16  ;;  %2905 = vmatmul.msk.bf16.gmra.mxu2 %vm2131_vm12, %v3049_v51  ;;  %v3066_v30 = vld [vmem:[#allocation2 + $0x60] sm:$0xff] }
 0x2dd   : > { %1840 = vst.msk [vmem:[#allocation2 + $0x20] sm:$0xf] %vm1831_vm10, %v1752_v62 }
 0x2de   : > { %1979 = vst.msk [vmem:[#allocation2 + $0x20] sm:$0xf] %vm1970_vm11, %v1891_v7 }
 0x2e1   : > { %1630 = vrot.lane.b32.xlu1 %v5187_v42, %s3231_s15  ;;  %1632 = vrot.lane.b32.xlu2 %v5188_v43, %s3231_s15 }
 0x2e3   : > { %v1754_v45 = vpop.permute.xlu1 %1753  ;;  %v2443_v36 = vpop.permute.xlu2 %2442 }
 0x2e4   : > { %1841 = vst.msk [vmem:[#allocation2 + $0x24] sm:$0xf] %vm1831_vm10, %v1754_v45  ;;  %v1893_v39 = vpop.permute.xlu0 %1892  ;;  %2446 = vrot.lane.b32.xlu0 %v3066_v30, %s3234_s30 }
 0x2e5   : > { %1980 = vst.msk [vmem:[#allocation2 + $0x24] sm:$0xf] %vm1970_vm11, %v1893_v39  ;;  %v2238_v5 = vpop.f32.mrf.mxu2  ;;  %2990 = vmatmul.msk.bf16.gmra.mxu3 %vm2131_vm12, %v2443_v36 }
 0x2e6   : > { %v2239_v49 = vadd.f32 %v4604_v20, %v2238_v5 }
 0x2e8   : > { %2292 = vst.msk [vmem:[%s4611_s23 + $0x120] sm:$0xff] %vm2273_vm13, %v2239_v49 }
 0x2e9   : > { %1765 = vrot.lane.b32.xlu1 %v5189_v60, %s3232_s16  ;;  %1902 = vrot.lane.b32.xlu2 %v5190_v34, %s3233_s17 }
 0x2eb   : > { %v2425_v24 = vpop.permute.xlu1 %2424  ;;  %v1756_v22 = vpop.permute.xlu2 %1755 }
 0x2ec   : > { %v1657_v54 = vpop.permute.xlu0 %1656  ;;  %2981 = vmatmul.msk.bf16.gmra.mxu1 %vm2131_vm12, %v2425_v24  ;;  %v3041_v33 = vld [vmem:[#allocation2 + $0x20] sm:$0xff]  ;;  %1763 = vrot.lane.b32.xlu0 %v5191_v12, %s3232_s16 }
 0x2ed   : > { %1726 = vst.msk [vmem:[#allocation2 + $0x6c] sm:$0xf] %vm1698_vm8, %v1657_v54  ;;  %v2240_v40 = vpop.f32.mrf.mxu2  ;;  %v3058_v6 = vld [vmem:[#allocation2 + $0x20] sm:$0xff]  ;;  %2897 = vmatmul.msk.bf16.gmra.mxu0 %vm2131_vm12, %v3041_v33 }
 0x2ee   : > { %1859 = vst.msk [vmem:[#allocation2 + $0x6c] sm:$0xf] %vm1831_vm10, %v1790_v55  ;;  %v2241_v26 = vadd.f32 %v4604_v20, %v2240_v40 }
 0x2ef   : > { %v2198_v10 = vpop.f32.mrf.mxu0 }
 0x2f0   : > { %2293 = vst.msk [vmem:[%s4611_s23 + $0x128] sm:$0xff] %vm2273_vm13, %v2241_v26  ;;  %v2199_v19 = vadd.f32 %v4604_v20, %v2198_v10 }
 0x2f1   : > { %2430 = vrot.lane.b32.xlu1 %v3058_v6, %s3234_s30 }
 0x2f2   : > { %2276 = vst.msk [vmem:[%s4611_s23 + $0x20] sm:$0xff] %vm2273_vm13, %v2199_v19 }
 0x2f3   : > { %v1788_v32 = vpop.permute.xlu1 %1787  ;;  %v1897_v59 = vpop.permute.xlu2 %1896 }
 0x2f4   : > { %1858 = vst.msk [vmem:[#allocation2 + $0x68] sm:$0xf] %vm1831_vm10, %v1788_v32  ;;  %v1927_v52 = vpop.permute.xlu0 %1926  ;;  %1904 = vrot.lane.b32.xlu0 %v5192_v27, %s3233_s17  ;;  %s2652_s17 = scalar_lea.hbm %s4955_s5, %s3071_s14 }
 0x2f5   : > { %1997 = vst.msk [vmem:[#allocation2 + $0x68] sm:$0xf] %vm1970_vm11, %v1927_v52  ;;  %s2655_s27 = sshll.u32 %s2652_s17, 4  ;;  %s2656_s27 = int_to_ptr.hbm [resolvable:$true] %s2655_s27 }
 0x2f7   : > { %v2200_v41 = vpop.f32.mrf.mxu0 }
 0x2f8   : > { %v2201_v63 = vadd.f32 %v4604_v20, %v2200_v41 }
 0x2fa   : > { %2277 = vst.msk [vmem:[%s4611_s23 + $0x28] sm:$0xff] %vm2273_vm13, %v2201_v63 }
 0x2fb   : > { %v1929_v2 = vpop.permute.xlu1 %1928  ;;  %v1659_v29 = vpop.permute.xlu2 %1658 }
 0x2fc   : > { %1998 = vst.msk [vmem:[#allocation2 + $0x6c] sm:$0xf] %vm1970_vm11, %v1929_v2  ;;  %v1623_v18 = vpop.permute.xlu0 %1622 }
 0x2fd   : > { %1727 = vst.msk [vmem:[#allocation2 + $0x70] sm:$0xf] %vm1698_vm8, %v1659_v29 }
 0x2fe   : > { %1709 = vst.msk [vmem:[#allocation2 + $0x28] sm:$0xf] %vm1698_vm8, %v1623_v18 }
 0x2ff   : > { %1842 = vst.msk [vmem:[#allocation2 + $0x28] sm:$0xf] %vm1831_vm10, %v1756_v22 }
 0x303   : > { %v1625_v58 = vpop.permute.xlu1 %1624  ;;  %v3050_v44 = vld [vmem:[#allocation2 + $0x68] sm:$0xff]  ;;  %v1794_v57 = vpop.permute.xlu2 %1793 }
 0x304   : > { %v3067_v48 = vld [vmem:[#allocation2 + $0x68] sm:$0xff]  ;;  %1710 = vst.msk [vmem:[#allocation2 + $0x2c] sm:$0xf] %vm1698_vm8, %v1625_v58  ;;  %v1758_v31 = vpop.permute.xlu0 %1757  ;;  %2906 = vmatmul.msk.bf16.gmra.mxu2 %vm2131_vm12, %v3050_v44 }
 0x305   : > { %1843 = vst.msk [vmem:[#allocation2 + $0x2c] sm:$0xf] %vm1831_vm10, %v1758_v31  ;;  %2448 = vrot.lane.b32.xlu2 %v3067_v48, %s3234_s30  ;;  %v2243_v47 = vpop.f32.mrf.mxu2 }
 0x306   : > { %1982 = vst.msk [vmem:[#allocation2 + $0x2c] sm:$0xf] %vm1970_vm11, %v1897_v59  ;;  %v2244_v15 = vadd.f32 %v4604_v20, %v2243_v47 }
 0x308   : > { %2294 = vst.msk [vmem:[%s4611_s23 + $0x140] sm:$0xff] %vm2273_vm13, %v2244_v15 }
 0x30b   : > { %v1895_v53 = vpop.permute.xlu1 %1894  ;;  %v2445_v8 = vpop.permute.xlu2 %2444 }
 0x30c   : > { %1981 = vst.msk [vmem:[#allocation2 + $0x28] sm:$0xf] %vm1970_vm11, %v1895_v53  ;;  %v2427_v50 = vpop.permute.xlu0 %2426  ;;  %2991 = vmatmul.msk.bf16.gmra.mxu3 %vm2131_vm12, %v2445_v8 }
 0x30d   : > { %2982 = vmatmul.msk.bf16.gmra.mxu1 %vm2131_vm12, %v2427_v50  ;;  %v2245_v25 = vpop.f32.mrf.mxu2 }
 0x30e   : > { %v2246_v13 = vadd.f32 %v4604_v20, %v2245_v25 }
 0x30f   : > { %v2203_v46 = vpop.f32.mrf.mxu0 }
 0x310   : > { %2295 = vst.msk [vmem:[%s4611_s23 + $0x148] sm:$0xff] %vm2273_vm13, %v2246_v13  ;;  %v2204_v21 = vadd.f32 %v4604_v20, %v2203_v46 }
 0x312   : > { %2278 = vst.msk [vmem:[%s4611_s23 + $0x40] sm:$0xff] %vm2273_vm13, %v2204_v21 }
 0x313   : > { %v1520_v37 = vpop.permute.xlu1 %1519  ;;  %v3059_v7 = vld [vmem:[#allocation2 + $0x28] sm:$0xff]  ;;  %v1760_v17 = vpop.permute.xlu2 %1759 }
 0x314   : > { %v3042_v3 = vld [vmem:[#allocation2 + $0x28] sm:$0xff]  ;;  %1587 = vst.msk [vmem:[#allocation2 + $0x74] sm:$0xf] %vm1557_vm7, %v1520_v37  ;;  %v1661_v23 = vpop.permute.xlu0 %1660  ;;  %2432 = vrot.lane.b32.xlu0 %v3059_v7, %s3234_s30 }
 0x315   : > { %2898 = vmatmul.msk.bf16.gmra.mxu0 %vm2131_vm12, %v3042_v3  ;;  %1728 = vst.msk [vmem:[#allocation2 + $0x74] sm:$0xf] %vm1698_vm8, %v1661_v23 }
 0x316   : > { %1861 = vst.msk [vmem:[#allocation2 + $0x74] sm:$0xf] %vm1831_vm10, %v1794_v57 }
 0x317   : > { %v2205_v0 = vpop.f32.mrf.mxu0 }
 0x318   : > { %v2206_v16 = vadd.f32 %v4604_v20, %v2205_v0 }
 0x31a   : > { %2279 = vst.msk [vmem:[%s4611_s23 + $0x48] sm:$0xff] %vm2273_vm13, %v2206_v16 }
 0x31b   : > { %v1792_v1 = vpop.permute.xlu1 %1791  ;;  %v1901_v28 = vpop.permute.xlu2 %1900 }
 0x31c   : > { %1860 = vst.msk [vmem:[#allocation2 + $0x70] sm:$0xf] %vm1831_vm10, %v1792_v1  ;;  %v1931_v35 = vpop.permute.xlu0 %1930 }
 0x31d   : > { %1999 = vst.msk [vmem:[#allocation2 + $0x70] sm:$0xf] %vm1970_vm11, %v1931_v35 }
 0x323   : > { %v1933_v11 = vpop.permute.xlu1 %1932  ;;  %v1524_v14 = vpop.permute.xlu2 %1523 }
 0x324   : > { %2000 = vst.msk [vmem:[#allocation2 + $0x74] sm:$0xf] %vm1970_vm11, %v1933_v11  ;;  %v1627_v4 = vpop.permute.xlu0 %1626 }
 0x325   : > { %1711 = vst.msk [vmem:[#allocation2 + $0x30] sm:$0xf] %vm1698_vm8, %v1627_v4  ;;  %v2248_v9 = vpop.f32.mrf.mxu2 }
 0x326   : > { %1844 = vst.msk [vmem:[#allocation2 + $0x30] sm:$0xf] %vm1831_vm10, %v1760_v17  ;;  %v2249_v38 = vadd.f32 %v4604_v20, %v2248_v9 }
 0x327   : > { %1589 = vst.msk [vmem:[#allocation2 + $0x7c] sm:$0xf] %vm1557_vm7, %v1524_v14 }
 0x328   : > { %2296 = vst.msk [vmem:[%s4611_s23 + $0x160] sm:$0xff] %vm2273_vm13, %v2249_v38 }
 0x329   : > { %v2523_v61 = vpop.f32.mrf.mxu1 }
 0x32a   : > { %v2524_v56 = vadd.f32 %v4604_v20, %v2523_v61 }
 0x32b   : > { %v1629_v51 = vpop.permute.xlu1 %1628  ;;  %v3068_v55 = vld [vmem:[#allocation2 + $0x70] sm:$0xff]  ;;  %v1796_v42 = vpop.permute.xlu2 %1795 }
 0x32c   : > { %v3051_v62 = vld [vmem:[#allocation2 + $0x70] sm:$0xff]  ;;  %1712 = vst.msk [vmem:[#allocation2 + $0x34] sm:$0xf] %vm1698_vm8, %v1629_v51  ;;  %v1762_v30 = vpop.permute.xlu0 %1761  ;;  %2450 = vrot.lane.b32.xlu1 %v3068_v55, %s3234_s30 }
 0x32d   : > { %2996 = vst.msk [vmem:[%s4611_s23 + $0x10] sm:$0xff] %vm2273_vm13, %v2524_v56  ;;  %2907 = vmatmul.msk.bf16.gmra.mxu2 %vm2131_vm12, %v3051_v62  ;;  %v2250_v43 = vpop.f32.mrf.mxu2 }
 0x32e   : > { %1845 = vst.msk [vmem:[#allocation2 + $0x34] sm:$0xf] %vm1831_vm10, %v1762_v30  ;;  %v2251_v45 = vadd.f32 %v4604_v20, %v2250_v43 }
 0x32f   : > { %1984 = vst.msk [vmem:[#allocation2 + $0x34] sm:$0xf] %vm1970_vm11, %v1901_v28 }
 0x330   : > { %2297 = vst.msk [vmem:[%s4611_s23 + $0x168] sm:$0xff] %vm2273_vm13, %v2251_v45 }
 0x331   : > { %v2525_v36 = vpop.f32.mrf.mxu1 }
 0x332   : > { %v2526_v39 = vadd.f32 %v4604_v20, %v2525_v36 }
 0x333   : > { %v1899_v5 = vpop.permute.xlu1 %1898  ;;  %v1937_v49 = vpop.permute.xlu2 %1936 }
 0x334   : > { %1983 = vst.msk [vmem:[#allocation2 + $0x30] sm:$0xf] %vm1970_vm11, %v1899_v5 }
 0x335   : > { %2997 = vst.msk [vmem:[%s4611_s23 + $0x18] sm:$0xff] %vm2273_vm13, %v2526_v39 }
 0x337   : > { %v2563_v60 = vpop.f32.mrf.mxu3 }
 0x338   : > { %v2564_v34 = vadd.f32 %v4604_v20, %v2563_v60 }
 0x33a   : > { %3012 = vst.msk [vmem:[%s4611_s23 + $0x110] sm:$0xff] %vm2273_vm13, %v2564_v34 }
 0x33b   : > { %v1522_v24 = vpop.permute.xlu1 %1521  ;;  %v3060_v22 = vld [vmem:[#allocation2 + $0x30] sm:$0xff]  ;;  %v1633_v33 = vpop.permute.xlu2 %1632 }
 0x33c   : > { %v3043_v54 = vld [vmem:[#allocation2 + $0x30] sm:$0xff]  ;;  %1588 = vst.msk [vmem:[#allocation2 + $0x78] sm:$0xf] %vm1557_vm7, %v1522_v24  ;;  %2434 = vrot.lane.b32.xlu2 %v3060_v22, %s3234_s30 }
 0x33d   : > { %2899 = vmatmul.msk.bf16.gmra.mxu0 %vm2131_vm12, %v3043_v54  ;;  %1714 = vst.msk [vmem:[#allocation2 + $0x3c] sm:$0xf] %vm1698_vm8, %v1633_v33 }
 0x33e   : > { %v2429_v40 = vpop.permute.xlu0 %2428 }
 0x33f   : > { %v2565_v12 = vpop.f32.mrf.mxu3  ;;  %2983 = vmatmul.msk.bf16.gmra.mxu1 %vm2131_vm12, %v2429_v40 }
 0x340   : > { %v2566_v6 = vadd.f32 %v4604_v20, %v2565_v12 }
 0x342   : > { %3013 = vst.msk [vmem:[%s4611_s23 + $0x118] sm:$0xff] %vm2273_vm13, %v2566_v6 }
 0x343   : > { %v1665_v26 = vpop.permute.xlu1 %1664  ;;  %v1903_v48 = vpop.permute.xlu2 %1902 }
 0x344   : > { %1730 = vst.msk [vmem:[#allocation2 + $0x7c] sm:$0xf] %vm1698_vm8, %v1665_v26 }
 0x346   : > { %v1663_v10 = vpop.permute.xlu0 %1662 }
 0x347   : > { %1729 = vst.msk [vmem:[#allocation2 + $0x78] sm:$0xf] %vm1698_vm8, %v1663_v10 }
 0x348   : > { %1862 = vst.msk [vmem:[#allocation2 + $0x78] sm:$0xf] %vm1831_vm10, %v1796_v42 }
 0x34a   : > { %v2208_v19 = vpop.f32.mrf.mxu0 }
 0x34b   : > { %v2209_v32 = vadd.f32 %v4604_v20, %v2208_v19  ;;  %v1935_v59 = vpop.permute.xlu1 %1934 }
 0x34c   : > { %2001 = vst.msk [vmem:[#allocation2 + $0x78] sm:$0xf] %vm1970_vm11, %v1935_v59 }
 0x34d   : > { %2280 = vst.msk [vmem:[%s4611_s23 + $0x60] sm:$0xff] %vm2273_vm13, %v2209_v32 }
 0x34e   : > { %v1798_v52 = vpop.permute.xlu0 %1797 }
 0x34f   : > { %1863 = vst.msk [vmem:[#allocation2 + $0x7c] sm:$0xf] %vm1831_vm10, %v1798_v52 }
 0x350   : > { %2002 = vst.msk [vmem:[#allocation2 + $0x7c] sm:$0xf] %vm1970_vm11, %v1937_v49 }
 0x352   : > { %v2210_v27 = vpop.f32.mrf.mxu0 }
 0x353   : > { %v2211_v41 = vadd.f32 %v4604_v20, %v2210_v27  ;;  %v1631_v63 = vpop.permute.xlu1 %1630 }
 0x354   : > { %1713 = vst.msk [vmem:[#allocation2 + $0x38] sm:$0xf] %vm1698_vm8, %v1631_v63 }
 0x355   : > { %2281 = vst.msk [vmem:[%s4611_s23 + $0x68] sm:$0xff] %vm2273_vm13, %v2211_v41 }
 0x356   : > { %v2447_v2 = vpop.permute.xlu0 %2446 }
 0x357   : > { %2992 = vmatmul.msk.bf16.gmra.mxu3 %vm2131_vm12, %v2447_v2  ;;  %v3069_v18 = vld [vmem:[#allocation2 + $0x78] sm:$0xff] }
 0x358   : > { %v2568_v29 = vpop.f32.mrf.mxu3  ;;  %v3052_v58 = vld [vmem:[#allocation2 + $0x78] sm:$0xff]  ;;  %2452 = vrot.lane.b32.xlu0 %v3069_v18, %s3234_s30 }
 0x359   : > { %v2569_v44 = vadd.f32 %v4604_v20, %v2568_v29  ;;  %2908 = vmatmul.msk.bf16.gmra.mxu2 %vm2131_vm12, %v3052_v58 }
 0x35b   : > { %3014 = vst.msk [vmem:[%s4611_s23 + $0x130] sm:$0xff] %vm2273_vm13, %v2569_v44  ;;  %v1766_v57 = vpop.permute.xlu1 %1765 }
 0x35c   : > { %1847 = vst.msk [vmem:[#allocation2 + $0x3c] sm:$0xf] %vm1831_vm10, %v1766_v57 }
 0x35e   : > { %v1764_v31 = vpop.permute.xlu0 %1763 }
 0x35f   : > { %1846 = vst.msk [vmem:[#allocation2 + $0x38] sm:$0xf] %vm1831_vm10, %v1764_v31  ;;  %v2253_v47 = vpop.f32.mrf.mxu2  ;;  %v2449_v25 = vpop.permute.xlu2 %2448 }
 0x360   : > { %v2570_v15 = vpop.f32.mrf.mxu3  ;;  %1985 = vst.msk [vmem:[#allocation2 + $0x38] sm:$0xf] %vm1970_vm11, %v1903_v48  ;;  %v2254_v53 = vadd.f32 %v4604_v20, %v2253_v47 }
 0x361   : > { %v2571_v8 = vadd.f32 %v4604_v20, %v2570_v15 }
 0x362   : > { %2298 = vst.msk [vmem:[%s4611_s23 + $0x180] sm:$0xff] %vm2273_vm13, %v2254_v53 }
 0x363   : > { %v2431_v50 = vpop.permute.xlu1 %2430  ;;  %3015 = vst.msk [vmem:[%s4611_s23 + $0x138] sm:$0xff] %vm2273_vm13, %v2571_v8 }
 0x364   : > { %2984 = vmatmul.msk.bf16.gmra.mxu1 %vm2131_vm12, %v2431_v50 }
 0x366   : > { %v1905_v13 = vpop.permute.xlu0 %1904 }
 0x367   : > { %1986 = vst.msk [vmem:[#allocation2 + $0x3c] sm:$0xf] %vm1970_vm11, %v1905_v13  ;;  %v2255_v46 = vpop.f32.mrf.mxu2  ;;  %2993 = vmatmul.msk.bf16.gmra.mxu3 %vm2131_vm12, %v2449_v25 }
 0x368   : > { %v2573_v21 = vpop.f32.mrf.mxu3  ;;  %v2256_v37 = vadd.f32 %v4604_v20, %v2255_v46 }
 0x369   : > { %v2574_v7 = vadd.f32 %v4604_v20, %v2573_v21  ;;  %v2528_v3 = vpop.f32.mrf.mxu1 }
 0x36a   : > { %v2529_v17 = vadd.f32 %v4604_v20, %v2528_v3  ;;  %2299 = vst.msk [vmem:[%s4611_s23 + $0x188] sm:$0xff] %vm2273_vm13, %v2256_v37  ;;  %v2213_v23 = vpop.f32.mrf.mxu0 }
 0x36b   : > { %3016 = vst.msk [vmem:[%s4611_s23 + $0x150] sm:$0xff] %vm2273_vm13, %v2574_v7  ;;  %v2214_v0 = vadd.f32 %v4604_v20, %v2213_v23 }
 0x36c   : > { %2998 = vst.msk [vmem:[%s4611_s23 + $0x30] sm:$0xff] %vm2273_vm13, %v2529_v17 }
 0x36d   : > { %2282 = vst.msk [vmem:[%s4611_s23 + $0x80] sm:$0xff] %vm2273_vm13, %v2214_v0 }
 0x36e   : > { %v3061_v16 = vld [vmem:[#allocation2 + $0x38] sm:$0xff] }
 0x36f   : > { %v3044_v1 = vld [vmem:[#allocation2 + $0x38] sm:$0xff]  ;;  %2436 = vrot.lane.b32.xlu1 %v3061_v16, %s3234_s30  ;;  %s3158_s30 = sshra.s32 %s2656_s27, 4  ;;  %s3159_s30 = int_to_ptr.hbm [resolvable:$true] %s3158_s30 }
 0x370   : > { %v2575_v28 = vpop.f32.mrf.mxu3  ;;  %2900 = vmatmul.msk.bf16.gmra.mxu0 %vm2131_vm12, %v3044_v1  ;;  %s3160_s6 = scalar_lea.hbm %s3159_s30, 512  ;;  %p3165_p1 = scmp.lt.s32.totalorder %s3159_s30, %s4955_s5 }
 0x371   : > { %v2576_v35 = vadd.f32 %v4604_v20, %v2575_v28  ;;  %v2530_v11 = vpop.f32.mrf.mxu1  ;;  %p3161_p12 = scmp.ne.s32.totalorder %s3159_s30, %s3160_s6  ;;  %p3166_p2 = scmp.lt.s32.totalorder %s3164_s9, %s3160_s6 }
 0x372   : > { %v2531_v14 = vadd.f32 %v4604_v20, %v2530_v11  ;;  %v2215_v4 = vpop.f32.mrf.mxu0 }
 0x373   : > { %3017 = vst.msk [vmem:[%s4611_s23 + $0x158] sm:$0xff] %vm2273_vm13, %v2576_v35  ;;  %v2216_v9 = vadd.f32 %v4604_v20, %v2215_v4  ;;  %p3162_p13 = pnand %p3161_p12, %p3306_p4  ;;  %p3167_p3 = por %p3166_p2, %p3165_p1 }
 0x374   : > { %2999 = vst.msk [vmem:[%s4611_s23 + $0x38] sm:$0xff] %vm2273_vm13, %v2531_v14 }
 0x375   : > { %2283 = vst.msk [vmem:[%s4611_s23 + $0x88] sm:$0xff] %vm2273_vm13, %v2216_v9  ;;  %p3163_p0 = pneg %p3162_p13 }
 0x377   : > { %p3168_p5 = pnand %p3167_p3, %p3163_p0 }
 0x386   : > { %v2433_v38 = vpop.permute.xlu0 %2432 }
 0x387   : > { %v2258_v61 = vpop.f32.mrf.mxu2  ;;  %2985 = vmatmul.msk.bf16.gmra.mxu1 %vm2131_vm12, %v2433_v38 }
 0x388   : > { %v2259_v56 = vadd.f32 %v4604_v20, %v2258_v61 }
 0x38a   : > { %v2533_v51 = vpop.f32.mrf.mxu1  ;;  %2300 = vst.msk [vmem:[%s4611_s23 + $0x1a0] sm:$0xff] %vm2273_vm13, %v2259_v56 }
 0x38b   : > { %v2534_v55 = vadd.f32 %v4604_v20, %v2533_v51 }
 0x38d   : > { %3000 = vst.msk [vmem:[%s4611_s23 + $0x50] sm:$0xff] %vm2273_vm13, %v2534_v55 }
 0x38f   : > { %v2578_v62 = vpop.f32.mrf.mxu3  ;;  %v2260_v42 = vpop.f32.mrf.mxu2 }
 0x390   : > { %v2579_v30 = vadd.f32 %v4604_v20, %v2578_v62  ;;  %v2261_v43 = vadd.f32 %v4604_v20, %v2260_v42 }
 0x392   : > { %3018 = vst.msk [vmem:[%s4611_s23 + $0x170] sm:$0xff] %vm2273_vm13, %v2579_v30  ;;  %v2535_v45 = vpop.f32.mrf.mxu1  ;;  %v2218_v36 = vpop.f32.mrf.mxu0 }
 0x393   : > { %2301 = vst.msk [vmem:[%s4611_s23 + $0x1a8] sm:$0xff] %vm2273_vm13, %v2261_v43  ;;  %v2536_v39 = vadd.f32 %v4604_v20, %v2535_v45  ;;  %v2219_v5 = vadd.f32 %v4604_v20, %v2218_v36 }
 0x395   : > { %3001 = vst.msk [vmem:[%s4611_s23 + $0x58] sm:$0xff] %vm2273_vm13, %v2536_v39 }
 0x396   : > { %2284 = vst.msk [vmem:[%s4611_s23 + $0xa0] sm:$0xff] %vm2273_vm13, %v2219_v5  ;;  %v2435_v60 = vpop.permute.xlu2 %2434 }
 0x397   : > { %v2580_v49 = vpop.f32.mrf.mxu3  ;;  %2986 = vmatmul.msk.bf16.gmra.mxu1 %vm2131_vm12, %v2435_v60 }
 0x398   : > { %v2581_v34 = vadd.f32 %v4604_v20, %v2580_v49 }
 0x39a   : > { %3019 = vst.msk [vmem:[%s4611_s23 + $0x178] sm:$0xff] %vm2273_vm13, %v2581_v34  ;;  %v2220_v24 = vpop.f32.mrf.mxu0 }
 0x39b   : > { %v2221_v22 = vadd.f32 %v4604_v20, %v2220_v24 }
 0x39d   : > { %2285 = vst.msk [vmem:[%s4611_s23 + $0xa8] sm:$0xff] %vm2273_vm13, %v2221_v22 }
 0x39e   : > { %v2451_v54 = vpop.permute.xlu1 %2450 }
 0x39f   : > { %2994 = vmatmul.msk.bf16.gmra.mxu3 %vm2131_vm12, %v2451_v54 }
 0x3b0   : > { %v2263_v33 = vpop.f32.mrf.mxu2 }
 0x3b1   : > { %v2264_v12 = vadd.f32 %v4604_v20, %v2263_v33 }
 0x3b3   : > { %2302 = vst.msk [vmem:[%s4611_s23 + $0x1c0] sm:$0xff] %vm2273_vm13, %v2264_v12 }
 0x3b8   : > { %v2265_v40 = vpop.f32.mrf.mxu2 }
 0x3b9   : > { %v2266_v6 = vadd.f32 %v4604_v20, %v2265_v40 }
 0x3ba   : > { %v2223_v26 = vpop.f32.mrf.mxu0 }
 0x3bb   : > { %2303 = vst.msk [vmem:[%s4611_s23 + $0x1c8] sm:$0xff] %vm2273_vm13, %v2266_v6  ;;  %v2224_v10 = vadd.f32 %v4604_v20, %v2223_v26 }
 0x3bc   : > { %v2538_v19 = vpop.f32.mrf.mxu1 }
 0x3bd   : > { %2286 = vst.msk [vmem:[%s4611_s23 + $0xc0] sm:$0xff] %vm2273_vm13, %v2224_v10  ;;  %v2539_v32 = vadd.f32 %v4604_v20, %v2538_v19 }
 0x3bf   : > { %3002 = vst.msk [vmem:[%s4611_s23 + $0x70] sm:$0xff] %vm2273_vm13, %v2539_v32 }
 0x3c2   : > { %v2225_v59 = vpop.f32.mrf.mxu0 }
 0x3c3   : > { %v2226_v52 = vadd.f32 %v4604_v20, %v2225_v59 }
 0x3c4   : > { %v2540_v27 = vpop.f32.mrf.mxu1 }
 0x3c5   : > { %2287 = vst.msk [vmem:[%s4611_s23 + $0xc8] sm:$0xff] %vm2273_vm13, %v2226_v52  ;;  %v2541_v41 = vadd.f32 %v4604_v20, %v2540_v27 }
 0x3c7   : > { %3003 = vst.msk [vmem:[%s4611_s23 + $0x78] sm:$0xff] %vm2273_vm13, %v2541_v41 }
 0x3ca   : > { %v2453_v63 = vpop.permute.xlu0 %2452 }
 0x3cb   : > { %2995 = vmatmul.msk.bf16.gmra.mxu3 %vm2131_vm12, %v2453_v63 }
 0x3da   : > { %v2583_v2 = vpop.f32.mrf.mxu3 }
 0x3db   : > { %v2584_v29 = vadd.f32 %v4604_v20, %v2583_v2 }
 0x3dc   : > { %v2268_v18 = vpop.f32.mrf.mxu2 }
 0x3dd   : > { %3020 = vst.msk [vmem:[%s4611_s23 + $0x190] sm:$0xff] %vm2273_vm13, %v2584_v29  ;;  %v2269_v58 = vadd.f32 %v4604_v20, %v2268_v18 }
 0x3df   : > { %2304 = vst.msk [vmem:[%s4611_s23 + $0x1e0] sm:$0xff] %vm2273_vm13, %v2269_v58 }
 0x3e1   : > { %v2543_v44 = vpop.f32.mrf.mxu1  ;;  %v2437_v31 = vpop.permute.xlu1 %2436 }
 0x3e2   : > { %v2544_v57 = vadd.f32 %v4604_v20, %v2543_v44  ;;  %v2585_v48 = vpop.f32.mrf.mxu3  ;;  %2987 = vmatmul.msk.bf16.gmra.mxu1 %vm2131_vm12, %v2437_v31 }
 0x3e3   : > { %v2586_v47 = vadd.f32 %v4604_v20, %v2585_v48 }
 0x3e4   : > { %3004 = vst.msk [vmem:[%s4611_s23 + $0x90] sm:$0xff] %vm2273_vm13, %v2544_v57  ;;  %v2270_v15 = vpop.f32.mrf.mxu2 }
 0x3e5   : > { %3021 = vst.msk [vmem:[%s4611_s23 + $0x198] sm:$0xff] %vm2273_vm13, %v2586_v47  ;;  %v2271_v53 = vadd.f32 %v4604_v20, %v2270_v15 }
 0x3e7   : > { %2305 = vst.msk [vmem:[%s4611_s23 + $0x1e8] sm:$0xff] %vm2273_vm13, %v2271_v53 }
 0x3e9   : > { %v2545_v8 = vpop.f32.mrf.mxu1 }
 0x3ea   : > { %v2546_v50 = vadd.f32 %v4604_v20, %v2545_v8  ;;  %v2588_v25 = vpop.f32.mrf.mxu3 }
 0x3eb   : > { %v2589_v13 = vadd.f32 %v4604_v20, %v2588_v25 }
 0x3ec   : > { %3005 = vst.msk [vmem:[%s4611_s23 + $0x98] sm:$0xff] %vm2273_vm13, %v2546_v50 }
 0x3ed   : > { %3022 = vst.msk [vmem:[%s4611_s23 + $0x1b0] sm:$0xff] %vm2273_vm13, %v2589_v13  ;;  %v2228_v46 = vpop.f32.mrf.mxu0 }
 0x3ee   : > { %v2229_v21 = vadd.f32 %v4604_v20, %v2228_v46 }
 0x3f0   : > { %2288 = vst.msk [vmem:[%s4611_s23 + $0xe0] sm:$0xff] %vm2273_vm13, %v2229_v21 }
 0x3f2   : > { %v2590_v37 = vpop.f32.mrf.mxu3 }
 0x3f3   : > { %v2591_v7 = vadd.f32 %v4604_v20, %v2590_v37 }
 0x3f5   : > { %3023 = vst.msk [vmem:[%s4611_s23 + $0x1b8] sm:$0xff] %vm2273_vm13, %v2591_v7  ;;  %v2230_v3 = vpop.f32.mrf.mxu0 }
 0x3f6   : > { %v2231_v17 = vadd.f32 %v4604_v20, %v2230_v3 }
 0x3f8   : > { %2289 = vst.msk [vmem:[%s4611_s23 + $0xe8] sm:$0xff] %vm2273_vm13, %v2231_v17 }
 0x404   : > { %v2548_v23 = vpop.f32.mrf.mxu1 }
 0x405   : > { %v2549_v0 = vadd.f32 %v4604_v20, %v2548_v23 }
 0x407   : > { %3006 = vst.msk [vmem:[%s4611_s23 + $0xb0] sm:$0xff] %vm2273_vm13, %v2549_v0 }
 0x40c   : > { %v2550_v16 = vpop.f32.mrf.mxu1 }
 0x40d   : > { %v2551_v1 = vadd.f32 %v4604_v20, %v2550_v16 }
 0x40f   : > { %3007 = vst.msk [vmem:[%s4611_s23 + $0xb8] sm:$0xff] %vm2273_vm13, %v2551_v1 }
 0x414   : > { %v2553_v28 = vpop.f32.mrf.mxu1 }
 0x415   : > { %v2554_v35 = vadd.f32 %v4604_v20, %v2553_v28 }
 0x417   : > { %3008 = vst.msk [vmem:[%s4611_s23 + $0xd0] sm:$0xff] %vm2273_vm13, %v2554_v35 }
 0x41c   : > { %v2555_v11 = vpop.f32.mrf.mxu1 }
 0x41d   : > { %v2556_v14 = vadd.f32 %v4604_v20, %v2555_v11 }
 0x41f   : > { %3009 = vst.msk [vmem:[%s4611_s23 + $0xd8] sm:$0xff] %vm2273_vm13, %v2556_v14 }
 0x422   : > { %v2593_v4 = vpop.f32.mrf.mxu3 }
 0x423   : > { %v2594_v9 = vadd.f32 %v4604_v20, %v2593_v4 }
 0x425   : > { %3024 = vst.msk [vmem:[%s4611_s23 + $0x1d0] sm:$0xff] %vm2273_vm13, %v2594_v9 }
 0x42a   : > { %v2595_v38 = vpop.f32.mrf.mxu3 }
 0x42b   : > { %v2596_v61 = vadd.f32 %v4604_v20, %v2595_v38 }
 0x42d   : > { %3025 = vst.msk [vmem:[%s4611_s23 + $0x1d8] sm:$0xff] %vm2273_vm13, %v2596_v61 }
 0x44e   : > { %v2598_v56 = vpop.f32.mrf.mxu3 }
 0x44f   : > { %v2599_v51 = vadd.f32 %v4604_v20, %v2598_v56 }
 0x451   : > { %3026 = vst.msk [vmem:[%s4611_s23 + $0x1f0] sm:$0xff] %vm2273_vm13, %v2599_v51 }
 0x456   : > { %v2600_v55 = vpop.f32.mrf.mxu3 }
 0x457   : > { %v2601_v62 = vadd.f32 %v4604_v20, %v2600_v55 }
 0x459   : > { %3027 = vst.msk [vmem:[%s4611_s23 + $0x1f8] sm:$0xff] %vm2273_vm13, %v2601_v62 }
 0x45f   : > { %v2558_v42 = vpop.f32.mrf.mxu1 }
 0x460   : > { %v2559_v30 = vadd.f32 %v4604_v20, %v2558_v42 }
 0x462   : > { %3010 = vst.msk [vmem:[%s4611_s23 + $0xf0] sm:$0xff] %vm2273_vm13, %v2559_v30 }
 0x467   : > { %v2560_v43 = vpop.f32.mrf.mxu1 }
 0x468   : > { %v2561_v45 = vadd.f32 %v4604_v20, %v2560_v43 }
 0x46a   : > { %3011 = vst.msk [vmem:[%s4611_s23 + $0xf8] sm:$0xff] %vm2273_vm13, %v2561_v45 }
 0x46b   : > { %3171 = shalt.err (!%p3168_p5)
}
 0x46c   : > { %s3235_s10 = smov 128  }
 0x46d   : > { %3076 = dma.vmem_to_hbm [thread:$0]  (%p3306_p4), %s2654_s25, 8192, %s2656_s27, %s2637_s1, %s3235_s10, %s3235_s10, %s3227_s11  }
 0x46e PF: > { %p3082_p6 = scmp.ge.s32.totalorder %s3222_s21, 2  ;;  %s2670_s22 = sand.u32 1, %s3202_s18  }
 0x46f   : > { %s2671_s23 = scalar_lea.sflag [#allocation4], %s2670_s22 }
 0x470   : > { %p3079_p7 = pnand %p3082_p6, %p3313_p8 }
 0x472   : > { %p3080_p9 = pneg %p3079_p7 }
 0x474   : > { %3197 = dma.done.wait (%p3080_p9), %s2671_s23, 8192  }
 0x475   : > { %3199 = vsyncadd (%p3080_p9), %s2671_s23, 4294959104  ;;  %s18_s21 = sadd.s32 1, %s3222_s21   ;;  %s5193_s18 = smov %s3206_s19 }
 0x476   : > { %p15_p10 = scmp.ge.s32.totalorder %s18_s21, 4   ;;  %s5194_s19 = smov %s3210_s20 }
 0x477   : > { %s5195_s20 = smov %s3319_s29  ;;  %s5196_s1 = smov %s3218_s2 }
 0x478   : > { %s5197_s2 = smov %s5199_s24  ;;  %17 = sbr.rel (!%p15_p10) target bundleno = 4 (0x4), region = 89 }
 0x47d   :  { %2677 = vsyncpa [#allocation4], 1 }
 0x47e   :  { %2679 = vsyncpa [#allocation4 + $0x1], 1 }

</bundles_post_ra>
